<compile_context>
chip_gen: v7x
topology: tpu7x:2x2x1
jax: 0.10.0
libtpu: 0.0.40
codegen_flags: <defaults>
</compile_context>

<pallas_src>
import math

import jax
import jax.numpy as jnp
from jax.experimental import pallas as pl
from jax.experimental.pallas import tpu as pltpu


# ---------------------------------------------------------------------------
# Tile-size helpers
# ---------------------------------------------------------------------------
def _pick_tile(dim, candidates):
    """Largest candidate that divides `dim`; fall back to the full dimension."""
    for t in candidates:
        if t <= dim and dim % t == 0:
            return t
    return dim


def _pick_head_block(num_heads, head_dim):
    """Heads packed per attention block: hblk*head_dim must be a multiple of
    128 (lane-dense) and should stay near 256 lanes (MXU-friendly, modest VMEM
    footprint on v7x)."""
    valid = [c for c in range(1, num_heads + 1)
             if num_heads % c == 0 and (c * head_dim) % 128 == 0]
    assert valid, "num_heads * head_dim must be a multiple of 128"
    return min(valid, key=lambda c: (abs(c * head_dim - 256), c))


# ---------------------------------------------------------------------------
# Kernels
# ---------------------------------------------------------------------------
def linear_kernel(x_ref, w_ref, b_ref, o_ref, acc_ref):
    # x: [tm, tk] bf16, w: [tk, tn] bf16, b: [1, tn] f32 -> o: [tm, tn]
    @pl.when(pl.program_id(2) == 0)
    def _init():
        acc_ref[...] = jnp.zeros_like(acc_ref)

    acc_ref[...] += jnp.dot(x_ref[...], w_ref[...],
                            preferred_element_type=jnp.float32)

    @pl.when(pl.program_id(2) == pl.num_programs(2) - 1)
    def _finalize():
        o_ref[...] = (acc_ref[...] + b_ref[...].astype(jnp.float32)
                      ).astype(o_ref.dtype)


def make_attn_kernel(hblk, hd):
    """Flash attention over `hblk` heads packed along the lane dimension.

    q_ref: [tq,  hblk*hd]  (bf16, 1/sqrt(hd) already folded into q)
    k_ref: [tkv, hblk*hd]
    v_ref: [tkv, hblk*hd]
    o_ref: [tq,  hblk*hd]  (head-merged layout, column h*hd+d)
    m_sc / l_sc: [tq, hblk] f32 running max / sum (one column per local head)
    acc_sc:      [tq, hblk*hd] f32 output accumulator
    """

    def attn_kernel(q_ref, k_ref, v_ref, o_ref, m_sc, l_sc, acc_sc):
        kv = pl.program_id(3)

        @pl.when(kv == 0)
        def _init():
            m_sc[...] = jnp.full_like(m_sc, -jnp.inf)
            l_sc[...] = jnp.zeros_like(l_sc)
            acc_sc[...] = jnp.zeros_like(acc_sc)

        # Per-head online softmax; hblk is small so this unrolls to a handful
        # of MXU matmuls per kv step.  All slices are static.
        for h in range(hblk):
            sl = slice(h * hd, (h + 1) * hd)
            qh = q_ref[:, sl]                              # [tq, hd]
            kh = k_ref[:, sl]                              # [tkv, hd]
            vh = v_ref[:, sl]                              # [tkv, hd]

            # QK^T (contract over hd) without a materialized transpose.
            s = jax.lax.dot_general(
                qh, kh, (((1,), (1,)), ((), ())),
                preferred_element_type=jnp.float32)        # [tq, tkv]

            m_prev = m_sc[:, h:h + 1]                      # [tq, 1]
            m_new = jnp.maximum(m_prev, s.max(axis=-1, keepdims=True))
            alpha = jnp.exp(m_prev - m_new)
            p = jnp.exp(s - m_new)

            l_sc[:, h:h + 1] = alpha * l_sc[:, h:h + 1] + \
                p.sum(axis=-1, keepdims=True)
            pv = jnp.dot(p.astype(vh.dtype), vh,
                         preferred_element_type=jnp.float32)  # [tq, hd]
            acc_sc[:, sl] = alpha * acc_sc[:, sl] + pv
            m_sc[:, h:h + 1] = m_new

        @pl.when(kv == pl.num_programs(3) - 1)
        def _finalize():
            # Exact reciprocal: runs once per q tile, negligible cost.
            inv = pl.reciprocal(l_sc[...], approx=False)   # [tq, hblk]
            for h in range(hblk):
                sl = slice(h * hd, (h + 1) * hd)
                acc_sc[:, sl] = acc_sc[:, sl] * inv[:, h:h + 1]
            # Single lane-dense store of the whole [tq, hblk*hd] block.
            o_ref[...] = acc_sc[...].astype(o_ref.dtype)

    return attn_kernel


# ---------------------------------------------------------------------------
# pallas_call wrappers
# ---------------------------------------------------------------------------
def pallas_linear(x2d, w, b, out_dtype):
    """x2d: [M, K] bf16, w: [K, N] bf16, b: [N] f32 -> [M, N] out_dtype."""
    M0, K = x2d.shape
    N = w.shape[1]

    # Pad rows to a multiple of 8 so arbitrary B*S satisfies the (8,128) rule
    # instead of falling back to one giant (possibly VMEM-busting) block.
    pad = (-M0) % 8
    if pad:
        x2d = jnp.pad(x2d, ((0, pad), (0, 0)))
    M = M0 + pad

    # Prefer 256-multiples for the MXU dims; keep tm <= M/2 when possible so a
    # parallel grid axis has >=2 blocks (v7x has 2 TensorCores per chip).
    tm_cands = [c for c in (512, 256, 128, 64, 32, 16, 8) if c <= max(M // 2, 8)]
    tm = _pick_tile(M, tm_cands)
    tn = _pick_tile(N, (512, 256, 128))
    tk = _pick_tile(K, (512, 256, 128))
    grid = (M // tm, N // tn, K // tk)

    out = pl.pallas_call(
        linear_kernel,
        out_shape=jax.ShapeDtypeStruct((M, N), out_dtype),
        grid_spec=pltpu.PrefetchScalarGridSpec(
            num_scalar_prefetch=0,
            grid=grid,
            in_specs=[
                pl.BlockSpec((tm, tk), lambda i, j, k: (i, k)),
                pl.BlockSpec((tk, tn), lambda i, j, k: (k, j)),
                pl.BlockSpec((1, tn), lambda i, j, k: (0, j)),
            ],
            out_specs=pl.BlockSpec((tm, tn), lambda i, j, k: (i, j)),
            scratch_shapes=[pltpu.VMEM((tm, tn), jnp.float32)],
        ),
        compiler_params=pltpu.CompilerParams(
            dimension_semantics=("parallel", "parallel", "arbitrary"),
            # 48 MiB: above the scoped default on every generation, safely
            # below v7x's 64 MiB physical VMEM.
            vmem_limit_bytes=48 * 1024 * 1024,
        ),
    )(x2d, w, b.reshape(1, N))
    return out[:M0] if pad else out


def pallas_flash_attention_qkv(qkv, batch, seq, num_heads, head_dim,
                               out_dtype=jnp.bfloat16):
    """Flash attention reading q/k/v directly from the [B*S, 3D] qkv slab.

    Slab columns are ordered [q|k|v][head][dim] (see prepare_params), so q/k/v
    for a head-block are contiguous column ranges addressed purely through the
    BlockSpec index_maps.  Output is [B*S, D] in head-merged layout, ready for
    the output projection with no transpose.
    """
    D = num_heads * head_dim
    assert seq % 8 == 0, "TODO(synk): pad ragged sequence lengths"

    hblk = _pick_head_block(num_heads, head_dim)
    W = hblk * head_dim                      # lane width of every block (>=128)
    tq = _pick_tile(seq, (256, 128, 64, 32, 16, 8))
    tkv = _pick_tile(seq, (512, 256, 128, 64, 32, 16, 8))
    nhb, nq, nkv = num_heads // hblk, seq // tq, seq // tkv

    # Column block indices inside the slab (block width = W):
    #   q head-block hb -> hb,  k -> nhb + hb,  v -> 2*nhb + hb.
    q_spec = pl.BlockSpec((tq, W), lambda b, hb, qi, kv: (b * nq + qi, hb))
    k_spec = pl.BlockSpec((tkv, W), lambda b, hb, qi, kv: (b * nkv + kv, nhb + hb))
    v_spec = pl.BlockSpec((tkv, W), lambda b, hb, qi, kv: (b * nkv + kv, 2 * nhb + hb))
    o_spec = pl.BlockSpec((tq, W), lambda b, hb, qi, kv: (b * nq + qi, hb))

    return pl.pallas_call(
        make_attn_kernel(hblk, head_dim),
        out_shape=jax.ShapeDtypeStruct((batch * seq, D), out_dtype),
        grid_spec=pltpu.PrefetchScalarGridSpec(
            num_scalar_prefetch=0,
            grid=(batch, nhb, nq, nkv),
            in_specs=[q_spec, k_spec, v_spec],
            out_specs=o_spec,
            scratch_shapes=[
                pltpu.VMEM((tq, hblk), jnp.float32),   # running max per head
                pltpu.VMEM((tq, hblk), jnp.float32),   # running sum per head
                pltpu.VMEM((tq, W), jnp.float32),      # output accumulator
            ],
        ),
        compiler_params=pltpu.CompilerParams(
            dimension_semantics=("parallel", "parallel", "parallel", "arbitrary"),
            vmem_limit_bytes=48 * 1024 * 1024,
        ),
    )(qkv, qkv, qkv)


# ---------------------------------------------------------------------------
# One-time parameter prep (hoisted out of the forward): reorder qkv columns
# [head][q|k|v][dim] -> [q|k|v][head][dim], fold 1/sqrt(head_dim) into the q
# columns, cast matmul operands to bf16.
# ---------------------------------------------------------------------------
def prepare_params(params, num_heads):
    d_model = params["w_out"].shape[0]
    head_dim = d_model // num_heads
    scale = 1.0 / math.sqrt(head_dim)

    w = params["w_qkv"].reshape(d_model, num_heads, 3, head_dim)
    w = jnp.transpose(w, (0, 2, 1, 3))                     # [D, 3, H, hd]
    w = w.at[:, 0].multiply(scale)                         # fold scale into q
    b = params["b_qkv"].reshape(num_heads, 3, head_dim)
    b = jnp.transpose(b, (1, 0, 2))                        # [3, H, hd]
    b = b.at[0].multiply(scale)

    return {
        "w_qkv": w.reshape(d_model, 3 * d_model).astype(jnp.bfloat16),
        "b_qkv": b.reshape(3 * d_model).astype(jnp.float32),
        "w_out": params["w_out"].astype(jnp.bfloat16),
        "b_out": params["b_out"].astype(jnp.float32),
    }


# ---------------------------------------------------------------------------
# MultiHeadAttention forward (matches the PyTorch module semantics)
# ---------------------------------------------------------------------------
def multi_head_attention(x, prep, num_heads, mask=None, out_dtype=jnp.float32):
    # TODO(synk): mask branch (mask is None in the reference forward); adding
    # it means adding mask to scores pre-softmax and guarding all-masked rows.
    assert mask is None

    B, S, D = x.shape
    head_dim = D // num_heads

    # 1) QKV projection -> [B*S, 3D] slab, columns [q|k|v][head][dim].
    x2d = x.reshape(B * S, D).astype(jnp.bfloat16)
    qkv = pallas_linear(x2d, prep["w_qkv"], prep["b_qkv"],
                        out_dtype=jnp.bfloat16)

    # 2) Flash attention straight off the slab -> [B*S, D] head-merged.
    values = pallas_flash_attention_qkv(qkv, B, S, num_heads, head_dim,
                                        out_dtype=jnp.bfloat16)

    # 3) Output projection.
    out = pallas_linear(values, prep["w_out"], prep["b_out"],
                        out_dtype=out_dtype)
    return out.reshape(B, S, D)


# ---------------------------------------------------------------------------
# Synthetic params (same layout as nn.Linear(d_model, 3*d_model) /
# nn.Linear(d_model, d_model), stored as [in, out], i.e. already transposed).
# ---------------------------------------------------------------------------
def init_params(key, d_model):
    k1, k2, k3, k4 = jax.random.split(key, 4)
    bound = 1.0 / math.sqrt(d_model)
    return {
        "w_qkv": jax.random.uniform(k1, (d_model, 3 * d_model), jnp.float32,
                                    -bound, bound),
        "b_qkv": jax.random.uniform(k2, (3 * d_model,), jnp.float32,
                                    -bound, bound),
        "w_out": jax.random.uniform(k3, (d_model, d_model), jnp.float32,
                                    -bound, bound),
        "b_out": jax.random.uniform(k4, (d_model,), jnp.float32,
                                    -bound, bound),
    }


def reference_mha(x, params, num_heads):
    # Pure-JAX f32 reference mirroring the PyTorch forward.
    B, S, D = x.shape
    hd = D // num_heads
    qkv = x.reshape(B * S, D) @ params["w_qkv"] + params["b_qkv"]
    qkv = qkv.reshape(B, S, num_heads, 3 * hd).transpose(0, 2, 1, 3)
    q, k, v = qkv[..., :hd], qkv[..., hd:2 * hd], qkv[..., 2 * hd:]
    att = jnp.einsum('bhqd,bhkd->bhqk', q, k) / math.sqrt(hd)
    att = jax.nn.softmax(att, axis=-1)
    vals = jnp.einsum('bhqk,bhkd->bhqd', att, v)
    vals = vals.transpose(0, 2, 1, 3).reshape(B * S, D)
    return (vals @ params["w_out"] + params["b_out"]).reshape(B, S, D)


if __name__ == "__main__":
    # Small shapes consistent with the module spec (d_model=512, num_heads=8).
    batch, seq, d_model, num_heads = 2, 8, 512, 8

    key = jax.random.PRNGKey(0)
    kx, kp = jax.random.split(key)
    x = jax.random.normal(kx, (batch, seq, d_model), dtype=jnp.float32)
    params = init_params(kp, d_model)

    # One-time parameter prep (hoisted out of the forward path).
    prep = prepare_params(params, num_heads)
    prep = jax.tree_util.tree_map(jax.block_until_ready, prep)

    fwd = jax.jit(lambda xx: multi_head_attention(xx, prep, num_heads))
    out = jax.block_until_ready(fwd(x))

    assert out.shape == (batch, seq, d_model)
    assert bool(jnp.all(jnp.isfinite(out)))

    # Loose tolerance: kernels run bf16 operands with f32 accumulation.
    ref = reference_mha(x, params, num_heads)
    max_err = float(jnp.max(jnp.abs(out - ref)))
    assert max_err < 5e-2, f"max_err={max_err}"

    print("KERNEL_OK")
</pallas_src>

<mosaic_0001>
module attributes {stable_mosaic.version = 11 : i64} {
  func.func @attn_kernel(%arg0: i32, %arg1: i32, %arg2: i32, %arg3: i32, %arg4: memref<8x256xbf16, #tpu.memory_space<vmem>>, %arg5: memref<8x256xbf16, #tpu.memory_space<vmem>>, %arg6: memref<8x256xbf16, #tpu.memory_space<vmem>>, %arg7: memref<8x256xbf16, #tpu.memory_space<vmem>>, %arg8: memref<8x4xf32, #tpu.memory_space<vmem>>, %arg9: memref<8x4xf32, #tpu.memory_space<vmem>>, %arg10: memref<8x256xf32, #tpu.memory_space<vmem>>) attributes {dimension_semantics = [#tpu.dimension_semantics<parallel>, #tpu.dimension_semantics<parallel>, #tpu.dimension_semantics<parallel>, #tpu.dimension_semantics<arbitrary>], iteration_bounds = array<i64: 2, 2, 1, 1>, scalar_prefetch = 0 : i64, scratch_operands = 3 : i64, tpu.core_type = #tpu.core_type<tc>, window_params = [{transform_indices = @transform_0, window_bounds = array<i64: 8, 256>}, {transform_indices = @transform_1, window_bounds = array<i64: 8, 256>}, {transform_indices = @transform_2, window_bounds = array<i64: 8, 256>}, {transform_indices = @transform_3, window_bounds = array<i64: 8, 256>}]} {
    %c0_i32 = arith.constant 0 : i32
    %0 = arith.cmpi eq, %arg3, %c0_i32 : i32
    %1 = arith.extui %0 : i1 to i32
    %c0_i32_0 = arith.constant 0 : i32
    %2 = arith.cmpi ne, %1, %c0_i32_0 : i32
    scf.if %2 {
      %cst_83 = arith.constant 0xFF800000 : f32
      %114 = vector.broadcast %cst_83 : f32 to vector<8x4xf32>
      %c0_84 = arith.constant 0 : index
      %c0_85 = arith.constant 0 : index
      %115 = vector.load %arg8[%c0_84, %c0_85] : memref<8x4xf32, #tpu.memory_space<vmem>>, vector<8x4xf32>
      tpu.vector_store %arg8[%c0_84, %c0_85], %114 {strides = array<i32>} : memref<8x4xf32, #tpu.memory_space<vmem>>, vector<8x4xf32>,
      %cst_86 = arith.constant 0.000000e+00 : f32
      %116 = vector.broadcast %cst_86 : f32 to vector<8x4xf32>
      %c0_87 = arith.constant 0 : index
      %c0_88 = arith.constant 0 : index
      %117 = vector.load %arg9[%c0_87, %c0_88] : memref<8x4xf32, #tpu.memory_space<vmem>>, vector<8x4xf32>
      tpu.vector_store %arg9[%c0_87, %c0_88], %116 {strides = array<i32>} : memref<8x4xf32, #tpu.memory_space<vmem>>, vector<8x4xf32>,
      %cst_89 = arith.constant 0.000000e+00 : f32
      %118 = vector.broadcast %cst_89 : f32 to vector<8x256xf32>
      %c0_90 = arith.constant 0 : index
      %c0_91 = arith.constant 0 : index
      %119 = vector.load %arg10[%c0_90, %c0_91] : memref<8x256xf32, #tpu.memory_space<vmem>>, vector<8x256xf32>
      tpu.vector_store %arg10[%c0_90, %c0_91], %118 {strides = array<i32>} : memref<8x256xf32, #tpu.memory_space<vmem>>, vector<8x256xf32>,
    } else {
    }
    %c0 = arith.constant 0 : index
    %c0_1 = arith.constant 0 : index
    %3 = vector.load %arg4[%c0, %c0_1] : memref<8x256xbf16, #tpu.memory_space<vmem>>, vector<8x64xbf16>
    %c0_2 = arith.constant 0 : index
    %c0_3 = arith.constant 0 : index
    %4 = vector.load %arg5[%c0_2, %c0_3] : memref<8x256xbf16, #tpu.memory_space<vmem>>, vector<8x64xbf16>
    %c0_4 = arith.constant 0 : index
    %c0_5 = arith.constant 0 : index
    %5 = vector.load %arg6[%c0_4, %c0_5] : memref<8x256xbf16, #tpu.memory_space<vmem>>, vector<8x64xbf16>
    %cst = arith.constant dense<0.000000e+00> : vector<8x8xf32>
    %6 = tpu.matmul %3, %4, %cst {dimension_numbers = #tpu.dot_dimension_numbers<[1], [1], [0], [0], [0, 0, 1, 0], [], []>} : vector<8x64xbf16>, vector<8x64xbf16>, vector<8x8xf32> -> vector<8x8xf32>
    %c0_6 = arith.constant 0 : index
    %c0_7 = arith.constant 0 : index
    %7 = vector.load %arg8[%c0_6, %c0_7] : memref<8x4xf32, #tpu.memory_space<vmem>>, vector<8x1xf32>
    %cst_8 = arith.constant dense<0xFF800000> : vector<8xf32>
    %8 = vector.multi_reduction <maximumf>, %6, %cst_8 [1] : vector<8x8xf32> to vector<8xf32>
    %9 = vector.shape_cast %8 : vector<8xf32> to vector<8x1xf32>
    %10 = arith.maximumf %7, %9 : vector<8x1xf32>
    %11 = arith.subf %7, %10 : vector<8x1xf32>
    %12 = math.exp %11 : vector<8x1xf32>
    %13 = vector.broadcast %10 : vector<8x1xf32> to vector<8x8xf32>
    %14 = arith.subf %6, %13 : vector<8x8xf32>
    %15 = math.exp %14 : vector<8x8xf32>
    %c0_9 = arith.constant 0 : index
    %c0_10 = arith.constant 0 : index
    %16 = vector.load %arg9[%c0_9, %c0_10] : memref<8x4xf32, #tpu.memory_space<vmem>>, vector<8x1xf32>
    %17 = arith.mulf %12, %16 : vector<8x1xf32>
    %cst_11 = arith.constant dense<0.000000e+00> : vector<8xf32>
    %18 = vector.multi_reduction <add>, %15, %cst_11 [1] : vector<8x8xf32> to vector<8xf32>
    %19 = vector.shape_cast %18 : vector<8xf32> to vector<8x1xf32>
    %20 = arith.addf %17, %19 : vector<8x1xf32>
    %c0_12 = arith.constant 0 : index
    %c0_13 = arith.constant 0 : index
    %21 = vector.load %arg9[%c0_12, %c0_13] : memref<8x4xf32, #tpu.memory_space<vmem>>, vector<8x1xf32>
    tpu.vector_store %arg9[%c0_12, %c0_13], %20 {strides = array<i32>} : memref<8x4xf32, #tpu.memory_space<vmem>>, vector<8x1xf32>,
    %22 = arith.truncf %15 : vector<8x8xf32> to vector<8x8xbf16>
    %cst_14 = arith.constant dense<0.000000e+00> : vector<8x64xf32>
    %23 = tpu.matmul %22, %5, %cst_14 {dimension_numbers = #tpu.dot_dimension_numbers<[1], [0], [0], [1], [0, 0, 1, 1], [], []>} : vector<8x8xbf16>, vector<8x64xbf16>, vector<8x64xf32> -> vector<8x64xf32>
    %c0_15 = arith.constant 0 : index
    %c0_16 = arith.constant 0 : index
    %24 = vector.load %arg10[%c0_15, %c0_16] : memref<8x256xf32, #tpu.memory_space<vmem>>, vector<8x64xf32>
    %25 = vector.broadcast %12 : vector<8x1xf32> to vector<8x64xf32>
    %26 = arith.mulf %25, %24 : vector<8x64xf32>
    %27 = arith.addf %26, %23 : vector<8x64xf32>
    %c0_17 = arith.constant 0 : index
    %c0_18 = arith.constant 0 : index
    %28 = vector.load %arg10[%c0_17, %c0_18] : memref<8x256xf32, #tpu.memory_space<vmem>>, vector<8x64xf32>
    tpu.vector_store %arg10[%c0_17, %c0_18], %27 {strides = array<i32>} : memref<8x256xf32, #tpu.memory_space<vmem>>, vector<8x64xf32>,
    %c0_19 = arith.constant 0 : index
    %c0_20 = arith.constant 0 : index
    %29 = vector.load %arg8[%c0_19, %c0_20] : memref<8x4xf32, #tpu.memory_space<vmem>>, vector<8x1xf32>
    tpu.vector_store %arg8[%c0_19, %c0_20], %10 {strides = array<i32>} : memref<8x4xf32, #tpu.memory_space<vmem>>, vector<8x1xf32>,
    %c0_21 = arith.constant 0 : index
    %c64 = arith.constant 64 : index
    %30 = vector.load %arg4[%c0_21, %c64] : memref<8x256xbf16, #tpu.memory_space<vmem>>, vector<8x64xbf16>
    %c0_22 = arith.constant 0 : index
    %c64_23 = arith.constant 64 : index
    %31 = vector.load %arg5[%c0_22, %c64_23] : memref<8x256xbf16, #tpu.memory_space<vmem>>, vector<8x64xbf16>
    %c0_24 = arith.constant 0 : index
    %c64_25 = arith.constant 64 : index
    %32 = vector.load %arg6[%c0_24, %c64_25] : memref<8x256xbf16, #tpu.memory_space<vmem>>, vector<8x64xbf16>
    %cst_26 = arith.constant dense<0.000000e+00> : vector<8x8xf32>
    %33 = tpu.matmul %30, %31, %cst_26 {dimension_numbers = #tpu.dot_dimension_numbers<[1], [1], [0], [0], [0, 0, 1, 0], [], []>} : vector<8x64xbf16>, vector<8x64xbf16>, vector<8x8xf32> -> vector<8x8xf32>
    %c0_27 = arith.constant 0 : index
    %c1 = arith.constant 1 : index
    %34 = vector.load %arg8[%c0_27, %c1] : memref<8x4xf32, #tpu.memory_space<vmem>>, vector<8x1xf32>
    %cst_28 = arith.constant dense<0xFF800000> : vector<8xf32>
    %35 = vector.multi_reduction <maximumf>, %33, %cst_28 [1] : vector<8x8xf32> to vector<8xf32>
    %36 = vector.shape_cast %35 : vector<8xf32> to vector<8x1xf32>
    %37 = arith.maximumf %34, %36 : vector<8x1xf32>
    %38 = arith.subf %34, %37 : vector<8x1xf32>
    %39 = math.exp %38 : vector<8x1xf32>
    %40 = vector.broadcast %37 : vector<8x1xf32> to vector<8x8xf32>
    %41 = arith.subf %33, %40 : vector<8x8xf32>
    %42 = math.exp %41 : vector<8x8xf32>
    %c0_29 = arith.constant 0 : index
    %c1_30 = arith.constant 1 : index
    %43 = vector.load %arg9[%c0_29, %c1_30] : memref<8x4xf32, #tpu.memory_space<vmem>>, vector<8x1xf32>
    %44 = arith.mulf %39, %43 : vector<8x1xf32>
    %cst_31 = arith.constant dense<0.000000e+00> : vector<8xf32>
    %45 = vector.multi_reduction <add>, %42, %cst_31 [1] : vector<8x8xf32> to vector<8xf32>
    %46 = vector.shape_cast %45 : vector<8xf32> to vector<8x1xf32>
    %47 = arith.addf %44, %46 : vector<8x1xf32>
    %c0_32 = arith.constant 0 : index
    %c1_33 = arith.constant 1 : index
    %48 = vector.load %arg9[%c0_32, %c1_33] : memref<8x4xf32, #tpu.memory_space<vmem>>, vector<8x1xf32>
    tpu.vector_store %arg9[%c0_32, %c1_33], %47 {strides = array<i32>} : memref<8x4xf32, #tpu.memory_space<vmem>>, vector<8x1xf32>,
    %49 = arith.truncf %42 : vector<8x8xf32> to vector<8x8xbf16>
    %cst_34 = arith.constant dense<0.000000e+00> : vector<8x64xf32>
    %50 = tpu.matmul %49, %32, %cst_34 {dimension_numbers = #tpu.dot_dimension_numbers<[1], [0], [0], [1], [0, 0, 1, 1], [], []>} : vector<8x8xbf16>, vector<8x64xbf16>, vector<8x64xf32> -> vector<8x64xf32>
    %c0_35 = arith.constant 0 : index
    %c64_36 = arith.constant 64 : index
    %51 = vector.load %arg10[%c0_35, %c64_36] : memref<8x256xf32, #tpu.memory_space<vmem>>, vector<8x64xf32>
    %52 = vector.broadcast %39 : vector<8x1xf32> to vector<8x64xf32>
    %53 = arith.mulf %52, %51 : vector<8x64xf32>
    %54 = arith.addf %53, %50 : vector<8x64xf32>
    %c0_37 = arith.constant 0 : index
    %c64_38 = arith.constant 64 : index
    %55 = vector.load %arg10[%c0_37, %c64_38] : memref<8x256xf32, #tpu.memory_space<vmem>>, vector<8x64xf32>
    tpu.vector_store %arg10[%c0_37, %c64_38], %54 {strides = array<i32>} : memref<8x256xf32, #tpu.memory_space<vmem>>, vector<8x64xf32>,
    %c0_39 = arith.constant 0 : index
    %c1_40 = arith.constant 1 : index
    %56 = vector.load %arg8[%c0_39, %c1_40] : memref<8x4xf32, #tpu.memory_space<vmem>>, vector<8x1xf32>
    tpu.vector_store %arg8[%c0_39, %c1_40], %37 {strides = array<i32>} : memref<8x4xf32, #tpu.memory_space<vmem>>, vector<8x1xf32>,
    %c0_41 = arith.constant 0 : index
    %c128 = arith.constant 128 : index
    %57 = vector.load %arg4[%c0_41, %c128] : memref<8x256xbf16, #tpu.memory_space<vmem>>, vector<8x64xbf16>
    %c0_42 = arith.constant 0 : index
    %c128_43 = arith.constant 128 : index
    %58 = vector.load %arg5[%c0_42, %c128_43] : memref<8x256xbf16, #tpu.memory_space<vmem>>, vector<8x64xbf16>
    %c0_44 = arith.constant 0 : index
    %c128_45 = arith.constant 128 : index
    %59 = vector.load %arg6[%c0_44, %c128_45] : memref<8x256xbf16, #tpu.memory_space<vmem>>, vector<8x64xbf16>
    %cst_46 = arith.constant dense<0.000000e+00> : vector<8x8xf32>
    %60 = tpu.matmul %57, %58, %cst_46 {dimension_numbers = #tpu.dot_dimension_numbers<[1], [1], [0], [0], [0, 0, 1, 0], [], []>} : vector<8x64xbf16>, vector<8x64xbf16>, vector<8x8xf32> -> vector<8x8xf32>
    %c0_47 = arith.constant 0 : index
    %c2 = arith.constant 2 : index
    %61 = vector.load %arg8[%c0_47, %c2] : memref<8x4xf32, #tpu.memory_space<vmem>>, vector<8x1xf32>
    %cst_48 = arith.constant dense<0xFF800000> : vector<8xf32>
    %62 = vector.multi_reduction <maximumf>, %60, %cst_48 [1] : vector<8x8xf32> to vector<8xf32>
    %63 = vector.shape_cast %62 : vector<8xf32> to vector<8x1xf32>
    %64 = arith.maximumf %61, %63 : vector<8x1xf32>
    %65 = arith.subf %61, %64 : vector<8x1xf32>
    %66 = math.exp %65 : vector<8x1xf32>
    %67 = vector.broadcast %64 : vector<8x1xf32> to vector<8x8xf32>
    %68 = arith.subf %60, %67 : vector<8x8xf32>
    %69 = math.exp %68 : vector<8x8xf32>
    %c0_49 = arith.constant 0 : index
    %c2_50 = arith.constant 2 : index
    %70 = vector.load %arg9[%c0_49, %c2_50] : memref<8x4xf32, #tpu.memory_space<vmem>>, vector<8x1xf32>
    %71 = arith.mulf %66, %70 : vector<8x1xf32>
    %cst_51 = arith.constant dense<0.000000e+00> : vector<8xf32>
    %72 = vector.multi_reduction <add>, %69, %cst_51 [1] : vector<8x8xf32> to vector<8xf32>
    %73 = vector.shape_cast %72 : vector<8xf32> to vector<8x1xf32>
    %74 = arith.addf %71, %73 : vector<8x1xf32>
    %c0_52 = arith.constant 0 : index
    %c2_53 = arith.constant 2 : index
    %75 = vector.load %arg9[%c0_52, %c2_53] : memref<8x4xf32, #tpu.memory_space<vmem>>, vector<8x1xf32>
    tpu.vector_store %arg9[%c0_52, %c2_53], %74 {strides = array<i32>} : memref<8x4xf32, #tpu.memory_space<vmem>>, vector<8x1xf32>,
    %76 = arith.truncf %69 : vector<8x8xf32> to vector<8x8xbf16>
    %cst_54 = arith.constant dense<0.000000e+00> : vector<8x64xf32>
    %77 = tpu.matmul %76, %59, %cst_54 {dimension_numbers = #tpu.dot_dimension_numbers<[1], [0], [0], [1], [0, 0, 1, 1], [], []>} : vector<8x8xbf16>, vector<8x64xbf16>, vector<8x64xf32> -> vector<8x64xf32>
    %c0_55 = arith.constant 0 : index
    %c128_56 = arith.constant 128 : index
    %78 = vector.load %arg10[%c0_55, %c128_56] : memref<8x256xf32, #tpu.memory_space<vmem>>, vector<8x64xf32>
    %79 = vector.broadcast %66 : vector<8x1xf32> to vector<8x64xf32>
    %80 = arith.mulf %79, %78 : vector<8x64xf32>
    %81 = arith.addf %80, %77 : vector<8x64xf32>
    %c0_57 = arith.constant 0 : index
    %c128_58 = arith.constant 128 : index
    %82 = vector.load %arg10[%c0_57, %c128_58] : memref<8x256xf32, #tpu.memory_space<vmem>>, vector<8x64xf32>
    tpu.vector_store %arg10[%c0_57, %c128_58], %81 {strides = array<i32>} : memref<8x256xf32, #tpu.memory_space<vmem>>, vector<8x64xf32>,
    %c0_59 = arith.constant 0 : index
    %c2_60 = arith.constant 2 : index
    %83 = vector.load %arg8[%c0_59, %c2_60] : memref<8x4xf32, #tpu.memory_space<vmem>>, vector<8x1xf32>
    tpu.vector_store %arg8[%c0_59, %c2_60], %64 {strides = array<i32>} : memref<8x4xf32, #tpu.memory_space<vmem>>, vector<8x1xf32>,
    %c0_61 = arith.constant 0 : index
    %c192 = arith.constant 192 : index
    %84 = vector.load %arg4[%c0_61, %c192] : memref<8x256xbf16, #tpu.memory_space<vmem>>, vector<8x64xbf16>
    %c0_62 = arith.constant 0 : index
    %c192_63 = arith.constant 192 : index
    %85 = vector.load %arg5[%c0_62, %c192_63] : memref<8x256xbf16, #tpu.memory_space<vmem>>, vector<8x64xbf16>
    %c0_64 = arith.constant 0 : index
    %c192_65 = arith.constant 192 : index
    %86 = vector.load %arg6[%c0_64, %c192_65] : memref<8x256xbf16, #tpu.memory_space<vmem>>, vector<8x64xbf16>
    %cst_66 = arith.constant dense<0.000000e+00> : vector<8x8xf32>
    %87 = tpu.matmul %84, %85, %cst_66 {dimension_numbers = #tpu.dot_dimension_numbers<[1], [1], [0], [0], [0, 0, 1, 0], [], []>} : vector<8x64xbf16>, vector<8x64xbf16>, vector<8x8xf32> -> vector<8x8xf32>
    %c0_67 = arith.constant 0 : index
    %c3 = arith.constant 3 : index
    %88 = vector.load %arg8[%c0_67, %c3] : memref<8x4xf32, #tpu.memory_space<vmem>>, vector<8x1xf32>
    %cst_68 = arith.constant dense<0xFF800000> : vector<8xf32>
    %89 = vector.multi_reduction <maximumf>, %87, %cst_68 [1] : vector<8x8xf32> to vector<8xf32>
    %90 = vector.shape_cast %89 : vector<8xf32> to vector<8x1xf32>
    %91 = arith.maximumf %88, %90 : vector<8x1xf32>
    %92 = arith.subf %88, %91 : vector<8x1xf32>
    %93 = math.exp %92 : vector<8x1xf32>
    %94 = vector.broadcast %91 : vector<8x1xf32> to vector<8x8xf32>
    %95 = arith.subf %87, %94 : vector<8x8xf32>
    %96 = math.exp %95 : vector<8x8xf32>
    %c0_69 = arith.constant 0 : index
    %c3_70 = arith.constant 3 : index
    %97 = vector.load %arg9[%c0_69, %c3_70] : memref<8x4xf32, #tpu.memory_space<vmem>>, vector<8x1xf32>
    %98 = arith.mulf %93, %97 : vector<8x1xf32>
    %cst_71 = arith.constant dense<0.000000e+00> : vector<8xf32>
    %99 = vector.multi_reduction <add>, %96, %cst_71 [1] : vector<8x8xf32> to vector<8xf32>
    %100 = vector.shape_cast %99 : vector<8xf32> to vector<8x1xf32>
    %101 = arith.addf %98, %100 : vector<8x1xf32>
    %c0_72 = arith.constant 0 : index
    %c3_73 = arith.constant 3 : index
    %102 = vector.load %arg9[%c0_72, %c3_73] : memref<8x4xf32, #tpu.memory_space<vmem>>, vector<8x1xf32>
    tpu.vector_store %arg9[%c0_72, %c3_73], %101 {strides = array<i32>} : memref<8x4xf32, #tpu.memory_space<vmem>>, vector<8x1xf32>,
    %103 = arith.truncf %96 : vector<8x8xf32> to vector<8x8xbf16>
    %cst_74 = arith.constant dense<0.000000e+00> : vector<8x64xf32>
    %104 = tpu.matmul %103, %86, %cst_74 {dimension_numbers = #tpu.dot_dimension_numbers<[1], [0], [0], [1], [0, 0, 1, 1], [], []>} : vector<8x8xbf16>, vector<8x64xbf16>, vector<8x64xf32> -> vector<8x64xf32>
    %c0_75 = arith.constant 0 : index
    %c192_76 = arith.constant 192 : index
    %105 = vector.load %arg10[%c0_75, %c192_76] : memref<8x256xf32, #tpu.memory_space<vmem>>, vector<8x64xf32>
    %106 = vector.broadcast %93 : vector<8x1xf32> to vector<8x64xf32>
    %107 = arith.mulf %106, %105 : vector<8x64xf32>
    %108 = arith.addf %107, %104 : vector<8x64xf32>
    %c0_77 = arith.constant 0 : index
    %c192_78 = arith.constant 192 : index
    %109 = vector.load %arg10[%c0_77, %c192_78] : memref<8x256xf32, #tpu.memory_space<vmem>>, vector<8x64xf32>
    tpu.vector_store %arg10[%c0_77, %c192_78], %108 {strides = array<i32>} : memref<8x256xf32, #tpu.memory_space<vmem>>, vector<8x64xf32>,
    %c0_79 = arith.constant 0 : index
    %c3_80 = arith.constant 3 : index
    %110 = vector.load %arg8[%c0_79, %c3_80] : memref<8x4xf32, #tpu.memory_space<vmem>>, vector<8x1xf32>
    tpu.vector_store %arg8[%c0_79, %c3_80], %91 {strides = array<i32>} : memref<8x4xf32, #tpu.memory_space<vmem>>, vector<8x1xf32>,
    %c0_i32_81 = arith.constant 0 : i32
    %111 = arith.cmpi eq, %arg3, %c0_i32_81 : i32
    %112 = arith.extui %111 : i1 to i32
    %c0_i32_82 = arith.constant 0 : i32
    %113 = arith.cmpi ne, %112, %c0_i32_82 : i32
    scf.if %113 {
      %c0_83 = arith.constant 0 : index
      %c0_84 = arith.constant 0 : index
      %114 = vector.load %arg9[%c0_83, %c0_84] : memref<8x4xf32, #tpu.memory_space<vmem>>, vector<8x4xf32>
      %115 = tpu.reciprocal %114 : vector<8x4xf32> -> vector<8x4xf32>
      %c0_85 = arith.constant 0 : index
      %c0_86 = arith.constant 0 : index
      %116 = vector.load %arg10[%c0_85, %c0_86] : memref<8x256xf32, #tpu.memory_space<vmem>>, vector<8x64xf32>
      %117 = vector.extract_strided_slice %115 {offsets = [0, 0], sizes = [8, 1], strides = [1, 1]} : vector<8x4xf32> to vector<8x1xf32>
      %118 = vector.broadcast %117 : vector<8x1xf32> to vector<8x64xf32>
      %119 = arith.mulf %116, %118 : vector<8x64xf32>
      %c0_87 = arith.constant 0 : index
      %c0_88 = arith.constant 0 : index
      %120 = vector.load %arg10[%c0_87, %c0_88] : memref<8x256xf32, #tpu.memory_space<vmem>>, vector<8x64xf32>
      tpu.vector_store %arg10[%c0_87, %c0_88], %119 {strides = array<i32>} : memref<8x256xf32, #tpu.memory_space<vmem>>, vector<8x64xf32>,
      %c0_89 = arith.constant 0 : index
      %c64_90 = arith.constant 64 : index
      %121 = vector.load %arg10[%c0_89, %c64_90] : memref<8x256xf32, #tpu.memory_space<vmem>>, vector<8x64xf32>
      %122 = vector.extract_strided_slice %115 {offsets = [0, 1], sizes = [8, 1], strides = [1, 1]} : vector<8x4xf32> to vector<8x1xf32>
      %123 = vector.broadcast %122 : vector<8x1xf32> to vector<8x64xf32>
      %124 = arith.mulf %121, %123 : vector<8x64xf32>
      %c0_91 = arith.constant 0 : index
      %c64_92 = arith.constant 64 : index
      %125 = vector.load %arg10[%c0_91, %c64_92] : memref<8x256xf32, #tpu.memory_space<vmem>>, vector<8x64xf32>
      tpu.vector_store %arg10[%c0_91, %c64_92], %124 {strides = array<i32>} : memref<8x256xf32, #tpu.memory_space<vmem>>, vector<8x64xf32>,
      %c0_93 = arith.constant 0 : index
      %c128_94 = arith.constant 128 : index
      %126 = vector.load %arg10[%c0_93, %c128_94] : memref<8x256xf32, #tpu.memory_space<vmem>>, vector<8x64xf32>
      %127 = vector.extract_strided_slice %115 {offsets = [0, 2], sizes = [8, 1], strides = [1, 1]} : vector<8x4xf32> to vector<8x1xf32>
      %128 = vector.broadcast %127 : vector<8x1xf32> to vector<8x64xf32>
      %129 = arith.mulf %126, %128 : vector<8x64xf32>
      %c0_95 = arith.constant 0 : index
      %c128_96 = arith.constant 128 : index
      %130 = vector.load %arg10[%c0_95, %c128_96] : memref<8x256xf32, #tpu.memory_space<vmem>>, vector<8x64xf32>
      tpu.vector_store %arg10[%c0_95, %c128_96], %129 {strides = array<i32>} : memref<8x256xf32, #tpu.memory_space<vmem>>, vector<8x64xf32>,
      %c0_97 = arith.constant 0 : index
      %c192_98 = arith.constant 192 : index
      %131 = vector.load %arg10[%c0_97, %c192_98] : memref<8x256xf32, #tpu.memory_space<vmem>>, vector<8x64xf32>
      %132 = vector.extract_strided_slice %115 {offsets = [0, 3], sizes = [8, 1], strides = [1, 1]} : vector<8x4xf32> to vector<8x1xf32>
      %133 = vector.broadcast %132 : vector<8x1xf32> to vector<8x64xf32>
      %134 = arith.mulf %131, %133 : vector<8x64xf32>
      %c0_99 = arith.constant 0 : index
      %c192_100 = arith.constant 192 : index
      %135 = vector.load %arg10[%c0_99, %c192_100] : memref<8x256xf32, #tpu.memory_space<vmem>>, vector<8x64xf32>
      tpu.vector_store %arg10[%c0_99, %c192_100], %134 {strides = array<i32>} : memref<8x256xf32, #tpu.memory_space<vmem>>, vector<8x64xf32>,
      %c0_101 = arith.constant 0 : index
      %c0_102 = arith.constant 0 : index
      %136 = vector.load %arg10[%c0_101, %c0_102] : memref<8x256xf32, #tpu.memory_space<vmem>>, vector<8x256xf32>
      %137 = arith.truncf %136 : vector<8x256xf32> to vector<8x256xbf16>
      %c0_103 = arith.constant 0 : index
      %c0_104 = arith.constant 0 : index
      %138 = vector.load %arg7[%c0_103, %c0_104] : memref<8x256xbf16, #tpu.memory_space<vmem>>, vector<8x256xbf16>
      tpu.vector_store %arg7[%c0_103, %c0_104], %137 {strides = array<i32>} : memref<8x256xbf16, #tpu.memory_space<vmem>>, vector<8x256xbf16>,
    } else {
    }
    return
  }
  func.func @transform_0(%arg0: i32, %arg1: i32, %arg2: i32, %arg3: i32) -> (i32, i32) {
    %c1_i32 = arith.constant 1 : i32
    %0 = arith.muli %arg0, %c1_i32 : i32
    %1 = arith.addi %0, %arg2 : i32
    %c0_i32 = arith.constant 0 : i32
    return %1, %arg1 : i32, i32
  }
  func.func @transform_1(%arg0: i32, %arg1: i32, %arg2: i32, %arg3: i32) -> (i32, i32) {
    %c1_i32 = arith.constant 1 : i32
    %0 = arith.muli %arg0, %c1_i32 : i32
    %1 = arith.addi %0, %arg3 : i32
    %c2_i32 = arith.constant 2 : i32
    %2 = arith.addi %c2_i32, %arg1 : i32
    %c0_i32 = arith.constant 0 : i32
    return %1, %2 : i32, i32
  }
  func.func @transform_2(%arg0: i32, %arg1: i32, %arg2: i32, %arg3: i32) -> (i32, i32) {
    %c1_i32 = arith.constant 1 : i32
    %0 = arith.muli %arg0, %c1_i32 : i32
    %1 = arith.addi %0, %arg3 : i32
    %c4_i32 = arith.constant 4 : i32
    %2 = arith.addi %c4_i32, %arg1 : i32
    %c0_i32 = arith.constant 0 : i32
    return %1, %2 : i32, i32
  }
  func.func @transform_3(%arg0: i32, %arg1: i32, %arg2: i32, %arg3: i32) -> (i32, i32) {
    %c1_i32 = arith.constant 1 : i32
    %0 = arith.muli %arg0, %c1_i32 : i32
    %1 = arith.addi %0, %arg2 : i32
    %c0_i32 = arith.constant 0 : i32
    return %1, %arg1 : i32, i32
  }
}

module attributes {stable_mosaic.version = 11 : i64} {
  func.func @linear_kernel(%arg0: i32, %arg1: i32, %arg2: i32, %arg3: memref<8x512xbf16, #tpu.memory_space<vmem>>, %arg4: memref<512x512xbf16, #tpu.memory_space<vmem>>, %arg5: memref<1x512xf32, #tpu.memory_space<vmem>>, %arg6: memref<8x512xbf16, #tpu.memory_space<vmem>>, %arg7: memref<8x512xf32, #tpu.memory_space<vmem>>) attributes {dimension_semantics = [#tpu.dimension_semantics<parallel>, #tpu.dimension_semantics<parallel>, #tpu.dimension_semantics<arbitrary>], iteration_bounds = array<i64: 2, 3, 1>, scalar_prefetch = 0 : i64, scratch_operands = 1 : i64, tpu.core_type = #tpu.core_type<tc>, window_params = [{transform_indices = @transform_0, window_bounds = array<i64: 8, 512>}, {transform_indices = @transform_1, window_bounds = array<i64: 512, 512>}, {transform_indices = @transform_2, window_bounds = array<i64: 1, 512>}, {transform_indices = @transform_3, window_bounds = array<i64: 8, 512>}]} {
    %c0_i32 = arith.constant 0 : i32
    %0 = arith.cmpi eq, %arg2, %c0_i32 : i32
    %1 = arith.extui %0 : i1 to i32
    %c0_i32_0 = arith.constant 0 : i32
    %2 = arith.cmpi ne, %1, %c0_i32_0 : i32
    scf.if %2 {
      %cst_10 = arith.constant 0.000000e+00 : f32
      %12 = vector.broadcast %cst_10 : f32 to vector<8x512xf32>
      %c0_11 = arith.constant 0 : index
      %c0_12 = arith.constant 0 : index
      %13 = vector.load %arg7[%c0_11, %c0_12] : memref<8x512xf32, #tpu.memory_space<vmem>>, vector<8x512xf32>
      tpu.vector_store %arg7[%c0_11, %c0_12], %12 {strides = array<i32>} : memref<8x512xf32, #tpu.memory_space<vmem>>, vector<8x512xf32>,
    } else {
    }
    %c0 = arith.constant 0 : index
    %c0_1 = arith.constant 0 : index
    %3 = vector.load %arg7[%c0, %c0_1] : memref<8x512xf32, #tpu.memory_space<vmem>>, vector<8x512xf32>
    %c0_2 = arith.constant 0 : index
    %c0_3 = arith.constant 0 : index
    %4 = vector.load %arg3[%c0_2, %c0_3] : memref<8x512xbf16, #tpu.memory_space<vmem>>, vector<8x512xbf16>
    %c0_4 = arith.constant 0 : index
    %c0_5 = arith.constant 0 : index
    %5 = vector.load %arg4[%c0_4, %c0_5] : memref<512x512xbf16, #tpu.memory_space<vmem>>, vector<512x512xbf16>
    %cst = arith.constant dense<0.000000e+00> : vector<8x512xf32>
    %6 = tpu.matmul %4, %5, %cst {dimension_numbers = #tpu.dot_dimension_numbers<[1], [0], [0], [1], [0, 0, 1, 1], [], []>} : vector<8x512xbf16>, vector<512x512xbf16>, vector<8x512xf32> -> vector<8x512xf32>
    %7 = arith.addf %3, %6 : vector<8x512xf32>
    %c0_6 = arith.constant 0 : index
    %c0_7 = arith.constant 0 : index
    %8 = vector.load %arg7[%c0_6, %c0_7] : memref<8x512xf32, #tpu.memory_space<vmem>>, vector<8x512xf32>
    tpu.vector_store %arg7[%c0_6, %c0_7], %7 {strides = array<i32>} : memref<8x512xf32, #tpu.memory_space<vmem>>, vector<8x512xf32>,
    %c0_i32_8 = arith.constant 0 : i32
    %9 = arith.cmpi eq, %arg2, %c0_i32_8 : i32
    %10 = arith.extui %9 : i1 to i32
    %c0_i32_9 = arith.constant 0 : i32
    %11 = arith.cmpi ne, %10, %c0_i32_9 : i32
    scf.if %11 {
      %c0_10 = arith.constant 0 : index
      %c0_11 = arith.constant 0 : index
      %12 = vector.load %arg7[%c0_10, %c0_11] : memref<8x512xf32, #tpu.memory_space<vmem>>, vector<8x512xf32>
      %c0_12 = arith.constant 0 : index
      %c0_13 = arith.constant 0 : index
      %13 = vector.load %arg5[%c0_12, %c0_13] : memref<1x512xf32, #tpu.memory_space<vmem>>, vector<1x512xf32>
      %14 = vector.broadcast %13 : vector<1x512xf32> to vector<8x512xf32>
      %15 = arith.addf %12, %14 : vector<8x512xf32>
      %16 = arith.truncf %15 : vector<8x512xf32> to vector<8x512xbf16>
      %c0_14 = arith.constant 0 : index
      %c0_15 = arith.constant 0 : index
      %17 = vector.load %arg6[%c0_14, %c0_15] : memref<8x512xbf16, #tpu.memory_space<vmem>>, vector<8x512xbf16>
      tpu.vector_store %arg6[%c0_14, %c0_15], %16 {strides = array<i32>} : memref<8x512xbf16, #tpu.memory_space<vmem>>, vector<8x512xbf16>,
    } else {
    }
    return
  }
  func.func @transform_0(%arg0: i32, %arg1: i32, %arg2: i32) -> (i32, i32) {
    %c0_i32 = arith.constant 0 : i32
    return %arg0, %arg2 : i32, i32
  }
  func.func @transform_1(%arg0: i32, %arg1: i32, %arg2: i32) -> (i32, i32) {
    %c0_i32 = arith.constant 0 : i32
    return %arg2, %arg1 : i32, i32
  }
  func.func @transform_2(%arg0: i32, %arg1: i32, %arg2: i32) -> (i32, i32) {
    %c0_i32 = arith.constant 0 : i32
    %c0_i32_0 = arith.constant 0 : i32
    return %c0_i32, %arg1 : i32, i32
  }
  func.func @transform_3(%arg0: i32, %arg1: i32, %arg2: i32) -> (i32, i32) {
    %c0_i32 = arith.constant 0 : i32
    return %arg0, %arg1 : i32, i32
  }
}

module attributes {stable_mosaic.version = 11 : i64} {
  func.func @linear_kernel(%arg0: i32, %arg1: i32, %arg2: i32, %arg3: memref<8x512xbf16, #tpu.memory_space<vmem>>, %arg4: memref<512x512xbf16, #tpu.memory_space<vmem>>, %arg5: memref<1x512xf32, #tpu.memory_space<vmem>>, %arg6: memref<8x512xf32, #tpu.memory_space<vmem>>, %arg7: memref<8x512xf32, #tpu.memory_space<vmem>>) attributes {dimension_semantics = [#tpu.dimension_semantics<parallel>, #tpu.dimension_semantics<parallel>, #tpu.dimension_semantics<arbitrary>], iteration_bounds = array<i64: 2, 1, 1>, scalar_prefetch = 0 : i64, scratch_operands = 1 : i64, tpu.core_type = #tpu.core_type<tc>, window_params = [{transform_indices = @transform_0, window_bounds = array<i64: 8, 512>}, {transform_indices = @transform_1, window_bounds = array<i64: 512, 512>}, {transform_indices = @transform_2, window_bounds = array<i64: 1, 512>}, {transform_indices = @transform_3, window_bounds = array<i64: 8, 512>}]} {
    %c0_i32 = arith.constant 0 : i32
    %0 = arith.cmpi eq, %arg2, %c0_i32 : i32
    %1 = arith.extui %0 : i1 to i32
    %c0_i32_0 = arith.constant 0 : i32
    %2 = arith.cmpi ne, %1, %c0_i32_0 : i32
    scf.if %2 {
      %cst_10 = arith.constant 0.000000e+00 : f32
      %12 = vector.broadcast %cst_10 : f32 to vector<8x512xf32>
      %c0_11 = arith.constant 0 : index
      %c0_12 = arith.constant 0 : index
      %13 = vector.load %arg7[%c0_11, %c0_12] : memref<8x512xf32, #tpu.memory_space<vmem>>, vector<8x512xf32>
      tpu.vector_store %arg7[%c0_11, %c0_12], %12 {strides = array<i32>} : memref<8x512xf32, #tpu.memory_space<vmem>>, vector<8x512xf32>,
    } else {
    }
    %c0 = arith.constant 0 : index
    %c0_1 = arith.constant 0 : index
    %3 = vector.load %arg7[%c0, %c0_1] : memref<8x512xf32, #tpu.memory_space<vmem>>, vector<8x512xf32>
    %c0_2 = arith.constant 0 : index
    %c0_3 = arith.constant 0 : index
    %4 = vector.load %arg3[%c0_2, %c0_3] : memref<8x512xbf16, #tpu.memory_space<vmem>>, vector<8x512xbf16>
    %c0_4 = arith.constant 0 : index
    %c0_5 = arith.constant 0 : index
    %5 = vector.load %arg4[%c0_4, %c0_5] : memref<512x512xbf16, #tpu.memory_space<vmem>>, vector<512x512xbf16>
    %cst = arith.constant dense<0.000000e+00> : vector<8x512xf32>
    %6 = tpu.matmul %4, %5, %cst {dimension_numbers = #tpu.dot_dimension_numbers<[1], [0], [0], [1], [0, 0, 1, 1], [], []>} : vector<8x512xbf16>, vector<512x512xbf16>, vector<8x512xf32> -> vector<8x512xf32>
    %7 = arith.addf %3, %6 : vector<8x512xf32>
    %c0_6 = arith.constant 0 : index
    %c0_7 = arith.constant 0 : index
    %8 = vector.load %arg7[%c0_6, %c0_7] : memref<8x512xf32, #tpu.memory_space<vmem>>, vector<8x512xf32>
    tpu.vector_store %arg7[%c0_6, %c0_7], %7 {strides = array<i32>} : memref<8x512xf32, #tpu.memory_space<vmem>>, vector<8x512xf32>,
    %c0_i32_8 = arith.constant 0 : i32
    %9 = arith.cmpi eq, %arg2, %c0_i32_8 : i32
    %10 = arith.extui %9 : i1 to i32
    %c0_i32_9 = arith.constant 0 : i32
    %11 = arith.cmpi ne, %10, %c0_i32_9 : i32
    scf.if %11 {
      %c0_10 = arith.constant 0 : index
      %c0_11 = arith.constant 0 : index
      %12 = vector.load %arg7[%c0_10, %c0_11] : memref<8x512xf32, #tpu.memory_space<vmem>>, vector<8x512xf32>
      %c0_12 = arith.constant 0 : index
      %c0_13 = arith.constant 0 : index
      %13 = vector.load %arg5[%c0_12, %c0_13] : memref<1x512xf32, #tpu.memory_space<vmem>>, vector<1x512xf32>
      %14 = vector.broadcast %13 : vector<1x512xf32> to vector<8x512xf32>
      %15 = arith.addf %12, %14 : vector<8x512xf32>
      %c0_14 = arith.constant 0 : index
      %c0_15 = arith.constant 0 : index
      %16 = vector.load %arg6[%c0_14, %c0_15] : memref<8x512xf32, #tpu.memory_space<vmem>>, vector<8x512xf32>
      tpu.vector_store %arg6[%c0_14, %c0_15], %15 {strides = array<i32>} : memref<8x512xf32, #tpu.memory_space<vmem>>, vector<8x512xf32>,
    } else {
    }
    return
  }
  func.func @transform_0(%arg0: i32, %arg1: i32, %arg2: i32) -> (i32, i32) {
    %c0_i32 = arith.constant 0 : i32
    return %arg0, %arg2 : i32, i32
  }
  func.func @transform_1(%arg0: i32, %arg1: i32, %arg2: i32) -> (i32, i32) {
    %c0_i32 = arith.constant 0 : i32
    return %arg2, %arg1 : i32, i32
  }
  func.func @transform_2(%arg0: i32, %arg1: i32, %arg2: i32) -> (i32, i32) {
    %c0_i32 = arith.constant 0 : i32
    %c0_i32_0 = arith.constant 0 : i32
    return %c0_i32, %arg1 : i32, i32
  }
  func.func @transform_3(%arg0: i32, %arg1: i32, %arg2: i32) -> (i32, i32) {
    %c0_i32 = arith.constant 0 : i32
    return %arg0, %arg1 : i32, i32
  }
}

</mosaic_0001>

<bundles_post_ra>
// kernel: _lambda_.4
= control target key start
LH: loop header
LB: loop body
LE: loop exit
PB: predicated region body
PF: predicated region fallthrough
CT: control target
= control target key end

     0   :  { %s1342_s12 = smov 0   ;;  %s1344_s13 = smov 0   ;;  %s1551_s0 = inlined_call_operand.vmem [shape: bf16[16,1536], index: 0, kind: input, shape index: {}, may-alias: {0,1,2}]   ;;  %s1552_s1 = inlined_call_operand.vmem [shape: bf16[16,1536], index: 1, kind: input, shape index: {}, may-alias: {0,1,2}]   ;;  %s1553_s2 = inlined_call_operand.vmem [shape: bf16[16,1536], index: 2, kind: input, shape index: {}, may-alias: {0,1,2}]   ;;  %s1554_s3 = inlined_call_operand.vmem [shape: bf16[16,512], index: 3, kind: output, shape index: {}]  }
   0x1   :  { %s1346_s14 = smov 0   ;;  %s1348_s15 = smov 0  }
   0x2   :  { %s1350_s16 = smov 0  }
   0x3 LB: > { %s35_s17 = sadd.s32 1, %s1304_s14  ;;  %s39_s18 = sadd.s32 1, %s1308_s15  ;;  %s1312_s16 = sphi %s1350_s16, %s13_s16   ;;  %s1308_s15 = sphi %s1348_s15, %s1558_s15   ;;  %s1304_s14 = sphi %s1346_s14, %s1557_s14   ;;  %s1300_s13 = sphi %s1344_s13, %s1556_s13   ;;  %s1296_s12 = sphi %s1342_s12, %s1555_s12  }
   0x4   : > { %p37_p0 = scmp.ge.s32.totalorder %s35_s17, 2  ;;  %p1092_p1 = scmp.ge.s32.totalorder %s1312_s16, 1 }
   0x5   : > { %p228_p2 = scmp.lt.s32.totalorder %s1312_s16, 5 }
   0x6   : > { %s1560_s17 = smov (%p37_p0, %s35_s17), 0  ;;  %s1562_s18 = smov (!%p37_p0, %s39_s18), %s1308_s15 }
   0x7   : > { %p229_p3 = pnand %p1092_p1, %p228_p2  ;;  %p41_p4 = scmp.ge.s32.totalorder %s1562_s18, 2 }
   0x8   : > { %s1372_s19 = sshll.u32 (!%p229_p3), %s1296_s12, 1  ;;  %p286_p5 = scmp.lt.s32.totalorder (!%p229_p3), %s1300_s13, 1  ;;  %v1314_v0 = vmov (!%p229_p3), 0.0   ;;  %vm1315_vm0 = vmmov (!%p229_p3), 0   ;;  %vm349_vm1 = vcmask (!%p229_p3), 523264   ;;  %vm341_vm2 = vcmask (!%p229_p3), 31744  }
   0x9   : > { %s1564_s18 = smov (%p41_p4, %s1562_s18), 0  ;;  %232 = sbr.rel (%p229_p3) target bundleno = 1430 (0x596), region = 32 }
   0xa   : > { %1140 = vmatprep.subr.bf16.mxu0 (!%p229_p3), %v1314_v0  ;;  %344 = vst [vmem:[#allocation4] sm:$0xff] (!%p229_p3), %v1314_v0  ;;  %345 = vst [vmem:[#allocation4 + $0x8] sm:$0xff] (!%p229_p3), %v1314_v0  ;;  %s1120_s20 = sadd.s32 (!%p229_p3), 4, %s1372_s19  ;;  %1142 = vmatprep.mubr.msk.bf16.mxu0 (!%p229_p3), %vm1315_vm0, %v1314_v0  ;;  %p288_p7 = scmp.lt.s32.totalorder (!%p229_p3), %s1372_s19, 11  ;;  %v1316_v4 = vmov (!%p229_p3), -inf   ;;  %vm397_vm3 = vcmask (!%p229_p3), 64512  }
   0xb   : > { %1146 = vmatprep.subr.bf16.mxu1 (!%p229_p3), %v1314_v0  ;;  %1148 = vmatprep.mubr.msk.bf16.mxu1 (!%p229_p3), %vm1315_vm0, %v1314_v0  ;;  %p301_p6 = scmp.lt.s32.totalorder (!%p229_p3), %s1120_s20, 11  ;;  %342 = vst.msk [vmem:[#allocation2] sm:$0xff] (!%p229_p3), %vm341_vm2, %v1316_v4  ;;  %343 = vst.msk [vmem:[#allocation3] sm:$0xff] (!%p229_p3), %vm341_vm2, %v1314_v0  ;;  %v1317_v10 = vmov (!%p229_p3), 0   ;;  %s1318_s6 = smov (!%p229_p3), 64   ;;  %vm419_vm4 = vcmask (!%p229_p3), 7168  }
   0xc   : > { %1237 = vset.pattern.permute.xlu0 (!%p229_p3), %v1317_v10  ;;  %s1122_s7 = sadd.s32 (!%p229_p3), 8, %s1372_s19  ;;  %vm425_vm5 = vcmask (!%p229_p3), 1043456   ;;  %v1319_v52 = vmov (!%p229_p3), 1   ;;  %v1320_v55 = vmov (!%p229_p3), 2   ;;  %vm560_vm6 = vcmask (!%p229_p3), 15368   ;;  %p328_p9 = scmp.lt.s32.totalorder (!%p229_p3), %s1372_s19, 3 }
   0xd   : > { %p315_p8 = scmp.lt.s32.totalorder (!%p229_p3), %s1122_s7, 11  ;;  %1238 = vset.pattern.permute.xlu1 (!%p229_p3), %v1319_v52  ;;  %vm700_vm7 = vcmask (!%p229_p3), 23568   ;;  %vm840_vm8 = vcmask (!%p229_p3), 31768   ;;  %vm626_vm9 = vcmask (!%p229_p3), 1048064  }
  0x10   : > { %s1566_s13 = smov (!%p286_p5, %s1300_s13), 1  ;;  %s1568_s20 = smov (!%p301_p6, %s1120_s20), 11 }
  0x11   : > { %s1386_s21 = smul.u32 12, %s1566_s13  ;;  %s1570_s7 = smov (!%p315_p8, %s1122_s7), 11 }
  0x12   : > { %s289_s27 = scalar_select %p288_p7, %s1372_s19, 11  ;;  %v1420_v15 = vld [vmem:[#allocation2] sm:$0xff] }
  0x13   : > { %s304_s22 = sadd.s32 %s1386_s21, %s1568_s20  ;;  %s318_s8 = sadd.s32 %s1386_s21, %s1570_s7 }
  0x14   : > { %s1096_s23 = sshll.u32 %s304_s22, 2  ;;  %s291_s28 = sadd.s32 %s1386_s21, %s289_s27 }
  0x15   : > { %s1393_s26 = scalar_lea.vmem %s1552_s1, %s1096_s23  ;;  %s1094_s29 = sshll.u32 %s291_s28, 2 }
  0x16   : > { %v347_v1 = vld [vmem:[%s1393_s26] sm:$0xf]  ;;  %s1403_s5 = scalar_lea.vmem %s1551_s0, %s1094_s29  ;;  %v1252_v13 = vld [vmem:[%s1393_s26 + $0x4] ss:$0 sps:$4 sm:$0xff]   ;;  %s1098_s9 = sshll.u32 %s318_s8, 2 }
  0x17   : > { %v354_v2 = vsel %vm349_vm1, %v347_v1, 0  ;;  %v346_v3 = vld [vmem:[%s1403_s5] sm:$0xf]  ;;  %v1253_v14 = vld [vmem:[%s1403_s5 + $0x4] ss:$0 sps:$4 sm:$0xff]   ;;  %s1435_s12 = scalar_lea.vmem %s1553_s2, %s1098_s9  ;;  %s1572_s19 = smov (!%p328_p9, %s1372_s19), 3 }
  0x18   : > { %1141 = vmatpush3.bf16.xpose.msra.mxu0 %v354_v2  ;;  %v1250_v11 = vld [vmem:[%s1393_s26] ss:$0 sps:$4 sm:$0xff]   ;;  %v630_v28 = vld [vmem:[%s1393_s26 + $0x4] sm:$0xf]  ;;  %s1100_s20 = sshll.u32 %s1566_s13, 2 }
  0x19   : > { %1158 = vmatprep.subr.bf16.mxu0 %v1314_v0  ;;  %490 = vrot.lane.b32.xlu1 %v1250_v11, %s1318_s6  ;;  %v1251_v12 = vld [vmem:[%s1403_s5] ss:$0 sps:$4 sm:$0xff]   ;;  %v636_v30 = vsel %vm349_vm1, %v630_v28, 0  ;;  %v629_v32 = vld [vmem:[%s1403_s5 + $0x4] sm:$0xf]  ;;  %s331_s21 = sadd.s32 %s1100_s20, %s1572_s19 }
  0x1a   : > { %v348_v19 = vld [vmem:[%s1435_s12] sm:$0xf]  ;;  %s1101_s22 = sshll.u32 %s331_s21, 2 }
  0x1b   : > { %v427_v20 = vsel %vm425_vm5, %v348_v19, 0  ;;  %v1255_v56 = vld [vmem:[%s1435_s12] ss:$0 sps:$4 sm:$0xff]   ;;  %s333_s25 = scalar_lea.vmem %s1554_s3, %s1101_s22 }
  0x1c   : > { %1147 = vmatpush3.bf16.msra.mxu1 %v427_v20 }
  0x1d   : > { %485 = vrot.lane.b32.xlu1 %v1251_v12, %s1318_s6  ;;  %1152 = vmatprep.subr.bf16.mxu1 %v1314_v0 }
  0x1f   : > { %1143 = vmatmul.mubr.msk.bf16.vlgmr.msra.gmra.mrb[0].mxu0 %vm349_vm1, %v346_v3  ;;  %v1321_v3 = vmov 3  }
  0x20   : > { %1160 = vmatprep.mubr.msk.bf16.mxu0 %vm1315_vm0, %v1314_v0 }
  0x21   : > { %770 = vrot.lane.b32.xlu1 %v1252_v13, %s1318_s6 }
  0x25   : > { %765 = vrot.lane.b32.xlu1 %v1253_v14, %s1318_s6 }
  0x8b   : > { %v491_v24 = vpop.permute.xlu1 %490 }
  0x8c   : > { %v496_v26 = vsel %vm349_vm1, %v491_v24, 0 }
  0x8f   : > { %v486_v29 = vpop.permute.xlu1 %485 }
  0x93   : > { %v771_v31 = vpop.permute.xlu1 %770 }
  0x94   : > { %v776_v33 = vsel %vm349_vm1, %v771_v31, 0 }
  0x97   : > { %v766_v34 = vpop.permute.xlu1 %765 }
  0xf2   : > { %v390_v5 = vpop.f32.mrb[0].mxu0 }
  0xf3   : > { %v1144_v6 = vpop.f32.mrb[1].mxu0  ;;  %v398_v7 = vsel %vm397_vm3, %v390_v5, -inf }
  0xf4   : > { %399 = vmax.xlane.f32.xlu0 %v398_v7  ;;  %v393_v8 = vpop.f32.mrb[2].mxu0  ;;  %v1254_v7 = vld [vmem:[%s1435_s12 + $0x4] ss:$0 sps:$4 sm:$0xff]  }
  0xf5   : > { %v1145_v9 = vpop.f32.mrb[3].mxu0 }
 0x181   : > { %v400_v16 = vpop.xlane.xlu0 %399 }
 0x182   : > { %v1423_v17 = vmax.f32 %v1420_v15, %v400_v16 }
 0x184   : > { %v402_v18 = vsub.f32 %v1420_v15, %v1423_v17  ;;  %478 = vst.msk [vmem:[#allocation2] sm:$0xff] %vm419_vm4, %v1423_v17  ;;  %407 = vperm.xlu0 %1237, %v1423_v17  }
 0x186   : > { %v403_v9 = vmul.f32 1.442695, %v402_v18 }
 0x188   : > { %1247 = vset.pattern.permute.xlu0 %v1320_v55 }
 0x18b   : > { %v538_v58 = vld [vmem:[#allocation2] sm:$0xff] }
 0x203   : > { %v408_v21 = vpop.permute.xlu0 %407 }
 0x204   : > { %v410_v22 = vsub.f32 %v390_v5, %v408_v21 }
 0x206   : > { %v411_v23 = vmul.f32 1.442695, %v410_v22 }
 0x208   : > { %1256 = vpow2.f32 %v411_v23 }
 0x209   : > { %1258 = vpow2.f32 %v403_v9 }
 0x212   : > { %v1440_v25 = vpop.eup %1256 }
 0x213   : > { %v421_v27 = vpack.c.bf16 %v1440_v25, %v1440_v25  ;;  %v415_v8 = vsel %vm397_vm3, %v1440_v25, 0.0  ;;  %v1259_v16 = vpop.eup %1258 }
 0x215   : > { %1149 = vmatmul.mubr.msk.bf16.vlgmr.msra.gmra.mrb[0].mxu1 %vm397_vm3, %v421_v27 }
 0x216   : > { %1153 = vmatpush3.bf16.xpose.msra.mxu1 %v496_v26  ;;  %1154 = vmatprep.mubr.msk.bf16.mxu1 %vm1315_vm0, %v1314_v0  ;;  %v631_v26 = vld [vmem:[%s1435_s12 + $0x4] sm:$0xf] }
 0x217   : > { %1164 = vmatprep.subr.bf16.mxu1 %v1314_v0 }
 0x21d   : > { %1155 = vmatmul.mubr.msk.bf16.vlgmr.msra.gmra.mrb[4].mxu1 %vm349_vm1, %v486_v29 }
 0x21e   : > { %1165 = vmatpush3.bf16.xpose.msra.mxu1 %v636_v30  ;;  %1166 = vmatprep.mubr.msk.bf16.mxu1 %vm1315_vm0, %v1314_v0  ;;  %v707_v30 = vsel %vm425_vm5, %v631_v26, 0 }
 0x21f   : > { %1176 = vmatprep.subr.bf16.mxu1 %v1314_v0 }
 0x225   : > { %1167 = vmatmul.mubr.msk.bf16.vlgmr.msra.gmra.mrb[8].mxu1 %vm349_vm1, %v629_v32 }
 0x226   : > { %1177 = vmatpush3.bf16.xpose.msra.mxu1 %v776_v33  ;;  %1178 = vmatprep.mubr.msk.bf16.mxu1 %vm1315_vm0, %v1314_v0 }
 0x22d   : > { %1179 = vmatmul.mubr.msk.bf16.vlgmr.msra.gmra.mrb[12].mxu1 %vm349_vm1, %v766_v34 }
 0x2e8   : > { %v1461_v35 = vpop.f32.mrb[0].mxu1 }
 0x2e9   : > { %v1150_v36 = vpop.f32.mrb[1].mxu1 }
 0x2ea   : > { %v466_v37 = vpop.f32.mrb[2].mxu1 }
 0x2eb   : > { %v1151_v38 = vpop.f32.mrb[3].mxu1 }
 0x2f0   : > { %v1463_v39 = vpop.f32.mrb[4].mxu1 }
 0x2f1   : > { %v1156_v40 = vpop.f32.mrb[5].mxu1  ;;  %v539_v41 = vsel %vm397_vm3, %v1463_v39, -inf }
 0x2f2   : > { %540 = vmax.xlane.f32.xlu1 %v539_v41  ;;  %v535_v42 = vpop.f32.mrb[6].mxu1 }
 0x2f3   : > { %v1157_v43 = vpop.f32.mrb[7].mxu1  ;;  %v413_v42 = vld [vmem:[#allocation3] sm:$0xff] }
 0x2f4   : > { %v414_v43 = vmul.f32 %v1259_v16, %v413_v42 }
 0x2f8   : > { %v1467_v44 = vpop.f32.mrb[8].mxu1 }
 0x2f9   : > { %v1168_v45 = vpop.f32.mrb[9].mxu1  ;;  %v679_v46 = vsel %vm397_vm3, %v1467_v44, -inf }
 0x2fa   : > { %v675_v47 = vpop.f32.mrb[10].mxu1  ;;  %680 = vmax.xlane.f32.xlu0 %v679_v46 }
 0x2fb   : > { %v1169_v48 = vpop.f32.mrb[11].mxu1 }
 0x300   : > { %v1471_v49 = vpop.f32.mrb[12].mxu1 }
 0x301   : > { %v1180_v50 = vpop.f32.mrb[13].mxu1  ;;  %v819_v51 = vsel %vm397_vm3, %v1471_v49, -inf }
 0x302   : > { %v815_v53 = vpop.f32.mrb[14].mxu1  ;;  %820 = vmax.xlane.f32.xlu1 %v819_v51 }
 0x303   : > { %v1181_v54 = vpop.f32.mrb[15].mxu1 }
 0x310   : > { %566 = vrot.lane.b32.xlu0 %v1255_v56, %s1318_s6 }
 0x37f   : > { %v541_v57 = vpop.xlane.xlu1 %540 }
 0x380   : > { %v542_v59 = vmax.f32 %v538_v58, %v541_v57 }
 0x382   : > { %v543_v60 = vsub.f32 %v538_v58, %v542_v59  ;;  %628 = vst.msk [vmem:[#allocation2] sm:$0xff] %vm560_vm6, %v542_v59  ;;  %548 = vperm.xlu1 %1238, %v542_v59  }
 0x384   : > { %v544_v11 = vmul.f32 1.442695, %v543_v60 }
 0x386   : > { %1239 = vset.pattern.permute.xlu1 %v1320_v55  ;;  %1260 = vpow2.f32 %v544_v11 }
 0x387   : > { %v681_v61 = vpop.xlane.xlu0 %680 }
 0x389   : > { %v678_v62 = vld [vmem:[#allocation2] sm:$0xff] }
 0x38a   : > { %v682_v63 = vmax.f32 %v678_v62, %v681_v61 }
 0x38b   : > { %v567_v1 = vpop.permute.xlu0 %566 }
 0x38c   : > { %758 = vst.msk [vmem:[#allocation2] sm:$0xff] %vm700_vm7, %v682_v63  ;;  %688 = vperm.xlu1 %1239, %v682_v63   ;;  %v572_v2 = vsel %vm425_vm5, %v567_v1, 0  ;;  %v683_v12 = vsub.f32 %v678_v62, %v682_v63 }
 0x38d   : > { %1159 = vmatpush3.bf16.msra.mxu0 %v572_v2 }
 0x38e   : > { %1170 = vmatprep.subr.bf16.mxu0 %v1314_v0  ;;  %v684_v13 = vmul.f32 1.442695, %v683_v12 }
 0x38f   : > { %v821_v4 = vpop.xlane.xlu1 %820 }
 0x390   : > { %1240 = vset.pattern.permute.xlu1 %v1321_v3  ;;  %1262 = vpow2.f32 %v684_v13  ;;  %v1261_v20 = vpop.eup %1260 }
 0x393   : > { %v818_v5 = vld [vmem:[#allocation2] sm:$0xff] }
 0x394   : > { %v822_v6 = vmax.f32 %v818_v5, %v821_v4 }
 0x396   : > { %907 = vst.msk [vmem:[#allocation2] sm:$0xff] %vm840_vm8, %v822_v6  ;;  %828 = vperm.xlu1 %1240, %v822_v6   ;;  %v823_v14 = vsub.f32 %v818_v5, %v822_v6 }
 0x398   : > { %v824_v19 = vmul.f32 1.442695, %v823_v14 }
 0x39a   : > { %846 = vrot.lane.b32.xlu1 %v1254_v7, %s1318_s6  ;;  %1264 = vpow2.f32 %v824_v19  ;;  %v1263_v21 = vpop.eup %1262 }
 0x39b   : > { %1241 = vset.pattern.permute.xlu1 %v1317_v10 }
 0x3a4   : > { %v1265_v15 = vpop.eup %1264 }
 0x3be   : > { %416 = vadd.xlane.f32.xlu1 %v415_v8 }
 0x3cf   : > { %472 = vperm.xlu1 %1241, %v1259_v16  }
 0x3d3   : > { %1242 = vset.pattern.permute.xlu1 %v1319_v52 }
 0x3d4   : > { %617 = vperm.xlu1 %1242, %v1261_v20  }
 0x3d8   : > { %1243 = vset.pattern.permute.xlu1 %v1320_v55 }
 0x3d9   : > { %752 = vperm.xlu1 %1243, %v1263_v21  }
 0x3dd   : > { %1244 = vset.pattern.permute.xlu1 %v1321_v3 }
 0x3de   : > { %897 = vperm.xlu1 %1244, %v1265_v15  }
 0x3e2   : > { %1245 = vset.pattern.permute.xlu1 %v1317_v10 }
 0x401   : > { %v549_v17 = vpop.permute.xlu1 %548 }
 0x402   : > { %v551_v18 = vsub.f32 %v1463_v39, %v549_v17 }
 0x404   : > { %v552_v22 = vmul.f32 1.442695, %v551_v18 }
 0x406   : > { %1266 = vpow2.f32 %v552_v22 }
 0x40b   : > { %v689_v23 = vpop.permute.xlu1 %688 }
 0x40c   : > { %v691_v24 = vsub.f32 %v1467_v44, %v689_v23 }
 0x40e   : > { %v692_v25 = vmul.f32 1.442695, %v691_v24 }
 0x410   : > { %v1267_v27 = vpop.eup %1266  ;;  %1268 = vpow2.f32 %v692_v25 }
 0x411   : > { %v556_v28 = vsel %vm397_vm3, %v1267_v27, 0.0  ;;  %v562_v29 = vpack.c.bf16 %v1267_v27, %v1267_v27 }
 0x412   : > { %557 = vadd.xlane.f32.xlu0 %v556_v28 }
 0x413   : > { %1161 = vmatmul.mubr.msk.bf16.vlgmr.msra.gmra.mrb[4].mxu0 %vm397_vm3, %v562_v29 }
 0x414   : > { %1171 = vmatpush3.bf16.msra.mxu0 %v707_v30  ;;  %1172 = vmatprep.mubr.msk.bf16.mxu0 %vm1315_vm0, %v1314_v0 }
 0x415   : > { %v829_v10 = vpop.permute.xlu1 %828  ;;  %1182 = vmatprep.subr.bf16.mxu0 %v1314_v0 }
 0x416   : > { %v831_v31 = vsub.f32 %v1471_v49, %v829_v10 }
 0x418   : > { %v832_v32 = vmul.f32 1.442695, %v831_v31 }
 0x419   : > { %v847_v33 = vpop.permute.xlu1 %846 }
 0x41a   : > { %v1269_v34 = vpop.eup %1268  ;;  %1270 = vpow2.f32 %v832_v32  ;;  %v852_v38 = vsel %vm425_vm5, %v847_v33, 0 }
 0x41b   : > { %v696_v36 = vsel %vm397_vm3, %v1269_v34, 0.0  ;;  %v702_v37 = vpack.c.bf16 %v1269_v34, %v1269_v34 }
 0x41c   : > { %697 = vadd.xlane.f32.xlu0 %v696_v36 }
 0x41d   : > { %1173 = vmatmul.mubr.msk.bf16.vlgmr.msra.gmra.mrb[8].mxu0 %vm397_vm3, %v702_v37 }
 0x41e   : > { %1183 = vmatpush3.bf16.msra.mxu0 %v852_v38  ;;  %1184 = vmatprep.mubr.msk.bf16.mxu0 %vm1315_vm0, %v1314_v0 }
 0x424   : > { %v1271_v39 = vpop.eup %1270 }
 0x425   : > { %v836_v40 = vsel %vm397_vm3, %v1271_v39, 0.0  ;;  %v842_v41 = vpack.c.bf16 %v1271_v39, %v1271_v39 }
 0x426   : > { %837 = vadd.xlane.f32.xlu0 %v836_v40 }
 0x427   : > { %1185 = vmatmul.mubr.msk.bf16.vlgmr.msra.gmra.mrb[12].mxu0 %vm397_vm3, %v842_v41 }
 0x44b   : > { %v417_v44 = vpop.xlane.xlu1 %416 }
 0x44c   : > { %v418_v45 = vadd.f32 %v417_v44, %v414_v43 }
 0x44e   : > { %420 = vst.msk [vmem:[#allocation3] sm:$0xff] %vm419_vm4, %v418_v45 }
 0x44f   : > { %v473_v46 = vpop.permute.xlu1 %472 }
 0x450   : > { %v475_v47 = vmul.f32 0.0, %v473_v46 }
 0x452   : > { %v476_v48 = vadd.f32 %v475_v47, %v1461_v35 }
 0x453   : > { %v618_v61 = vpop.permute.xlu1 %617 }
 0x454   : > { %477 = vst.msk [vmem:[#allocation4] sm:$0xff] %vm349_vm1, %v476_v48 }
 0x455   : > { %v554_v0 = vld [vmem:[#allocation3] sm:$0xff] }
 0x456   : > { %v555_v49 = vmul.f32 %v1261_v20, %v554_v0 }
 0x458   : > { %v753_v5 = vpop.permute.xlu1 %752 }
 0x459   : > { %v755_v6 = vmul.f32 0.0, %v753_v5 }
 0x45b   : > { %v614_v20 = vld [vmem:[#allocation4] sm:$0xff] }
 0x45d   : > { %v898_v18 = vpop.permute.xlu1 %897 }
 0x49f   : > { %v558_v50 = vpop.xlane.xlu0 %557 }
 0x4a0   : > { %v559_v51 = vadd.f32 %v558_v50, %v555_v49 }
 0x4a2   : > { %561 = vst.msk [vmem:[#allocation3] sm:$0xff] %vm560_vm6, %v559_v51 }
 0x4a9   : > { %v694_v53 = vld [vmem:[#allocation3] sm:$0xff]  ;;  %v698_v55 = vpop.xlane.xlu0 %697 }
 0x4aa   : > { %v695_v54 = vmul.f32 %v1263_v21, %v694_v53  ;;  %v620_v21 = vmul.f32 %v618_v61, %v614_v20 }
 0x4ac   : > { %v699_v56 = vadd.f32 %v698_v55, %v695_v54 }
 0x4ae   : > { %701 = vst.msk [vmem:[#allocation3] sm:$0xff] %vm700_vm7, %v699_v56 }
 0x4b3   : > { %v838_v59 = vpop.xlane.xlu0 %837 }
 0x4b5   : > { %v834_v57 = vld [vmem:[#allocation3] sm:$0xff] }
 0x4b6   : > { %v835_v58 = vmul.f32 %v1265_v15, %v834_v57 }
 0x4b8   : > { %v839_v60 = vadd.f32 %v838_v59, %v835_v58 }
 0x4ba   : > { %841 = vst.msk [vmem:[#allocation3] sm:$0xff] %vm840_vm8, %v839_v60 }
 0x4c1   : > { %v911_v35 = vld [vmem:[#allocation3] sm:$0xff] }
 0x4c2   : > { %1272 = vrcp.f32 %v911_v35 }
 0x4cc   : > { %v1273_v4 = vpop.eup %1272 }
 0x4e6   : > { %v608_v62 = vpop.f32.mrb[4].mxu0 }
 0x4e7   : > { %622 = vrot.lane.b32.xlu0 %v608_v62, %s1318_s6  ;;  %v1162_v63 = vpop.f32.mrb[5].mxu0 }
 0x4e8   : > { %v611_v1 = vpop.f32.mrb[6].mxu0 }
 0x4e9   : > { %v1163_v2 = vpop.f32.mrb[7].mxu0 }
 0x4eb   : > { %930 = vperm.xlu0 %1247, %v1273_v4  }
 0x4ef   : > { %1249 = vset.pattern.permute.xlu0 %v1321_v3 }
 0x4f0   : > { %v743_v7 = vpop.f32.mrb[8].mxu0 }
 0x4f1   : > { %v756_v8 = vadd.f32 %v755_v6, %v743_v7  ;;  %v1174_v9 = vpop.f32.mrb[9].mxu0 }
 0x4f2   : > { %v746_v11 = vpop.f32.mrb[10].mxu0 }
 0x4f3   : > { %757 = vst.msk [vmem:[#allocation4 + $0x8] sm:$0xff] %vm349_vm1, %v756_v8  ;;  %v1175_v12 = vpop.f32.mrb[11].mxu0 }
 0x4fa   : > { %v888_v13 = vpop.f32.mrb[12].mxu0  ;;  %v894_v22 = vld [vmem:[#allocation4 + $0x8] sm:$0xff] }
 0x4fb   : > { %902 = vrot.lane.b32.xlu1 %v888_v13, %s1318_s6  ;;  %v1186_v14 = vpop.f32.mrb[13].mxu0  ;;  %v900_v23 = vmul.f32 %v898_v18, %v894_v22 }
 0x4fc   : > { %v891_v16 = vpop.f32.mrb[14].mxu0 }
 0x4fd   : > { %v1187_v19 = vpop.f32.mrb[15].mxu0 }
 0x4ff   : > { %916 = vperm.xlu1 %1245, %v1273_v4  }
 0x503   : > { %1246 = vset.pattern.permute.xlu1 %v1319_v52 }
 0x504   : > { %923 = vperm.xlu1 %1246, %v1273_v4  }
 0x508   : > { %1248 = vset.pattern.permute.xlu1 %v1321_v3 }
 0x509   : > { %937 = vperm.xlu1 %1248, %v1273_v4  }
 0x559   : > { %v623_v15 = vpop.permute.xlu0 %622 }
 0x55a   : > { %v625_v17 = vadd.f32 %v623_v15, %v620_v21 }
 0x55c   : > { %627 = vst.msk [vmem:[#allocation4] sm:$0xff] %vm626_vm9, %v625_v17 }
 0x563   : > { %v913_v27 = vld [vmem:[#allocation4] sm:$0xff] }
 0x56a   : > { %v931_v52 = vpop.permute.xlu0 %930 }
 0x56d   : > { %v903_v24 = vpop.permute.xlu1 %902 }
 0x56e   : > { %v905_v25 = vadd.f32 %v903_v24, %v900_v23 }
 0x570   : > { %906 = vst.msk [vmem:[#allocation4 + $0x8] sm:$0xff] %vm626_vm9, %v905_v25 }
 0x577   : > { %v928_v3 = vld [vmem:[#allocation4 + $0x8] sm:$0xff] }
 0x578   : > { %v933_v26 = vmul.f32 %v931_v52, %v928_v3 }
 0x57a   : > { %934 = vst.msk [vmem:[#allocation4 + $0x8] sm:$0xff] %vm349_vm1, %v933_v26 }
 0x57e   : > { %v917_v28 = vpop.permute.xlu1 %916 }
 0x57f   : > { %v919_v29 = vmul.f32 %v917_v28, %v913_v27 }
 0x581   : > { %920 = vst.msk [vmem:[#allocation4] sm:$0xff] %vm349_vm1, %v919_v29  ;;  %v935_v31 = vld [vmem:[#allocation4 + $0x8] sm:$0xff] }
 0x583   : > { %v924_v30 = vpop.permute.xlu1 %923 }
 0x588   : > { %v921_v10 = vld [vmem:[#allocation4] sm:$0xff]  ;;  %v938_v32 = vpop.permute.xlu1 %937 }
 0x589   : > { %v926_v33 = vmul.f32 %v924_v30, %v921_v10  ;;  %v940_v34 = vmul.f32 %v938_v32, %v935_v31 }
 0x58b   : > { %927 = vst.msk [vmem:[#allocation4] sm:$0xff] %vm626_vm9, %v926_v33  ;;  %941 = vst.msk [vmem:[#allocation4 + $0x8] sm:$0xff] %vm626_vm9, %v940_v34 }
 0x592   : > { %v942_v36 = vld [vmem:[#allocation4] sm:$0xff]  ;;  %v943_v37 = vld [vmem:[#allocation4 + $0x8] sm:$0xff] }
 0x593   : > { %v1123_v38 = vpack.c.bf16 %v943_v37, %v942_v36 }
 0x595   : > { %952 = vst [vmem:[%s333_s25] sm:$0xff] %v1123_v38 }
 0x596 PF: > { %s13_s16 = sadd.s32 1, %s1312_s16   ;;  %s1555_s12 = smov %s1304_s14 }
 0x597   : > { %p10_p10 = scmp.ge.s32.totalorder %s13_s16, 6   ;;  %s1556_s13 = smov %s1308_s15 }
 0x598   : > { %s1557_s14 = smov %s1560_s17  ;;  %s1558_s15 = smov %s1564_s18 }
 0x599   :  { %12 = sbr.rel (!%p10_p10) target bundleno = 3 (0x3), region = 76 }

// kernel: _lambda_.3
= control target key start
LH: loop header
LB: loop body
LE: loop exit
PB: predicated region body
PF: predicated region fallthrough
CT: control target
= control target key end

     0   :  { %s2162_s12 = smov 0   ;;  %s2164_s13 = smov 0   ;;  %s2661_s0 = inlined_call_operand.vmem [shape: bf16[16,512], index: 0, kind: input, shape index: {}]   ;;  %s2662_s1 = inlined_call_operand.vmem [shape: bf16[512,1536], index: 1, kind: input, shape index: {}]   ;;  %s2663_s2 = inlined_call_operand.vmem [shape: f32[1,1536], index: 2, kind: input, shape index: {}]   ;;  %s2664_s3 = inlined_call_operand.vmem [shape: bf16[16,1536], index: 3, kind: output, shape index: {}]  }
   0x1   :  { %s2166_s14 = smov 0   ;;  %s2168_s15 = smov 0  }
   0x2   :  { %s2170_s16 = smov 0   ;;  %s2172_s17 = smov 0  }
   0x3   :  { %s2174_s18 = smov 0  }
   0x4 LB: > { %s28_s19 = sadd.s32 1, %s2132_s16  ;;  %s32_s20 = sadd.s32 1, %s2136_s17  ;;  %s2140_s18 = sphi %s2174_s18, %s13_s18   ;;  %s2136_s17 = sphi %s2172_s17, %s2670_s17   ;;  %s2132_s16 = sphi %s2170_s16, %s2669_s16   ;;  %s2128_s15 = sphi %s2168_s15, %s2668_s15   ;;  %s2124_s14 = sphi %s2166_s14, %s2667_s14   ;;  %s2120_s13 = sphi %s2164_s13, %s2666_s13   ;;  %s2116_s12 = sphi %s2162_s12, %s2665_s12  }
   0x5   : > { %p30_p0 = scmp.ge.s32.totalorder %s28_s19, 3  ;;  %s69_s21 = sadd.s32 1, %s2120_s13 }
   0x6   : > { %p76_p1 = scmp.ne.s32.totalorder %s2120_s13, %s2116_s12  ;;  %p77_p2 = scmp.eq.s32.totalorder %s2140_s18, 0 }
   0x7   : > { %s2672_s19 = smov (%p30_p0, %s28_s19), 0  ;;  %s2674_s20 = smov (!%p30_p0, %s32_s20), %s2136_s17 }
   0x8   : > { %s65_s22 = ssub.s32 %s2132_s16, %s2672_s19  ;;  %p78_p3 = por %p77_p2, %p76_p1 }
   0x9   : > { %p34_p4 = scmp.ge.s32.totalorder %s2674_s20, 2  ;;  %p67_p5 = scmp.eq.s32.totalorder %s65_s22, 0 }
   0xa   : > { %p1682_p6 = scmp.ge.s32.totalorder %s2140_s18, 6 }
   0xb   : > { %s2676_s20 = smov (%p34_p4, %s2674_s20), 0 }
   0xc   : > { %s2211_s23 = scalar_select %p67_p5, %s2120_s13, %s69_s21  }
   0xd   : > { %156 = sbr.rel (%p1682_p6) target bundleno = 88 (0x58), region = 16 }
  0x14   : > { %172 = sbr.rel (!%p78_p3) target bundleno = 88 (0x58), region = 24  ;;  %s174_s24 = sand.u32 (%p78_p3), 1, %s2120_s13  }
  0x15   : > { %s1829_s25 = sshll.u32 (%p78_p3), %s2132_s16, 4  ;;  %s1683_s26 = sshll.u32 (%p78_p3), %s174_s24, 10 }
  0x16   : > { %s2219_s29 = scalar_lea.vmem (%p78_p3), %s2662_s1, %s1829_s25  ;;  %s2224_s30 = scalar_lea.vmem (%p78_p3), [#allocation3], %s1683_s26 }
  0x17   : > { %v195_v0 = vld [vmem:[%s2219_s29] sm:$0xff] (%p78_p3)  ;;  %v197_v1 = vld [vmem:[%s2219_s29 + $0x8] sm:$0xff] (%p78_p3)  ;;  %v199_v2 = vld [vmem:[%s2219_s29 + $0x30] sm:$0xff] (%p78_p3) }
  0x18   : > { %196 = vst [vmem:[%s2224_s30] sm:$0xff] (%p78_p3), %v195_v0  ;;  %198 = vst [vmem:[%s2224_s30 + $0x8] sm:$0xff] (%p78_p3), %v197_v1  ;;  %v201_v3 = vld [vmem:[%s2219_s29 + $0x38] sm:$0xff] (%p78_p3)  ;;  %v203_v4 = vld [vmem:[%s2219_s29 + $0x60] sm:$0xff] (%p78_p3) }
  0x19   : > { %200 = vst [vmem:[%s2224_s30 + $0x10] sm:$0xff] (%p78_p3), %v199_v2  ;;  %v205_v5 = vld [vmem:[%s2219_s29 + $0x68] sm:$0xff] (%p78_p3)  ;;  %202 = vst [vmem:[%s2224_s30 + $0x18] sm:$0xff] (%p78_p3), %v201_v3  ;;  %v207_v6 = vld [vmem:[%s2219_s29 + $0x90] sm:$0xff] (%p78_p3) }
  0x1a   : > { %204 = vst [vmem:[%s2224_s30 + $0x20] sm:$0xff] (%p78_p3), %v203_v4  ;;  %206 = vst [vmem:[%s2224_s30 + $0x28] sm:$0xff] (%p78_p3), %v205_v5  ;;  %v209_v7 = vld [vmem:[%s2219_s29 + $0x98] sm:$0xff] (%p78_p3)  ;;  %v211_v8 = vld [vmem:[%s2219_s29 + $0xc0] sm:$0xff] (%p78_p3) }
  0x1b   : > { %208 = vst [vmem:[%s2224_s30 + $0x30] sm:$0xff] %v207_v6  ;;  %210 = vst [vmem:[%s2224_s30 + $0x38] sm:$0xff] %v209_v7  ;;  %v213_v9 = vld [vmem:[%s2219_s29 + $0xc8] sm:$0xff]  ;;  %v215_v10 = vld [vmem:[%s2219_s29 + $0xf0] sm:$0xff] }
  0x1c   : > { %212 = vst [vmem:[%s2224_s30 + $0x40] sm:$0xff] %v211_v8  ;;  %v217_v11 = vld [vmem:[%s2219_s29 + $0xf8] sm:$0xff]  ;;  %214 = vst [vmem:[%s2224_s30 + $0x48] sm:$0xff] %v213_v9  ;;  %v219_v12 = vld [vmem:[%s2219_s29 + $0x120] sm:$0xff] }
  0x1d   : > { %216 = vst [vmem:[%s2224_s30 + $0x50] sm:$0xff] %v215_v10  ;;  %218 = vst [vmem:[%s2224_s30 + $0x58] sm:$0xff] %v217_v11  ;;  %v221_v13 = vld [vmem:[%s2219_s29 + $0x128] sm:$0xff]  ;;  %v223_v14 = vld [vmem:[%s2219_s29 + $0x150] sm:$0xff] }
  0x1e   : > { %220 = vst [vmem:[%s2224_s30 + $0x60] sm:$0xff] %v219_v12  ;;  %222 = vst [vmem:[%s2224_s30 + $0x68] sm:$0xff] %v221_v13  ;;  %v225_v15 = vld [vmem:[%s2219_s29 + $0x158] sm:$0xff]  ;;  %v227_v16 = vld [vmem:[%s2219_s29 + $0x180] sm:$0xff] }
  0x1f   : > { %224 = vst [vmem:[%s2224_s30 + $0x70] sm:$0xff] %v223_v14  ;;  %v229_v17 = vld [vmem:[%s2219_s29 + $0x188] sm:$0xff]  ;;  %226 = vst [vmem:[%s2224_s30 + $0x78] sm:$0xff] %v225_v15  ;;  %v231_v18 = vld [vmem:[%s2219_s29 + $0x1b0] sm:$0xff] }
  0x20   : > { %228 = vst [vmem:[%s2224_s30 + $0x80] sm:$0xff] %v227_v16  ;;  %230 = vst [vmem:[%s2224_s30 + $0x88] sm:$0xff] %v229_v17  ;;  %v233_v19 = vld [vmem:[%s2219_s29 + $0x1b8] sm:$0xff]  ;;  %v235_v20 = vld [vmem:[%s2219_s29 + $0x1e0] sm:$0xff] }
  0x21   : > { %232 = vst [vmem:[%s2224_s30 + $0x90] sm:$0xff] %v231_v18  ;;  %234 = vst [vmem:[%s2224_s30 + $0x98] sm:$0xff] %v233_v19  ;;  %v237_v21 = vld [vmem:[%s2219_s29 + $0x1e8] sm:$0xff]  ;;  %v239_v22 = vld [vmem:[%s2219_s29 + $0x210] sm:$0xff] }
  0x22   : > { %236 = vst [vmem:[%s2224_s30 + $0xa0] sm:$0xff] %v235_v20  ;;  %v241_v23 = vld [vmem:[%s2219_s29 + $0x218] sm:$0xff]  ;;  %238 = vst [vmem:[%s2224_s30 + $0xa8] sm:$0xff] %v237_v21  ;;  %v243_v24 = vld [vmem:[%s2219_s29 + $0x240] sm:$0xff] }
  0x23   : > { %240 = vst [vmem:[%s2224_s30 + $0xb0] sm:$0xff] %v239_v22  ;;  %242 = vst [vmem:[%s2224_s30 + $0xb8] sm:$0xff] %v241_v23  ;;  %v245_v25 = vld [vmem:[%s2219_s29 + $0x248] sm:$0xff]  ;;  %v247_v26 = vld [vmem:[%s2219_s29 + $0x270] sm:$0xff] }
  0x24   : > { %244 = vst [vmem:[%s2224_s30 + $0xc0] sm:$0xff] %v243_v24  ;;  %246 = vst [vmem:[%s2224_s30 + $0xc8] sm:$0xff] %v245_v25  ;;  %v249_v27 = vld [vmem:[%s2219_s29 + $0x278] sm:$0xff]  ;;  %v251_v28 = vld [vmem:[%s2219_s29 + $0x2a0] sm:$0xff] }
  0x25   : > { %248 = vst [vmem:[%s2224_s30 + $0xd0] sm:$0xff] %v247_v26  ;;  %v253_v29 = vld [vmem:[%s2219_s29 + $0x2a8] sm:$0xff]  ;;  %250 = vst [vmem:[%s2224_s30 + $0xd8] sm:$0xff] %v249_v27  ;;  %v255_v30 = vld [vmem:[%s2219_s29 + $0x2d0] sm:$0xff] }
  0x26   : > { %252 = vst [vmem:[%s2224_s30 + $0xe0] sm:$0xff] %v251_v28  ;;  %254 = vst [vmem:[%s2224_s30 + $0xe8] sm:$0xff] %v253_v29  ;;  %v257_v31 = vld [vmem:[%s2219_s29 + $0x2d8] sm:$0xff]  ;;  %v259_v32 = vld [vmem:[%s2219_s29 + $0x300] sm:$0xff] }
  0x27   : > { %256 = vst [vmem:[%s2224_s30 + $0xf0] sm:$0xff] %v255_v30  ;;  %258 = vst [vmem:[%s2224_s30 + $0xf8] sm:$0xff] %v257_v31  ;;  %v261_v33 = vld [vmem:[%s2219_s29 + $0x308] sm:$0xff]  ;;  %v263_v34 = vld [vmem:[%s2219_s29 + $0x330] sm:$0xff] }
  0x28   : > { %260 = vst [vmem:[%s2224_s30 + $0x100] sm:$0xff] %v259_v32  ;;  %v265_v35 = vld [vmem:[%s2219_s29 + $0x338] sm:$0xff]  ;;  %262 = vst [vmem:[%s2224_s30 + $0x108] sm:$0xff] %v261_v33  ;;  %v267_v36 = vld [vmem:[%s2219_s29 + $0x360] sm:$0xff] }
  0x29   : > { %264 = vst [vmem:[%s2224_s30 + $0x110] sm:$0xff] %v263_v34  ;;  %266 = vst [vmem:[%s2224_s30 + $0x118] sm:$0xff] %v265_v35  ;;  %v269_v37 = vld [vmem:[%s2219_s29 + $0x368] sm:$0xff]  ;;  %v271_v38 = vld [vmem:[%s2219_s29 + $0x390] sm:$0xff] }
  0x2a   : > { %268 = vst [vmem:[%s2224_s30 + $0x120] sm:$0xff] %v267_v36  ;;  %270 = vst [vmem:[%s2224_s30 + $0x128] sm:$0xff] %v269_v37  ;;  %v273_v39 = vld [vmem:[%s2219_s29 + $0x398] sm:$0xff]  ;;  %v275_v40 = vld [vmem:[%s2219_s29 + $0x3c0] sm:$0xff] }
  0x2b   : > { %272 = vst [vmem:[%s2224_s30 + $0x130] sm:$0xff] %v271_v38  ;;  %v277_v41 = vld [vmem:[%s2219_s29 + $0x3c8] sm:$0xff]  ;;  %274 = vst [vmem:[%s2224_s30 + $0x138] sm:$0xff] %v273_v39  ;;  %v279_v42 = vld [vmem:[%s2219_s29 + $0x3f0] sm:$0xff] }
  0x2c   : > { %276 = vst [vmem:[%s2224_s30 + $0x140] sm:$0xff] %v275_v40  ;;  %278 = vst [vmem:[%s2224_s30 + $0x148] sm:$0xff] %v277_v41  ;;  %v281_v43 = vld [vmem:[%s2219_s29 + $0x3f8] sm:$0xff]  ;;  %v283_v44 = vld [vmem:[%s2219_s29 + $0x420] sm:$0xff] }
  0x2d   : > { %280 = vst [vmem:[%s2224_s30 + $0x150] sm:$0xff] %v279_v42  ;;  %282 = vst [vmem:[%s2224_s30 + $0x158] sm:$0xff] %v281_v43  ;;  %v285_v45 = vld [vmem:[%s2219_s29 + $0x428] sm:$0xff]  ;;  %v287_v46 = vld [vmem:[%s2219_s29 + $0x450] sm:$0xff] }
  0x2e   : > { %284 = vst [vmem:[%s2224_s30 + $0x160] sm:$0xff] %v283_v44  ;;  %v289_v47 = vld [vmem:[%s2219_s29 + $0x458] sm:$0xff]  ;;  %286 = vst [vmem:[%s2224_s30 + $0x168] sm:$0xff] %v285_v45  ;;  %v291_v48 = vld [vmem:[%s2219_s29 + $0x480] sm:$0xff] }
  0x2f   : > { %288 = vst [vmem:[%s2224_s30 + $0x170] sm:$0xff] %v287_v46  ;;  %290 = vst [vmem:[%s2224_s30 + $0x178] sm:$0xff] %v289_v47  ;;  %v293_v49 = vld [vmem:[%s2219_s29 + $0x488] sm:$0xff]  ;;  %v295_v50 = vld [vmem:[%s2219_s29 + $0x4b0] sm:$0xff] }
  0x30   : > { %292 = vst [vmem:[%s2224_s30 + $0x180] sm:$0xff] %v291_v48  ;;  %294 = vst [vmem:[%s2224_s30 + $0x188] sm:$0xff] %v293_v49  ;;  %v297_v51 = vld [vmem:[%s2219_s29 + $0x4b8] sm:$0xff]  ;;  %v299_v52 = vld [vmem:[%s2219_s29 + $0x4e0] sm:$0xff] }
  0x31   : > { %296 = vst [vmem:[%s2224_s30 + $0x190] sm:$0xff] %v295_v50  ;;  %v301_v53 = vld [vmem:[%s2219_s29 + $0x4e8] sm:$0xff]  ;;  %298 = vst [vmem:[%s2224_s30 + $0x198] sm:$0xff] %v297_v51  ;;  %v303_v54 = vld [vmem:[%s2219_s29 + $0x510] sm:$0xff] }
  0x32   : > { %300 = vst [vmem:[%s2224_s30 + $0x1a0] sm:$0xff] %v299_v52  ;;  %302 = vst [vmem:[%s2224_s30 + $0x1a8] sm:$0xff] %v301_v53  ;;  %v305_v55 = vld [vmem:[%s2219_s29 + $0x518] sm:$0xff]  ;;  %v307_v56 = vld [vmem:[%s2219_s29 + $0x540] sm:$0xff] }
  0x33   : > { %304 = vst [vmem:[%s2224_s30 + $0x1b0] sm:$0xff] %v303_v54  ;;  %306 = vst [vmem:[%s2224_s30 + $0x1b8] sm:$0xff] %v305_v55  ;;  %v309_v57 = vld [vmem:[%s2219_s29 + $0x548] sm:$0xff]  ;;  %v311_v58 = vld [vmem:[%s2219_s29 + $0x570] sm:$0xff] }
  0x34   : > { %308 = vst [vmem:[%s2224_s30 + $0x1c0] sm:$0xff] %v307_v56  ;;  %v313_v59 = vld [vmem:[%s2219_s29 + $0x578] sm:$0xff]  ;;  %310 = vst [vmem:[%s2224_s30 + $0x1c8] sm:$0xff] %v309_v57  ;;  %v315_v60 = vld [vmem:[%s2219_s29 + $0x5a0] sm:$0xff] }
  0x35   : > { %312 = vst [vmem:[%s2224_s30 + $0x1d0] sm:$0xff] %v311_v58  ;;  %314 = vst [vmem:[%s2224_s30 + $0x1d8] sm:$0xff] %v313_v59  ;;  %v317_v61 = vld [vmem:[%s2219_s29 + $0x5a8] sm:$0xff]  ;;  %v319_v62 = vld [vmem:[%s2219_s29 + $0x5d0] sm:$0xff] }
  0x36   : > { %316 = vst [vmem:[%s2224_s30 + $0x1e0] sm:$0xff] %v315_v60  ;;  %318 = vst [vmem:[%s2224_s30 + $0x1e8] sm:$0xff] %v317_v61  ;;  %v321_v63 = vld [vmem:[%s2219_s29 + $0x5d8] sm:$0xff]  ;;  %v323_v0 = vld [vmem:[%s2219_s29 + $0x600] sm:$0xff] }
  0x37   : > { %320 = vst [vmem:[%s2224_s30 + $0x1f0] sm:$0xff] %v319_v62  ;;  %v325_v1 = vld [vmem:[%s2219_s29 + $0x608] sm:$0xff]  ;;  %322 = vst [vmem:[%s2224_s30 + $0x1f8] sm:$0xff] %v321_v63  ;;  %v327_v2 = vld [vmem:[%s2219_s29 + $0x630] sm:$0xff] }
  0x38   : > { %324 = vst [vmem:[%s2224_s30 + $0x200] sm:$0xff] %v323_v0  ;;  %326 = vst [vmem:[%s2224_s30 + $0x208] sm:$0xff] %v325_v1  ;;  %v329_v3 = vld [vmem:[%s2219_s29 + $0x638] sm:$0xff]  ;;  %v331_v4 = vld [vmem:[%s2219_s29 + $0x660] sm:$0xff] }
  0x39   : > { %328 = vst [vmem:[%s2224_s30 + $0x210] sm:$0xff] %v327_v2  ;;  %330 = vst [vmem:[%s2224_s30 + $0x218] sm:$0xff] %v329_v3  ;;  %v333_v5 = vld [vmem:[%s2219_s29 + $0x668] sm:$0xff]  ;;  %v335_v6 = vld [vmem:[%s2219_s29 + $0x690] sm:$0xff] }
  0x3a   : > { %332 = vst [vmem:[%s2224_s30 + $0x220] sm:$0xff] %v331_v4  ;;  %v337_v7 = vld [vmem:[%s2219_s29 + $0x698] sm:$0xff]  ;;  %334 = vst [vmem:[%s2224_s30 + $0x228] sm:$0xff] %v333_v5  ;;  %v339_v8 = vld [vmem:[%s2219_s29 + $0x6c0] sm:$0xff] }
  0x3b   : > { %336 = vst [vmem:[%s2224_s30 + $0x230] sm:$0xff] %v335_v6  ;;  %338 = vst [vmem:[%s2224_s30 + $0x238] sm:$0xff] %v337_v7  ;;  %v341_v9 = vld [vmem:[%s2219_s29 + $0x6c8] sm:$0xff]  ;;  %v343_v10 = vld [vmem:[%s2219_s29 + $0x6f0] sm:$0xff] }
  0x3c   : > { %340 = vst [vmem:[%s2224_s30 + $0x240] sm:$0xff] %v339_v8  ;;  %342 = vst [vmem:[%s2224_s30 + $0x248] sm:$0xff] %v341_v9  ;;  %v345_v11 = vld [vmem:[%s2219_s29 + $0x6f8] sm:$0xff]  ;;  %v347_v12 = vld [vmem:[%s2219_s29 + $0x720] sm:$0xff] }
  0x3d   : > { %344 = vst [vmem:[%s2224_s30 + $0x250] sm:$0xff] %v343_v10  ;;  %v349_v13 = vld [vmem:[%s2219_s29 + $0x728] sm:$0xff]  ;;  %346 = vst [vmem:[%s2224_s30 + $0x258] sm:$0xff] %v345_v11  ;;  %v351_v14 = vld [vmem:[%s2219_s29 + $0x750] sm:$0xff] }
  0x3e   : > { %348 = vst [vmem:[%s2224_s30 + $0x260] sm:$0xff] %v347_v12  ;;  %350 = vst [vmem:[%s2224_s30 + $0x268] sm:$0xff] %v349_v13  ;;  %v353_v15 = vld [vmem:[%s2219_s29 + $0x758] sm:$0xff]  ;;  %v355_v16 = vld [vmem:[%s2219_s29 + $0x780] sm:$0xff] }
  0x3f   : > { %352 = vst [vmem:[%s2224_s30 + $0x270] sm:$0xff] %v351_v14  ;;  %354 = vst [vmem:[%s2224_s30 + $0x278] sm:$0xff] %v353_v15  ;;  %v357_v17 = vld [vmem:[%s2219_s29 + $0x788] sm:$0xff]  ;;  %v359_v18 = vld [vmem:[%s2219_s29 + $0x7b0] sm:$0xff] }
  0x40   : > { %356 = vst [vmem:[%s2224_s30 + $0x280] sm:$0xff] %v355_v16  ;;  %v361_v19 = vld [vmem:[%s2219_s29 + $0x7b8] sm:$0xff]  ;;  %358 = vst [vmem:[%s2224_s30 + $0x288] sm:$0xff] %v357_v17  ;;  %v363_v20 = vld [vmem:[%s2219_s29 + $0x7e0] sm:$0xff] }
  0x41   : > { %360 = vst [vmem:[%s2224_s30 + $0x290] sm:$0xff] %v359_v18  ;;  %362 = vst [vmem:[%s2224_s30 + $0x298] sm:$0xff] %v361_v19  ;;  %v365_v21 = vld [vmem:[%s2219_s29 + $0x7e8] sm:$0xff]  ;;  %v367_v22 = vld [vmem:[%s2219_s29 + $0x810] sm:$0xff] }
  0x42   : > { %364 = vst [vmem:[%s2224_s30 + $0x2a0] sm:$0xff] %v363_v20  ;;  %366 = vst [vmem:[%s2224_s30 + $0x2a8] sm:$0xff] %v365_v21  ;;  %v369_v23 = vld [vmem:[%s2219_s29 + $0x818] sm:$0xff]  ;;  %v371_v24 = vld [vmem:[%s2219_s29 + $0x840] sm:$0xff] }
  0x43   : > { %368 = vst [vmem:[%s2224_s30 + $0x2b0] sm:$0xff] %v367_v22  ;;  %v373_v25 = vld [vmem:[%s2219_s29 + $0x848] sm:$0xff]  ;;  %370 = vst [vmem:[%s2224_s30 + $0x2b8] sm:$0xff] %v369_v23  ;;  %v375_v26 = vld [vmem:[%s2219_s29 + $0x870] sm:$0xff] }
  0x44   : > { %372 = vst [vmem:[%s2224_s30 + $0x2c0] sm:$0xff] %v371_v24  ;;  %374 = vst [vmem:[%s2224_s30 + $0x2c8] sm:$0xff] %v373_v25  ;;  %v377_v27 = vld [vmem:[%s2219_s29 + $0x878] sm:$0xff]  ;;  %v379_v28 = vld [vmem:[%s2219_s29 + $0x8a0] sm:$0xff] }
  0x45   : > { %376 = vst [vmem:[%s2224_s30 + $0x2d0] sm:$0xff] %v375_v26  ;;  %378 = vst [vmem:[%s2224_s30 + $0x2d8] sm:$0xff] %v377_v27  ;;  %v381_v29 = vld [vmem:[%s2219_s29 + $0x8a8] sm:$0xff]  ;;  %v383_v30 = vld [vmem:[%s2219_s29 + $0x8d0] sm:$0xff] }
  0x46   : > { %380 = vst [vmem:[%s2224_s30 + $0x2e0] sm:$0xff] %v379_v28  ;;  %v385_v31 = vld [vmem:[%s2219_s29 + $0x8d8] sm:$0xff]  ;;  %382 = vst [vmem:[%s2224_s30 + $0x2e8] sm:$0xff] %v381_v29  ;;  %v387_v32 = vld [vmem:[%s2219_s29 + $0x900] sm:$0xff] }
  0x47   : > { %384 = vst [vmem:[%s2224_s30 + $0x2f0] sm:$0xff] %v383_v30  ;;  %386 = vst [vmem:[%s2224_s30 + $0x2f8] sm:$0xff] %v385_v31  ;;  %v389_v33 = vld [vmem:[%s2219_s29 + $0x908] sm:$0xff]  ;;  %v391_v34 = vld [vmem:[%s2219_s29 + $0x930] sm:$0xff] }
  0x48   : > { %388 = vst [vmem:[%s2224_s30 + $0x300] sm:$0xff] %v387_v32  ;;  %390 = vst [vmem:[%s2224_s30 + $0x308] sm:$0xff] %v389_v33  ;;  %v393_v35 = vld [vmem:[%s2219_s29 + $0x938] sm:$0xff]  ;;  %v395_v36 = vld [vmem:[%s2219_s29 + $0x960] sm:$0xff] }
  0x49   : > { %392 = vst [vmem:[%s2224_s30 + $0x310] sm:$0xff] %v391_v34  ;;  %v397_v37 = vld [vmem:[%s2219_s29 + $0x968] sm:$0xff]  ;;  %394 = vst [vmem:[%s2224_s30 + $0x318] sm:$0xff] %v393_v35  ;;  %v399_v38 = vld [vmem:[%s2219_s29 + $0x990] sm:$0xff] }
  0x4a   : > { %396 = vst [vmem:[%s2224_s30 + $0x320] sm:$0xff] %v395_v36  ;;  %398 = vst [vmem:[%s2224_s30 + $0x328] sm:$0xff] %v397_v37  ;;  %v401_v39 = vld [vmem:[%s2219_s29 + $0x998] sm:$0xff]  ;;  %v403_v40 = vld [vmem:[%s2219_s29 + $0x9c0] sm:$0xff] }
  0x4b   : > { %400 = vst [vmem:[%s2224_s30 + $0x330] sm:$0xff] %v399_v38  ;;  %402 = vst [vmem:[%s2224_s30 + $0x338] sm:$0xff] %v401_v39  ;;  %v405_v41 = vld [vmem:[%s2219_s29 + $0x9c8] sm:$0xff]  ;;  %v407_v42 = vld [vmem:[%s2219_s29 + $0x9f0] sm:$0xff] }
  0x4c   : > { %404 = vst [vmem:[%s2224_s30 + $0x340] sm:$0xff] %v403_v40  ;;  %v409_v43 = vld [vmem:[%s2219_s29 + $0x9f8] sm:$0xff]  ;;  %406 = vst [vmem:[%s2224_s30 + $0x348] sm:$0xff] %v405_v41  ;;  %v411_v44 = vld [vmem:[%s2219_s29 + $0xa20] sm:$0xff] }
  0x4d   : > { %408 = vst [vmem:[%s2224_s30 + $0x350] sm:$0xff] %v407_v42  ;;  %410 = vst [vmem:[%s2224_s30 + $0x358] sm:$0xff] %v409_v43  ;;  %v413_v45 = vld [vmem:[%s2219_s29 + $0xa28] sm:$0xff]  ;;  %v415_v46 = vld [vmem:[%s2219_s29 + $0xa50] sm:$0xff] }
  0x4e   : > { %412 = vst [vmem:[%s2224_s30 + $0x360] sm:$0xff] %v411_v44  ;;  %414 = vst [vmem:[%s2224_s30 + $0x368] sm:$0xff] %v413_v45  ;;  %v417_v47 = vld [vmem:[%s2219_s29 + $0xa58] sm:$0xff]  ;;  %v419_v48 = vld [vmem:[%s2219_s29 + $0xa80] sm:$0xff] }
  0x4f   : > { %416 = vst [vmem:[%s2224_s30 + $0x370] sm:$0xff] %v415_v46  ;;  %v421_v49 = vld [vmem:[%s2219_s29 + $0xa88] sm:$0xff]  ;;  %418 = vst [vmem:[%s2224_s30 + $0x378] sm:$0xff] %v417_v47  ;;  %v423_v50 = vld [vmem:[%s2219_s29 + $0xab0] sm:$0xff] }
  0x50   : > { %420 = vst [vmem:[%s2224_s30 + $0x380] sm:$0xff] %v419_v48  ;;  %422 = vst [vmem:[%s2224_s30 + $0x388] sm:$0xff] %v421_v49  ;;  %v425_v51 = vld [vmem:[%s2219_s29 + $0xab8] sm:$0xff]  ;;  %v427_v52 = vld [vmem:[%s2219_s29 + $0xae0] sm:$0xff] }
  0x51   : > { %424 = vst [vmem:[%s2224_s30 + $0x390] sm:$0xff] %v423_v50  ;;  %426 = vst [vmem:[%s2224_s30 + $0x398] sm:$0xff] %v425_v51  ;;  %v429_v53 = vld [vmem:[%s2219_s29 + $0xae8] sm:$0xff]  ;;  %v431_v54 = vld [vmem:[%s2219_s29 + $0xb10] sm:$0xff] }
  0x52   : > { %428 = vst [vmem:[%s2224_s30 + $0x3a0] sm:$0xff] %v427_v52  ;;  %v433_v55 = vld [vmem:[%s2219_s29 + $0xb18] sm:$0xff]  ;;  %430 = vst [vmem:[%s2224_s30 + $0x3a8] sm:$0xff] %v429_v53  ;;  %v435_v56 = vld [vmem:[%s2219_s29 + $0xb40] sm:$0xff] }
  0x53   : > { %432 = vst [vmem:[%s2224_s30 + $0x3b0] sm:$0xff] %v431_v54  ;;  %434 = vst [vmem:[%s2224_s30 + $0x3b8] sm:$0xff] %v433_v55  ;;  %v437_v57 = vld [vmem:[%s2219_s29 + $0xb48] sm:$0xff]  ;;  %v439_v58 = vld [vmem:[%s2219_s29 + $0xb70] sm:$0xff] }
  0x54   : > { %436 = vst [vmem:[%s2224_s30 + $0x3c0] sm:$0xff] %v435_v56  ;;  %438 = vst [vmem:[%s2224_s30 + $0x3c8] sm:$0xff] %v437_v57  ;;  %v441_v59 = vld [vmem:[%s2219_s29 + $0xb78] sm:$0xff]  ;;  %v443_v60 = vld [vmem:[%s2219_s29 + $0xba0] sm:$0xff] }
  0x55   : > { %440 = vst [vmem:[%s2224_s30 + $0x3d0] sm:$0xff] %v439_v58  ;;  %v445_v61 = vld [vmem:[%s2219_s29 + $0xba8] sm:$0xff]  ;;  %442 = vst [vmem:[%s2224_s30 + $0x3d8] sm:$0xff] %v441_v59  ;;  %v447_v62 = vld [vmem:[%s2219_s29 + $0xbd0] sm:$0xff] }
  0x56   : > { %444 = vst [vmem:[%s2224_s30 + $0x3e0] sm:$0xff] %v443_v60  ;;  %446 = vst [vmem:[%s2224_s30 + $0x3e8] sm:$0xff] %v445_v61  ;;  %v449_v63 = vld [vmem:[%s2219_s29 + $0xbd8] sm:$0xff] }
  0x57   : > { %448 = vst [vmem:[%s2224_s30 + $0x3f0] sm:$0xff] %v447_v62  ;;  %450 = vst [vmem:[%s2224_s30 + $0x3f8] sm:$0xff] %v449_v63 }
  0x58 PF: > { %p1686_p7 = scmp.ge.s32.totalorder %s2140_s18, 1  ;;  %p463_p8 = scmp.lt.s32.totalorder %s2140_s18, 7 }
  0x5a   : > { %p464_p9 = pnand %p1686_p7, %p463_p8 }
  0x5b   : > { %s470_s4 = sand.u32 (!%p464_p9), 1, %s2116_s12   ;;  %p511_p10 = scmp.lt.s32.totalorder (!%p464_p9), %s2128_s15, 1 }
  0x5c   : > { %467 = sbr.rel (%p464_p9) target bundleno = 444 (0x1bc), region = 51  ;;  %s1687_s5 = sshll.u32 (!%p464_p9), %s470_s4, 10 }
  0x5d   : > { %s2482_s6 = scalar_lea.vmem (!%p464_p9), [#allocation3], %s1687_s5  ;;  %s1690_s11 = sshll.u32 (!%p464_p9), %s2124_s14, 2 }
  0x5e   : > { %v1890_v0 = vld [vmem:[%s2482_s6 + $0x4] ss:$16 sps:$4 sm:$0xff] (!%p464_p9)   ;;  %v1894_v2 = vld [vmem:[%s2482_s6] ss:$16 sps:$4 sm:$0xff] (!%p464_p9)   ;;  %p523_p11 = scmp.lt.s32.totalorder (!%p464_p9), %s1690_s11, 11 }
  0x5f   : > { %v1892_v1 = vld [vmem:[%s2482_s6 + $0x204] ss:$16 sps:$4 sm:$0xff] (!%p464_p9)   ;;  %1333 = vmatprep.subr.bf16.mxu0 (!%p464_p9), %v1890_v0  ;;  %v1895_v3 = vld [vmem:[%s2482_s6 + $0x200] ss:$16 sps:$4 sm:$0xff] (!%p464_p9)  }
  0x60   : > { %1374 = vmatprep.subr.bf16.mxu1 (!%p464_p9), %v1892_v1  ;;  %v1896_v4 = vld [vmem:[%s2482_s6 + $0x24] ss:$16 sps:$4 sm:$0xff] (!%p464_p9)   ;;  %1334 = vmatpush1.bf16.msra.mxu0 (!%p464_p9), %v1894_v2  ;;  %v1900_v6 = vld [vmem:[%s2482_s6 + $0x20] ss:$16 sps:$4 sm:$0xff] (!%p464_p9)  }
  0x61   : > { %1375 = vmatpush1.bf16.msra.mxu1 (!%p464_p9), %v1895_v3  ;;  %v1898_v5 = vld [vmem:[%s2482_s6 + $0x224] ss:$16 sps:$4 sm:$0xff] (!%p464_p9)   ;;  %1335 = vmatprep.subr.bf16.mxu0 (!%p464_p9), %v1896_v4  ;;  %v1901_v7 = vld [vmem:[%s2482_s6 + $0x220] ss:$16 sps:$4 sm:$0xff] (!%p464_p9)   ;;  %v1992_v4 = vld [vmem:[%s2482_s6 + $0xc] ss:$16 sps:$4 sm:$0xff] (!%p464_p9)  }
  0x62   : > { %1376 = vmatprep.subr.bf16.mxu1 (!%p464_p9), %v1898_v5  ;;  %v1902_v8 = vld [vmem:[%s2482_s6 + $0x44] ss:$16 sps:$4 sm:$0xff] (!%p464_p9)   ;;  %v1906_v10 = vld [vmem:[%s2482_s6 + $0x40] ss:$16 sps:$4 sm:$0xff] (!%p464_p9)   ;;  %v1995_v5 = vld [vmem:[%s2482_s6 + $0x20c] ss:$16 sps:$4 sm:$0xff] (!%p464_p9)  }
  0x63   : > { %v1904_v9 = vld [vmem:[%s2482_s6 + $0x244] ss:$16 sps:$4 sm:$0xff]   ;;  %v1907_v11 = vld [vmem:[%s2482_s6 + $0x240] ss:$16 sps:$4 sm:$0xff]   ;;  %s2678_s15 = smov (!%p511_p10, %s2128_s15), 1  ;;  %s2680_s11 = smov (!%p523_p11, %s1690_s11), 11 }
  0x64   : > { %1336 = vmatpush1.bf16.msra.mxu0 %v1900_v6  ;;  %v1908_v12 = vld [vmem:[%s2482_s6 + $0x64] ss:$16 sps:$4 sm:$0xff]   ;;  %v1912_v14 = vld [vmem:[%s2482_s6 + $0x60] ss:$16 sps:$4 sm:$0xff]   ;;  %s1830_s7 = sshll.u32 %s2678_s15, 4  ;;  %s525_s22 = scalar_lea.vmem %s2663_s2, %s2680_s11 }
  0x65   : > { %1377 = vmatpush1.bf16.msra.mxu1 %v1901_v7  ;;  %1337 = vmatprep.subr.bf16.mxu0 %v1902_v8  ;;  %v1910_v13 = vld [vmem:[%s2482_s6 + $0x264] ss:$16 sps:$4 sm:$0xff]   ;;  %v1913_v15 = vld [vmem:[%s2482_s6 + $0x260] ss:$16 sps:$4 sm:$0xff]   ;;  %s518_s10 = scalar_lea.vmem %s2661_s0, %s1830_s7  ;;  %v1990_v8 = vld [vmem:[%s2482_s6 + $0x8] ss:$16 sps:$4 sm:$0xff]  }
  0x66   : > { %1378 = vmatprep.subr.bf16.mxu1 %v1904_v9  ;;  %v1914_v16 = vld [vmem:[%s2482_s6 + $0x84] ss:$16 sps:$4 sm:$0xff]   ;;  %v1918_v18 = vld [vmem:[%s2482_s6 + $0x80] ss:$16 sps:$4 sm:$0xff]   ;;  %v550_v48 = vld [vmem:[%s518_s10 + $0x8] sm:$0xff]  ;;  %s1833_s24 = smul.u32 12, %s2678_s15 }
  0x67   : > { %v1916_v17 = vld [vmem:[%s2482_s6 + $0x284] ss:$16 sps:$4 sm:$0xff]   ;;  %v1919_v19 = vld [vmem:[%s2482_s6 + $0x280] ss:$16 sps:$4 sm:$0xff]   ;;  %v1696_v51 = vcombine.high %v550_v48, %v550_v48  ;;  %v2563_v7 = vcombine.low %v550_v48, %v550_v48  ;;  %v1993_v9 = vld [vmem:[%s2482_s6 + $0x208] ss:$16 sps:$4 sm:$0xff]  }
  0x68   : > { %1338 = vmatpush1.bf16.msra.mxu0 %v1906_v10  ;;  %v1920_v20 = vld [vmem:[%s2482_s6 + $0xa4] ss:$16 sps:$4 sm:$0xff]   ;;  %v1924_v22 = vld [vmem:[%s2482_s6 + $0xa0] ss:$16 sps:$4 sm:$0xff]   ;;  %v1998_v10 = vld [vmem:[%s2482_s6 + $0x2c] ss:$16 sps:$4 sm:$0xff]   ;;  %s533_s25 = sadd.s32 %s1833_s24, %s2680_s11 }
  0x69   : > { %1379 = vmatpush1.bf16.msra.mxu1 %v1907_v11  ;;  %1339 = vmatprep.subr.bf16.mxu0 %v1908_v12  ;;  %v1922_v21 = vld [vmem:[%s2482_s6 + $0x2a4] ss:$16 sps:$4 sm:$0xff]   ;;  %v1925_v23 = vld [vmem:[%s2482_s6 + $0x2a0] ss:$16 sps:$4 sm:$0xff]   ;;  %v2001_v11 = vld [vmem:[%s2482_s6 + $0x22c] ss:$16 sps:$4 sm:$0xff]  }
  0x6a   : > { %1380 = vmatprep.subr.bf16.mxu1 %v1910_v13  ;;  %v1926_v24 = vld [vmem:[%s2482_s6 + $0xc4] ss:$16 sps:$4 sm:$0xff]   ;;  %v1930_v26 = vld [vmem:[%s2482_s6 + $0xc0] ss:$16 sps:$4 sm:$0xff]   ;;  %1406 = vmatprep.mubr.bf16.mxu1 %v1696_v51  ;;  %v1996_v12 = vld [vmem:[%s2482_s6 + $0x28] ss:$16 sps:$4 sm:$0xff]  }
  0x6b   : > { %v1928_v25 = vld [vmem:[%s2482_s6 + $0x2c4] ss:$16 sps:$4 sm:$0xff]   ;;  %v1931_v27 = vld [vmem:[%s2482_s6 + $0x2c0] ss:$16 sps:$4 sm:$0xff]   ;;  %v1999_v13 = vld [vmem:[%s2482_s6 + $0x228] ss:$16 sps:$4 sm:$0xff]  }
  0x6c   : > { %1340 = vmatpush1.bf16.msra.mxu0 %v1912_v14  ;;  %v1932_v28 = vld [vmem:[%s2482_s6 + $0xe4] ss:$16 sps:$4 sm:$0xff]   ;;  %v1936_v30 = vld [vmem:[%s2482_s6 + $0xe0] ss:$16 sps:$4 sm:$0xff]   ;;  %v2004_v14 = vld [vmem:[%s2482_s6 + $0x4c] ss:$16 sps:$4 sm:$0xff]  }
  0x6d   : > { %1381 = vmatpush1.bf16.msra.mxu1 %v1913_v15  ;;  %1341 = vmatprep.subr.bf16.mxu0 %v1914_v16  ;;  %v1934_v29 = vld [vmem:[%s2482_s6 + $0x2e4] ss:$16 sps:$4 sm:$0xff]   ;;  %v1937_v31 = vld [vmem:[%s2482_s6 + $0x2e0] ss:$16 sps:$4 sm:$0xff]   ;;  %v2007_v15 = vld [vmem:[%s2482_s6 + $0x24c] ss:$16 sps:$4 sm:$0xff]  }
  0x6e   : > { %1382 = vmatprep.subr.bf16.mxu1 %v1916_v17  ;;  %v1938_v32 = vld [vmem:[%s2482_s6 + $0x104] ss:$16 sps:$4 sm:$0xff]   ;;  %v1942_v34 = vld [vmem:[%s2482_s6 + $0x100] ss:$16 sps:$4 sm:$0xff]   ;;  %v2002_v16 = vld [vmem:[%s2482_s6 + $0x48] ss:$16 sps:$4 sm:$0xff]  }
  0x6f   : > { %v1940_v33 = vld [vmem:[%s2482_s6 + $0x304] ss:$16 sps:$4 sm:$0xff]   ;;  %v1943_v35 = vld [vmem:[%s2482_s6 + $0x300] ss:$16 sps:$4 sm:$0xff]   ;;  %v2005_v17 = vld [vmem:[%s2482_s6 + $0x248] ss:$16 sps:$4 sm:$0xff]  }
  0x70   : > { %1342 = vmatpush1.bf16.msra.mxu0 %v1918_v18  ;;  %v1944_v36 = vld [vmem:[%s2482_s6 + $0x124] ss:$16 sps:$4 sm:$0xff]   ;;  %v1948_v38 = vld [vmem:[%s2482_s6 + $0x120] ss:$16 sps:$4 sm:$0xff]   ;;  %v2010_v18 = vld [vmem:[%s2482_s6 + $0x6c] ss:$16 sps:$4 sm:$0xff]  }
  0x71   : > { %1383 = vmatpush1.bf16.msra.mxu1 %v1919_v19  ;;  %1343 = vmatprep.subr.bf16.mxu0 %v1920_v20  ;;  %v1946_v37 = vld [vmem:[%s2482_s6 + $0x324] ss:$16 sps:$4 sm:$0xff]   ;;  %v1949_v39 = vld [vmem:[%s2482_s6 + $0x320] ss:$16 sps:$4 sm:$0xff]   ;;  %v2013_v19 = vld [vmem:[%s2482_s6 + $0x26c] ss:$16 sps:$4 sm:$0xff]  }
  0x72   : > { %1384 = vmatprep.subr.bf16.mxu1 %v1922_v21  ;;  %v1950_v40 = vld [vmem:[%s2482_s6 + $0x144] ss:$16 sps:$4 sm:$0xff]   ;;  %v1954_v42 = vld [vmem:[%s2482_s6 + $0x140] ss:$16 sps:$4 sm:$0xff]   ;;  %v2008_v20 = vld [vmem:[%s2482_s6 + $0x68] ss:$16 sps:$4 sm:$0xff]  }
  0x73   : > { %v1952_v41 = vld [vmem:[%s2482_s6 + $0x344] ss:$16 sps:$4 sm:$0xff]   ;;  %v1955_v43 = vld [vmem:[%s2482_s6 + $0x340] ss:$16 sps:$4 sm:$0xff]   ;;  %v2011_v21 = vld [vmem:[%s2482_s6 + $0x268] ss:$16 sps:$4 sm:$0xff]  }
  0x74   : > { %1344 = vmatpush1.bf16.msra.mxu0 %v1924_v22  ;;  %v1956_v44 = vld [vmem:[%s2482_s6 + $0x164] ss:$16 sps:$4 sm:$0xff]   ;;  %v1960_v49 = vld [vmem:[%s2482_s6 + $0x160] ss:$16 sps:$4 sm:$0xff]   ;;  %v2016_v22 = vld [vmem:[%s2482_s6 + $0x8c] ss:$16 sps:$4 sm:$0xff]  }
  0x75   : > { %1385 = vmatpush1.bf16.msra.mxu1 %v1925_v23  ;;  %1345 = vmatprep.subr.bf16.mxu0 %v1926_v24  ;;  %v1958_v45 = vld [vmem:[%s2482_s6 + $0x364] ss:$16 sps:$4 sm:$0xff]   ;;  %v1961_v50 = vld [vmem:[%s2482_s6 + $0x360] ss:$16 sps:$4 sm:$0xff]   ;;  %v2019_v23 = vld [vmem:[%s2482_s6 + $0x28c] ss:$16 sps:$4 sm:$0xff]  }
  0x76   : > { %1386 = vmatprep.subr.bf16.mxu1 %v1928_v25  ;;  %v549_v46 = vld [vmem:[%s518_s10] sm:$0xff]  ;;  %v2014_v24 = vld [vmem:[%s2482_s6 + $0x88] ss:$16 sps:$4 sm:$0xff]   ;;  %s1692_s14 = sshll.u32 %s533_s25, 2 }
  0x77   : > { %v2538_v47 = vcombine.high %v549_v46, %v549_v46  ;;  %v1962_v52 = vld [vmem:[%s2482_s6 + $0x184] ss:$16 sps:$4 sm:$0xff]   ;;  %v1966_v54 = vld [vmem:[%s2482_s6 + $0x180] ss:$16 sps:$4 sm:$0xff]   ;;  %v2561_v6 = vcombine.low %v549_v46, %v549_v46  ;;  %v2017_v25 = vld [vmem:[%s2482_s6 + $0x288] ss:$16 sps:$4 sm:$0xff]   ;;  %s535_s27 = scalar_lea.vmem %s2664_s3, %s1692_s14 }
  0x78   : > { %1346 = vmatpush1.bf16.msra.mxu0 %v1930_v26  ;;  %v1964_v53 = vld [vmem:[%s2482_s6 + $0x384] ss:$16 sps:$4 sm:$0xff]   ;;  %v1967_v55 = vld [vmem:[%s2482_s6 + $0x380] ss:$16 sps:$4 sm:$0xff]   ;;  %v2022_v26 = vld [vmem:[%s2482_s6 + $0xac] ss:$16 sps:$4 sm:$0xff]  }
  0x79   : > { %1387 = vmatpush1.bf16.msra.mxu1 %v1931_v27  ;;  %1347 = vmatprep.subr.bf16.mxu0 %v1932_v28  ;;  %v1968_v56 = vld [vmem:[%s2482_s6 + $0x1a4] ss:$16 sps:$4 sm:$0xff]   ;;  %v1972_v58 = vld [vmem:[%s2482_s6 + $0x1a0] ss:$16 sps:$4 sm:$0xff]   ;;  %v2025_v27 = vld [vmem:[%s2482_s6 + $0x2ac] ss:$16 sps:$4 sm:$0xff]  }
  0x7a   : > { %1388 = vmatprep.subr.bf16.mxu1 %v1934_v29  ;;  %1365 = vmatprep.mubr.bf16.mxu0 %v2538_v47  ;;  %v1970_v57 = vld [vmem:[%s2482_s6 + $0x3a4] ss:$16 sps:$4 sm:$0xff]   ;;  %v1973_v59 = vld [vmem:[%s2482_s6 + $0x3a0] ss:$16 sps:$4 sm:$0xff]   ;;  %v2020_v28 = vld [vmem:[%s2482_s6 + $0xa8] ss:$16 sps:$4 sm:$0xff]  }
  0x7b   : > { %v1974_v60 = vld [vmem:[%s2482_s6 + $0x1c4] ss:$16 sps:$4 sm:$0xff]   ;;  %v1978_v62 = vld [vmem:[%s2482_s6 + $0x1c0] ss:$16 sps:$4 sm:$0xff]   ;;  %v2023_v29 = vld [vmem:[%s2482_s6 + $0x2a8] ss:$16 sps:$4 sm:$0xff]  }
  0x7c   : > { %1348 = vmatpush1.bf16.msra.mxu0 %v1936_v30  ;;  %v1976_v61 = vld [vmem:[%s2482_s6 + $0x3c4] ss:$16 sps:$4 sm:$0xff]   ;;  %v1979_v63 = vld [vmem:[%s2482_s6 + $0x3c0] ss:$16 sps:$4 sm:$0xff]   ;;  %v2028_v30 = vld [vmem:[%s2482_s6 + $0xcc] ss:$16 sps:$4 sm:$0xff]  }
  0x7d   : > { %1389 = vmatpush1.bf16.msra.mxu1 %v1937_v31  ;;  %1349 = vmatprep.subr.bf16.mxu0 %v1938_v32  ;;  %v1980_v0 = vld [vmem:[%s2482_s6 + $0x1e4] ss:$16 sps:$4 sm:$0xff]   ;;  %v1984_v2 = vld [vmem:[%s2482_s6 + $0x1e0] ss:$16 sps:$4 sm:$0xff]   ;;  %v2031_v31 = vld [vmem:[%s2482_s6 + $0x2cc] ss:$16 sps:$4 sm:$0xff]  }
  0x7e   : > { %1390 = vmatprep.subr.bf16.mxu1 %v1940_v33  ;;  %v1982_v1 = vld [vmem:[%s2482_s6 + $0x3e4] ss:$16 sps:$4 sm:$0xff]   ;;  %v1985_v3 = vld [vmem:[%s2482_s6 + $0x3e0] ss:$16 sps:$4 sm:$0xff]   ;;  %v2026_v32 = vld [vmem:[%s2482_s6 + $0xc8] ss:$16 sps:$4 sm:$0xff]  }
  0x7f   : > { %v2029_v33 = vld [vmem:[%s2482_s6 + $0x2c8] ss:$16 sps:$4 sm:$0xff]   ;;  %v2052_v46 = vld [vmem:[%s2482_s6 + $0x14c] ss:$16 sps:$4 sm:$0xff]  }
  0x80   : > { %1350 = vmatpush1.bf16.msra.mxu0 %v1942_v34  ;;  %v2034_v34 = vld [vmem:[%s2482_s6 + $0xec] ss:$16 sps:$4 sm:$0xff]   ;;  %v2050_v48 = vld [vmem:[%s2482_s6 + $0x148] ss:$16 sps:$4 sm:$0xff]  }
  0x81   : > { %1391 = vmatpush1.bf16.msra.mxu1 %v1943_v35  ;;  %1351 = vmatprep.subr.bf16.mxu0 %v1944_v36  ;;  %v2037_v35 = vld [vmem:[%s2482_s6 + $0x2ec] ss:$16 sps:$4 sm:$0xff]   ;;  %v2032_v36 = vld [vmem:[%s2482_s6 + $0xe8] ss:$16 sps:$4 sm:$0xff]  }
  0x82   : > { %1392 = vmatprep.subr.bf16.mxu1 %v1946_v37  ;;  %v2035_v37 = vld [vmem:[%s2482_s6 + $0x2e8] ss:$16 sps:$4 sm:$0xff]  }
  0x84   : > { %1352 = vmatpush1.bf16.msra.mxu0 %v1948_v38  ;;  %v2040_v38 = vld [vmem:[%s2482_s6 + $0x10c] ss:$16 sps:$4 sm:$0xff]  }
  0x85   : > { %1393 = vmatpush1.bf16.msra.mxu1 %v1949_v39  ;;  %1353 = vmatprep.subr.bf16.mxu0 %v1950_v40  ;;  %v2043_v39 = vld [vmem:[%s2482_s6 + $0x30c] ss:$16 sps:$4 sm:$0xff]   ;;  %v2038_v40 = vld [vmem:[%s2482_s6 + $0x108] ss:$16 sps:$4 sm:$0xff]  }
  0x86   : > { %1394 = vmatprep.subr.bf16.mxu1 %v1952_v41  ;;  %v2041_v41 = vld [vmem:[%s2482_s6 + $0x308] ss:$16 sps:$4 sm:$0xff]  }
  0x88   : > { %1354 = vmatpush1.bf16.msra.mxu0 %v1954_v42  ;;  %v2046_v42 = vld [vmem:[%s2482_s6 + $0x12c] ss:$16 sps:$4 sm:$0xff]  }
  0x89   : > { %1395 = vmatpush1.bf16.msra.mxu1 %v1955_v43  ;;  %1355 = vmatprep.subr.bf16.mxu0 %v1956_v44  ;;  %v2049_v43 = vld [vmem:[%s2482_s6 + $0x32c] ss:$16 sps:$4 sm:$0xff]   ;;  %v2044_v44 = vld [vmem:[%s2482_s6 + $0x128] ss:$16 sps:$4 sm:$0xff]  }
  0x8a   : > { %1396 = vmatprep.subr.bf16.mxu1 %v1958_v45  ;;  %v2047_v45 = vld [vmem:[%s2482_s6 + $0x328] ss:$16 sps:$4 sm:$0xff]  }
  0x8c   : > { %1356 = vmatpush1.bf16.msra.mxu0 %v1960_v49  ;;  %v2053_v49 = vld [vmem:[%s2482_s6 + $0x348] ss:$16 sps:$4 sm:$0xff]  }
  0x8d   : > { %1397 = vmatpush1.bf16.msra.mxu1 %v1961_v50  ;;  %1357 = vmatprep.subr.bf16.mxu0 %v1962_v52  ;;  %v2058_v50 = vld [vmem:[%s2482_s6 + $0x16c] ss:$16 sps:$4 sm:$0xff]   ;;  %v2056_v52 = vld [vmem:[%s2482_s6 + $0x168] ss:$16 sps:$4 sm:$0xff]  }
  0x8e   : > { %1398 = vmatprep.subr.bf16.mxu1 %v1964_v53  ;;  %v2059_v53 = vld [vmem:[%s2482_s6 + $0x368] ss:$16 sps:$4 sm:$0xff]  }
  0x90   : > { %1358 = vmatpush1.bf16.msra.mxu0 %v1966_v54  ;;  %v2064_v54 = vld [vmem:[%s2482_s6 + $0x18c] ss:$16 sps:$4 sm:$0xff]  }
  0x91   : > { %1399 = vmatpush1.bf16.msra.mxu1 %v1967_v55  ;;  %1359 = vmatprep.subr.bf16.mxu0 %v1968_v56  ;;  %v2067_v55 = vld [vmem:[%s2482_s6 + $0x38c] ss:$16 sps:$4 sm:$0xff]   ;;  %v2062_v56 = vld [vmem:[%s2482_s6 + $0x188] ss:$16 sps:$4 sm:$0xff]  }
  0x92   : > { %1400 = vmatprep.subr.bf16.mxu1 %v1970_v57  ;;  %v2065_v57 = vld [vmem:[%s2482_s6 + $0x388] ss:$16 sps:$4 sm:$0xff]  }
  0x94   : > { %1360 = vmatpush1.bf16.msra.mxu0 %v1972_v58  ;;  %v2070_v58 = vld [vmem:[%s2482_s6 + $0x1ac] ss:$16 sps:$4 sm:$0xff]  }
  0x95   : > { %1401 = vmatpush1.bf16.msra.mxu1 %v1973_v59  ;;  %1361 = vmatprep.subr.bf16.mxu0 %v1974_v60  ;;  %v2073_v59 = vld [vmem:[%s2482_s6 + $0x3ac] ss:$16 sps:$4 sm:$0xff]   ;;  %v2068_v60 = vld [vmem:[%s2482_s6 + $0x1a8] ss:$16 sps:$4 sm:$0xff]  }
  0x96   : > { %1402 = vmatprep.subr.bf16.mxu1 %v1976_v61  ;;  %v2071_v61 = vld [vmem:[%s2482_s6 + $0x3a8] ss:$16 sps:$4 sm:$0xff]  }
  0x98   : > { %1362 = vmatpush1.bf16.msra.mxu0 %v1978_v62  ;;  %v2076_v62 = vld [vmem:[%s2482_s6 + $0x1cc] ss:$16 sps:$4 sm:$0xff]  }
  0x99   : > { %1403 = vmatpush1.bf16.msra.mxu1 %v1979_v63  ;;  %1363 = vmatprep.subr.bf16.mxu0 %v1980_v0  ;;  %v2079_v63 = vld [vmem:[%s2482_s6 + $0x3cc] ss:$16 sps:$4 sm:$0xff]   ;;  %v2074_v0 = vld [vmem:[%s2482_s6 + $0x1c8] ss:$16 sps:$4 sm:$0xff]  }
  0x9a   : > { %1404 = vmatprep.subr.bf16.mxu1 %v1982_v1  ;;  %v2077_v1 = vld [vmem:[%s2482_s6 + $0x3c8] ss:$16 sps:$4 sm:$0xff]  }
  0x9c   : > { %1364 = vmatpush1.bf16.msra.mxu0 %v1984_v2  ;;  %v2082_v2 = vld [vmem:[%s2482_s6 + $0x1ec] ss:$16 sps:$4 sm:$0xff]  }
  0x9d   : > { %1405 = vmatpush1.bf16.msra.mxu1 %v1985_v3  ;;  %1415 = vmatprep.subr.bf16.mxu0 %v1992_v4  ;;  %v2085_v3 = vld [vmem:[%s2482_s6 + $0x3ec] ss:$16 sps:$4 sm:$0xff]   ;;  %v2080_v4 = vld [vmem:[%s2482_s6 + $0x1e8] ss:$16 sps:$4 sm:$0xff]  }
  0x9e   : > { %1456 = vmatprep.subr.bf16.mxu1 %v1995_v5  ;;  %v2083_v5 = vld [vmem:[%s2482_s6 + $0x3e8] ss:$16 sps:$4 sm:$0xff]  }
  0x9f   : > { %1366 = vmatmul.mubr.bf16.vlgmr.msra.gmra.mrb[0].mxu0 %v2561_v6 }
  0xa0   : > { %1407 = vmatmul.mubr.bf16.vlgmr.msra.gmra.mrb[0].mxu1 %v2563_v7  ;;  %1416 = vmatpush1.bf16.msra.mxu0 %v1990_v8  ;;  %v1514_v8 = vlaneseq }
  0xa1   : > { %1457 = vmatpush1.bf16.msra.mxu1 %v1993_v9  ;;  %1417 = vmatprep.subr.bf16.mxu0 %v1998_v10 }
  0xa2   : > { %1458 = vmatprep.subr.bf16.mxu1 %v2001_v11  ;;  %1447 = vmatprep.mubr.bf16.mxu0 %v2538_v47  ;;  %v2055_v47 = vld [vmem:[%s2482_s6 + $0x34c] ss:$16 sps:$4 sm:$0xff]   ;;  %v1515_v9 = vshrl.u32 %v1514_v8, 7  ;;  %v1512_v11 = vld [vmem:[%s525_s22] sm:$0xf] }
  0xa3   : > { %1488 = vmatprep.mubr.bf16.mxu1 %v1696_v51  ;;  %v2061_v51 = vld [vmem:[%s2482_s6 + $0x36c] ss:$16 sps:$4 sm:$0xff]  }
  0xa4   : > { %1418 = vmatpush1.bf16.msra.mxu0 %v1996_v12  ;;  %v1524_v10 = vsub.s32 2, %v1515_v9  ;;  %v1528_v12 = vsub.s32 3, %v1515_v9 }
  0xa5   : > { %1459 = vmatpush1.bf16.msra.mxu1 %v1999_v13  ;;  %1419 = vmatprep.subr.bf16.mxu0 %v2004_v14 }
  0xa6   : > { %1460 = vmatprep.subr.bf16.mxu1 %v2007_v15  ;;  %v1525_v13 = vrot.slane %v1512_v11, %v1524_v10  ;;  %v1529_v14 = vrot.slane %v1512_v11, %v1528_v12  ;;  %v1516_v15 = vsub.s32 0, %v1515_v9 }
  0xa8   : > { %1420 = vmatpush1.bf16.msra.mxu0 %v2002_v16  ;;  %v1520_v16 = vsub.s32 1, %v1515_v9 }
  0xa9   : > { %1461 = vmatpush1.bf16.msra.mxu1 %v2005_v17  ;;  %1421 = vmatprep.subr.bf16.mxu0 %v2010_v18 }
  0xaa   : > { %1462 = vmatprep.subr.bf16.mxu1 %v2013_v19  ;;  %v1521_v18 = vrot.slane %v1512_v11, %v1520_v16 }
  0xac   : > { %1422 = vmatpush1.bf16.msra.mxu0 %v2008_v20 }
  0xad   : > { %1463 = vmatpush1.bf16.msra.mxu1 %v2011_v21  ;;  %1423 = vmatprep.subr.bf16.mxu0 %v2016_v22 }
  0xae   : > { %1464 = vmatprep.subr.bf16.mxu1 %v2019_v23 }
  0xb0   : > { %1424 = vmatpush1.bf16.msra.mxu0 %v2014_v24 }
  0xb1   : > { %1465 = vmatpush1.bf16.msra.mxu1 %v2017_v25  ;;  %1425 = vmatprep.subr.bf16.mxu0 %v2022_v26 }
  0xb2   : > { %1466 = vmatprep.subr.bf16.mxu1 %v2025_v27 }
  0xb4   : > { %1426 = vmatpush1.bf16.msra.mxu0 %v2020_v28 }
  0xb5   : > { %1467 = vmatpush1.bf16.msra.mxu1 %v2023_v29  ;;  %1427 = vmatprep.subr.bf16.mxu0 %v2028_v30 }
  0xb6   : > { %1468 = vmatprep.subr.bf16.mxu1 %v2031_v31 }
  0xb8   : > { %1428 = vmatpush1.bf16.msra.mxu0 %v2026_v32 }
  0xb9   : > { %1469 = vmatpush1.bf16.msra.mxu1 %v2029_v33  ;;  %1429 = vmatprep.subr.bf16.mxu0 %v2034_v34 }
  0xba   : > { %1470 = vmatprep.subr.bf16.mxu1 %v2037_v35 }
  0xbc   : > { %1430 = vmatpush1.bf16.msra.mxu0 %v2032_v36 }
  0xbd   : > { %1471 = vmatpush1.bf16.msra.mxu1 %v2035_v37  ;;  %1431 = vmatprep.subr.bf16.mxu0 %v2040_v38 }
  0xbe   : > { %1472 = vmatprep.subr.bf16.mxu1 %v2043_v39 }
  0xc0   : > { %1432 = vmatpush1.bf16.msra.mxu0 %v2038_v40 }
  0xc1   : > { %1473 = vmatpush1.bf16.msra.mxu1 %v2041_v41  ;;  %1433 = vmatprep.subr.bf16.mxu0 %v2046_v42 }
  0xc2   : > { %1474 = vmatprep.subr.bf16.mxu1 %v2049_v43 }
  0xc4   : > { %1434 = vmatpush1.bf16.msra.mxu0 %v2044_v44 }
  0xc5   : > { %1475 = vmatpush1.bf16.msra.mxu1 %v2047_v45  ;;  %1435 = vmatprep.subr.bf16.mxu0 %v2052_v46 }
  0xc6   : > { %1476 = vmatprep.subr.bf16.mxu1 %v2055_v47 }
  0xc8   : > { %1436 = vmatpush1.bf16.msra.mxu0 %v2050_v48 }
  0xc9   : > { %1477 = vmatpush1.bf16.msra.mxu1 %v2053_v49  ;;  %1437 = vmatprep.subr.bf16.mxu0 %v2058_v50 }
  0xca   : > { %1478 = vmatprep.subr.bf16.mxu1 %v2061_v51 }
  0xcc   : > { %1438 = vmatpush1.bf16.msra.mxu0 %v2056_v52 }
  0xcd   : > { %1479 = vmatpush1.bf16.msra.mxu1 %v2059_v53  ;;  %1439 = vmatprep.subr.bf16.mxu0 %v2064_v54 }
  0xce   : > { %1480 = vmatprep.subr.bf16.mxu1 %v2067_v55 }
  0xd0   : > { %1440 = vmatpush1.bf16.msra.mxu0 %v2062_v56 }
  0xd1   : > { %1481 = vmatpush1.bf16.msra.mxu1 %v2065_v57  ;;  %1441 = vmatprep.subr.bf16.mxu0 %v2070_v58 }
  0xd2   : > { %1482 = vmatprep.subr.bf16.mxu1 %v2073_v59 }
  0xd4   : > { %1442 = vmatpush1.bf16.msra.mxu0 %v2068_v60 }
  0xd5   : > { %1483 = vmatpush1.bf16.msra.mxu1 %v2071_v61  ;;  %1443 = vmatprep.subr.bf16.mxu0 %v2076_v62 }
  0xd6   : > { %1484 = vmatprep.subr.bf16.mxu1 %v2079_v63 }
  0xd8   : > { %1444 = vmatpush1.bf16.msra.mxu0 %v2074_v0 }
  0xd9   : > { %1485 = vmatpush1.bf16.msra.mxu1 %v2077_v1  ;;  %1445 = vmatprep.subr.bf16.mxu0 %v2082_v2 }
  0xda   : > { %1486 = vmatprep.subr.bf16.mxu1 %v2085_v3 }
  0xdc   : > { %1446 = vmatpush1.bf16.msra.mxu0 %v2080_v4 }
  0xdd   : > { %1487 = vmatpush1.bf16.msra.mxu1 %v2083_v5 }
  0xdf   : > { %1448 = vmatmul.mubr.bf16.vlgmr.msra.gmra.mrb[4].mxu0 %v2561_v6  ;;  %v1517_v6 = vrot.slane %v1512_v11, %v1516_v15 }
  0xe0   : > { %1489 = vmatmul.mubr.bf16.vlgmr.msra.gmra.mrb[4].mxu1 %v2563_v7 }
 0x172   : > { %v1367_v7 = vpop.f32.mrb[0].mxu0 }
 0x173   : > { %v1408_v17 = vpop.f32.mrb[0].mxu1  ;;  %v1369_v20 = vpop.f32.mrb[1].mxu0 }
 0x174   : > { %v1409_v19 = vadd.f32 %v1408_v17, %v1367_v7  ;;  %v1410_v21 = vpop.f32.mrb[1].mxu1  ;;  %v1371_v23 = vpop.f32.mrb[2].mxu0 }
 0x175   : > { %v1411_v22 = vadd.f32 %v1410_v21, %v1369_v20  ;;  %v1412_v24 = vpop.f32.mrb[2].mxu1  ;;  %v1372_v26 = vpop.f32.mrb[3].mxu0 }
 0x176   : > { %v1534_v25 = vadd.f32 %v1517_v6, %v1409_v19  ;;  %v1413_v27 = vpop.f32.mrb[3].mxu1 }
 0x177   : > { %v1535_v28 = vadd.f32 %v1521_v18, %v1411_v22 }
 0x179   : > { %v1831_v29 = vpack.c.bf16 %v1535_v28, %v1534_v25 }
 0x17b   : > { %1554 = vst [vmem:[%s535_s27] sm:$0xff] %v1831_v29 }
 0x1b2   : > { %v1449_v30 = vpop.f32.mrb[4].mxu0 }
 0x1b3   : > { %v1490_v31 = vpop.f32.mrb[4].mxu1  ;;  %v1451_v33 = vpop.f32.mrb[5].mxu0 }
 0x1b4   : > { %v1491_v32 = vadd.f32 %v1490_v31, %v1449_v30  ;;  %v1492_v34 = vpop.f32.mrb[5].mxu1  ;;  %v1453_v36 = vpop.f32.mrb[6].mxu0 }
 0x1b5   : > { %v1493_v35 = vadd.f32 %v1492_v34, %v1451_v33  ;;  %v1494_v37 = vpop.f32.mrb[6].mxu1  ;;  %v1454_v39 = vpop.f32.mrb[7].mxu0 }
 0x1b6   : > { %v1536_v38 = vadd.f32 %v1525_v13, %v1491_v32  ;;  %v1495_v40 = vpop.f32.mrb[7].mxu1 }
 0x1b7   : > { %v1537_v41 = vadd.f32 %v1529_v14, %v1493_v35 }
 0x1b9   : > { %v1832_v42 = vpack.c.bf16 %v1537_v41, %v1536_v38 }
 0x1bb   : > { %1555 = vst [vmem:[%s535_s27 + $0x8] sm:$0xff] %v1832_v42 }
 0x1bc PF: > { %s13_s18 = sadd.s32 1, %s2140_s18   ;;  %s2665_s12 = smov %s2120_s13 }
 0x1bd   : > { %p10_p12 = scmp.ge.s32.totalorder %s13_s18, 8   ;;  %s2666_s13 = smov %s2211_s23 }
 0x1be   : > { %s2667_s14 = smov %s2132_s16  ;;  %s2668_s15 = smov %s2136_s17 }
 0x1bf   : > { %s2669_s16 = smov %s2672_s19  ;;  %s2670_s17 = smov %s2676_s20 }
 0x1c0   :  { %12 = sbr.rel (!%p10_p12) target bundleno = 4 (0x4), region = 104 }

// kernel: _lambda_.5
= control target key start
LH: loop header
LB: loop body
LE: loop exit
PB: predicated region body
PF: predicated region fallthrough
CT: control target
= control target key end

     0   :  { %8 = vsyncpa [#allocation4], 0  ;;  %s2417_s0 = inlined_call_operand.vmem [shape: bf16[16,512], index: 0, kind: input, shape index: {}]   ;;  %s2418_s1 = inlined_call_operand.vmem [shape: bf16[512,512], index: 1, kind: input, shape index: {}]   ;;  %s2419_s2 = inlined_call_operand.vmem [shape: f32[1,512], index: 2, kind: input, shape index: {}]   ;;  %s2420_s3 = inlined_call_operand.hbm [shape: f32[16,512], index: 3, kind: output, shape index: {}]  }
   0x1   :  { %10 = vsyncpa [#allocation4 + $0x1], 0  ;;  %s1902_s12 = smov 0   ;;  %s1904_s13 = smov 0  }
   0x2   :  { %s1906_s14 = smov 0   ;;  %s1908_s15 = smov 0  }
   0x3   :  { %s1910_s16 = smov 0   ;;  %s1912_s17 = smov 0  }
   0x4 LB: > { %s1401_s18 = sadd.s32 4294967295, %s1879_s17   ;;  %s1402_s19 = sadd.s32 4294967294, %s1879_s17   ;;  %s1879_s17 = sphi %s1912_s17, %s16_s17   ;;  %s1875_s16 = sphi %s1910_s16, %s2427_s16   ;;  %s1871_s15 = sphi %s1908_s15, %s2426_s15   ;;  %s1867_s14 = sphi %s1906_s14, %s2425_s14   ;;  %s1863_s13 = sphi %s1904_s13, %s2424_s13   ;;  %s1859_s12 = sphi %s1902_s12, %s2423_s12  }
   0x5   : > { %s35_s20 = sadd.s32 1, %s1875_s16  ;;  %s126_s21 = sadd.s32 1, %s1867_s14 }
   0x6   : > { %p37_p0 = scmp.ge.s32.totalorder %s35_s20, 2  ;;  %p136_p1 = scmp.ne.s32.totalorder %s1867_s14, %s1863_s13 }
   0x7   : > { %p137_p2 = scmp.eq.s32.totalorder %s1401_s18, 1  ;;  %p142_p3 = scmp.ne.s32.totalorder %s1863_s13, %s1859_s12 }
   0x8   : > { %s2429_s20 = smov (%p37_p0, %s35_s20), 0  ;;  %p143_p5 = scmp.eq.s32.totalorder %s1402_s19, 1 }
   0x9   : > { %p1942_p4 = por %p137_p2, %p136_p1  ;;  %s121_s23 = ssub.s32 %s1875_s16, %s2429_s20 }
   0xa   : > { %p1407_p6 = scmp.ge.s32.totalorder %s1879_s17, 1  ;;  %p124_p7 = scmp.eq.s32.totalorder %s121_s23, 0 }
   0xb   : > { %p1949_p8 = por %p143_p5, %p142_p3  ;;  %p197_p9 = scmp.lt.s32.totalorder %s1879_s17, 3 }
   0xc   : > { %s1955_s25 = scalar_select %p124_p7, %s1867_s14, %s126_s21  }
   0xd   : > { %p198_p10 = pnand %p1407_p6, %p197_p9 }
   0xe   : > { %v1605_v0 = vld [vmem:[%s2418_s1 + $0x4] ss:$16 sps:$4 sm:$0xff] (!%p198_p10)   ;;  %v1609_v2 = vld [vmem:[%s2418_s1] ss:$16 sps:$4 sm:$0xff] (!%p198_p10)   ;;  %p240_p11 = scmp.lt.s32.totalorder (!%p198_p10), %s1871_s15, 1  ;;  %s1549_s10 = sshll.u32 (!%p198_p10), %s1871_s15, 9 }
   0xf   : > { %201 = sbr.rel (%p198_p10) target bundleno = 375 (0x177), region = 32  ;;  %v1607_v1 = vld [vmem:[%s2418_s1 + $0x204] ss:$16 sps:$4 sm:$0xff] (!%p198_p10)   ;;  %1063 = vmatprep.subr.bf16.mxu0 (!%p198_p10), %v1605_v0  ;;  %v1610_v3 = vld [vmem:[%s2418_s1 + $0x200] ss:$16 sps:$4 sm:$0xff] (!%p198_p10)   ;;  %s1881_s26 = smov (!%p198_p10), [#allocation3]  }
  0x10   : > { %1104 = vmatprep.subr.bf16.mxu1 (!%p198_p10), %v1607_v1  ;;  %v1611_v4 = vld [vmem:[%s2418_s1 + $0x24] ss:$16 sps:$4 sm:$0xff] (!%p198_p10)   ;;  %1064 = vmatpush1.bf16.msra.mxu0 (!%p198_p10), %v1609_v2  ;;  %v1615_v6 = vld [vmem:[%s2418_s1 + $0x20] ss:$16 sps:$4 sm:$0xff] (!%p198_p10)   ;;  %s1805_s27 = sshll.u32 (!%p198_p10), %s1881_s26, 4  ;;  %s1806_s27 = int_to_ptr.vmem [resolvable:$false] %s1805_s27 }
  0x11   : > { %1105 = vmatpush1.bf16.msra.mxu1 (!%p198_p10), %v1610_v3  ;;  %v1613_v5 = vld [vmem:[%s2418_s1 + $0x224] ss:$16 sps:$4 sm:$0xff] (!%p198_p10)   ;;  %1065 = vmatprep.subr.bf16.mxu0 (!%p198_p10), %v1611_v4  ;;  %v1616_v7 = vld [vmem:[%s2418_s1 + $0x220] ss:$16 sps:$4 sm:$0xff] (!%p198_p10)   ;;  %v1707_v4 = vld [vmem:[%s2418_s1 + $0xc] ss:$16 sps:$4 sm:$0xff] (!%p198_p10)  }
  0x12   : > { %1106 = vmatprep.subr.bf16.mxu1 (!%p198_p10), %v1613_v5  ;;  %v1617_v8 = vld [vmem:[%s2418_s1 + $0x44] ss:$16 sps:$4 sm:$0xff] (!%p198_p10)   ;;  %v1621_v10 = vld [vmem:[%s2418_s1 + $0x40] ss:$16 sps:$4 sm:$0xff] (!%p198_p10)   ;;  %v1710_v5 = vld [vmem:[%s2418_s1 + $0x20c] ss:$16 sps:$4 sm:$0xff] (!%p198_p10)  }
  0x13   : > { %v1619_v9 = vld [vmem:[%s2418_s1 + $0x244] ss:$16 sps:$4 sm:$0xff] (!%p198_p10)   ;;  %v1622_v11 = vld [vmem:[%s2418_s1 + $0x240] ss:$16 sps:$4 sm:$0xff] (!%p198_p10)   ;;  %s1807_s28 = scalar_lea.vmem (!%p198_p10), %s1806_s27, 1024 }
  0x14   : > { %1066 = vmatpush1.bf16.msra.mxu0 (!%p198_p10), %v1615_v6  ;;  %v1623_v12 = vld [vmem:[%s2418_s1 + $0x64] ss:$16 sps:$4 sm:$0xff] (!%p198_p10)   ;;  %v1627_v14 = vld [vmem:[%s2418_s1 + $0x60] ss:$16 sps:$4 sm:$0xff] (!%p198_p10)  }
  0x15   : > { %1107 = vmatpush1.bf16.msra.mxu1 (!%p198_p10), %v1616_v7  ;;  %1067 = vmatprep.subr.bf16.mxu0 (!%p198_p10), %v1617_v8  ;;  %v1625_v13 = vld [vmem:[%s2418_s1 + $0x264] ss:$16 sps:$4 sm:$0xff] (!%p198_p10)   ;;  %v1628_v15 = vld [vmem:[%s2418_s1 + $0x260] ss:$16 sps:$4 sm:$0xff] (!%p198_p10)   ;;  %v1705_v8 = vld [vmem:[%s2418_s1 + $0x8] ss:$16 sps:$4 sm:$0xff] (!%p198_p10)  }
  0x16   : > { %1108 = vmatprep.subr.bf16.mxu1 %v1619_v9  ;;  %v1629_v16 = vld [vmem:[%s2418_s1 + $0x84] ss:$16 sps:$4 sm:$0xff]   ;;  %v1633_v18 = vld [vmem:[%s2418_s1 + $0x80] ss:$16 sps:$4 sm:$0xff]   ;;  %s241_s5 = scalar_select %p240_p11, %s1871_s15, 1 }
  0x17   : > { %v1631_v17 = vld [vmem:[%s2418_s1 + $0x284] ss:$16 sps:$4 sm:$0xff]   ;;  %v1634_v19 = vld [vmem:[%s2418_s1 + $0x280] ss:$16 sps:$4 sm:$0xff]   ;;  %v1708_v9 = vld [vmem:[%s2418_s1 + $0x208] ss:$16 sps:$4 sm:$0xff]  }
  0x18   : > { %1068 = vmatpush1.bf16.msra.mxu0 %v1621_v10  ;;  %v1635_v20 = vld [vmem:[%s2418_s1 + $0xa4] ss:$16 sps:$4 sm:$0xff]   ;;  %v1639_v22 = vld [vmem:[%s2418_s1 + $0xa0] ss:$16 sps:$4 sm:$0xff]   ;;  %s1548_s21 = sshll.u32 %s241_s5, 4  ;;  %s236_s5 = sand.u32 1, %s1863_s13  }
  0x19   : > { %1109 = vmatpush1.bf16.msra.mxu1 %v1622_v11  ;;  %1069 = vmatprep.subr.bf16.mxu0 %v1623_v12  ;;  %v1637_v21 = vld [vmem:[%s2418_s1 + $0x2a4] ss:$16 sps:$4 sm:$0xff]   ;;  %v1640_v23 = vld [vmem:[%s2418_s1 + $0x2a0] ss:$16 sps:$4 sm:$0xff]   ;;  %s247_s7 = scalar_lea.vmem %s2417_s0, %s1548_s21  ;;  %v1713_v10 = vld [vmem:[%s2418_s1 + $0x2c] ss:$16 sps:$4 sm:$0xff]   ;;  %s2368_s21 = scalar_lea.hbm %s2420_s3, %s1549_s10 }
  0x1a   : > { %1110 = vmatprep.subr.bf16.mxu1 %v1625_v13  ;;  %v1641_v24 = vld [vmem:[%s2418_s1 + $0xc4] ss:$16 sps:$4 sm:$0xff]   ;;  %v1645_v26 = vld [vmem:[%s2418_s1 + $0xc0] ss:$16 sps:$4 sm:$0xff]   ;;  %v280_v48 = vld [vmem:[%s247_s7 + $0x8] sm:$0xff]  ;;  %s1408_s8 = sshll.u32 %s236_s5, 5 }
  0x1b   : > { %v1643_v25 = vld [vmem:[%s2418_s1 + $0x2c4] ss:$16 sps:$4 sm:$0xff]   ;;  %v1646_v27 = vld [vmem:[%s2418_s1 + $0x2c0] ss:$16 sps:$4 sm:$0xff]   ;;  %v1414_v51 = vcombine.high %v280_v48, %v280_v48  ;;  %v2165_v7 = vcombine.low %v280_v48, %v280_v48  ;;  %v1716_v11 = vld [vmem:[%s2418_s1 + $0x22c] ss:$16 sps:$4 sm:$0xff]  }
  0x1c   : > { %1070 = vmatpush1.bf16.msra.mxu0 %v1627_v14  ;;  %v1647_v28 = vld [vmem:[%s2418_s1 + $0xe4] ss:$16 sps:$4 sm:$0xff]   ;;  %v1651_v30 = vld [vmem:[%s2418_s1 + $0xe0] ss:$16 sps:$4 sm:$0xff]   ;;  %v1711_v12 = vld [vmem:[%s2418_s1 + $0x28] ss:$16 sps:$4 sm:$0xff]  }
  0x1d   : > { %1111 = vmatpush1.bf16.msra.mxu1 %v1628_v15  ;;  %1071 = vmatprep.subr.bf16.mxu0 %v1629_v16  ;;  %v1649_v29 = vld [vmem:[%s2418_s1 + $0x2e4] ss:$16 sps:$4 sm:$0xff]   ;;  %v1652_v31 = vld [vmem:[%s2418_s1 + $0x2e0] ss:$16 sps:$4 sm:$0xff]   ;;  %v1714_v13 = vld [vmem:[%s2418_s1 + $0x228] ss:$16 sps:$4 sm:$0xff]  }
  0x1e   : > { %1112 = vmatprep.subr.bf16.mxu1 %v1631_v17  ;;  %v1653_v32 = vld [vmem:[%s2418_s1 + $0x104] ss:$16 sps:$4 sm:$0xff]   ;;  %v1657_v34 = vld [vmem:[%s2418_s1 + $0x100] ss:$16 sps:$4 sm:$0xff]   ;;  %1136 = vmatprep.mubr.bf16.mxu1 %v1414_v51  ;;  %v1719_v14 = vld [vmem:[%s2418_s1 + $0x4c] ss:$16 sps:$4 sm:$0xff]  }
  0x1f   : > { %v1655_v33 = vld [vmem:[%s2418_s1 + $0x304] ss:$16 sps:$4 sm:$0xff]   ;;  %v1658_v35 = vld [vmem:[%s2418_s1 + $0x300] ss:$16 sps:$4 sm:$0xff]   ;;  %v1722_v15 = vld [vmem:[%s2418_s1 + $0x24c] ss:$16 sps:$4 sm:$0xff]  }
  0x20   : > { %1072 = vmatpush1.bf16.msra.mxu0 %v1633_v18  ;;  %v1659_v36 = vld [vmem:[%s2418_s1 + $0x124] ss:$16 sps:$4 sm:$0xff]   ;;  %v1663_v38 = vld [vmem:[%s2418_s1 + $0x120] ss:$16 sps:$4 sm:$0xff]   ;;  %v1717_v16 = vld [vmem:[%s2418_s1 + $0x48] ss:$16 sps:$4 sm:$0xff]  }
  0x21   : > { %1113 = vmatpush1.bf16.msra.mxu1 %v1634_v19  ;;  %1073 = vmatprep.subr.bf16.mxu0 %v1635_v20  ;;  %v1661_v37 = vld [vmem:[%s2418_s1 + $0x324] ss:$16 sps:$4 sm:$0xff]   ;;  %v1664_v39 = vld [vmem:[%s2418_s1 + $0x320] ss:$16 sps:$4 sm:$0xff]   ;;  %v1720_v17 = vld [vmem:[%s2418_s1 + $0x248] ss:$16 sps:$4 sm:$0xff]  }
  0x22   : > { %1114 = vmatprep.subr.bf16.mxu1 %v1637_v21  ;;  %v1665_v40 = vld [vmem:[%s2418_s1 + $0x144] ss:$16 sps:$4 sm:$0xff]   ;;  %v1669_v42 = vld [vmem:[%s2418_s1 + $0x140] ss:$16 sps:$4 sm:$0xff]   ;;  %v1725_v18 = vld [vmem:[%s2418_s1 + $0x6c] ss:$16 sps:$4 sm:$0xff]  }
  0x23   : > { %v1667_v41 = vld [vmem:[%s2418_s1 + $0x344] ss:$16 sps:$4 sm:$0xff]   ;;  %v1670_v43 = vld [vmem:[%s2418_s1 + $0x340] ss:$16 sps:$4 sm:$0xff]   ;;  %v1728_v19 = vld [vmem:[%s2418_s1 + $0x26c] ss:$16 sps:$4 sm:$0xff]  }
  0x24   : > { %1074 = vmatpush1.bf16.msra.mxu0 %v1639_v22  ;;  %v1671_v44 = vld [vmem:[%s2418_s1 + $0x164] ss:$16 sps:$4 sm:$0xff]   ;;  %v1675_v49 = vld [vmem:[%s2418_s1 + $0x160] ss:$16 sps:$4 sm:$0xff]   ;;  %v1723_v20 = vld [vmem:[%s2418_s1 + $0x68] ss:$16 sps:$4 sm:$0xff]  }
  0x25   : > { %1115 = vmatpush1.bf16.msra.mxu1 %v1640_v23  ;;  %1075 = vmatprep.subr.bf16.mxu0 %v1641_v24  ;;  %v1673_v45 = vld [vmem:[%s2418_s1 + $0x364] ss:$16 sps:$4 sm:$0xff]   ;;  %v1676_v50 = vld [vmem:[%s2418_s1 + $0x360] ss:$16 sps:$4 sm:$0xff]   ;;  %v1726_v21 = vld [vmem:[%s2418_s1 + $0x268] ss:$16 sps:$4 sm:$0xff]  }
  0x26   : > { %1116 = vmatprep.subr.bf16.mxu1 %v1643_v25  ;;  %v279_v46 = vld [vmem:[%s247_s7] sm:$0xff]  ;;  %v1731_v22 = vld [vmem:[%s2418_s1 + $0x8c] ss:$16 sps:$4 sm:$0xff]   ;;  %v1729_v24 = vld [vmem:[%s2418_s1 + $0x88] ss:$16 sps:$4 sm:$0xff]   ;;  %s238_s9 = scalar_lea.vmem [#allocation3], %s1408_s8 }
  0x27   : > { %v2100_v47 = vcombine.high %v279_v46, %v279_v46  ;;  %v1677_v52 = vld [vmem:[%s2418_s1 + $0x184] ss:$16 sps:$4 sm:$0xff]   ;;  %v1681_v54 = vld [vmem:[%s2418_s1 + $0x180] ss:$16 sps:$4 sm:$0xff]   ;;  %v2163_v6 = vcombine.low %v279_v46, %v279_v46  ;;  %v1734_v23 = vld [vmem:[%s2418_s1 + $0x28c] ss:$16 sps:$4 sm:$0xff]  }
  0x28   : > { %1076 = vmatpush1.bf16.msra.mxu0 %v1645_v26  ;;  %v1679_v53 = vld [vmem:[%s2418_s1 + $0x384] ss:$16 sps:$4 sm:$0xff]   ;;  %v1682_v55 = vld [vmem:[%s2418_s1 + $0x380] ss:$16 sps:$4 sm:$0xff]   ;;  %v1732_v25 = vld [vmem:[%s2418_s1 + $0x288] ss:$16 sps:$4 sm:$0xff]  }
  0x29   : > { %1117 = vmatpush1.bf16.msra.mxu1 %v1646_v27  ;;  %1077 = vmatprep.subr.bf16.mxu0 %v1647_v28  ;;  %v1683_v56 = vld [vmem:[%s2418_s1 + $0x1a4] ss:$16 sps:$4 sm:$0xff]   ;;  %v1687_v58 = vld [vmem:[%s2418_s1 + $0x1a0] ss:$16 sps:$4 sm:$0xff]   ;;  %v1737_v26 = vld [vmem:[%s2418_s1 + $0xac] ss:$16 sps:$4 sm:$0xff]  }
  0x2a   : > { %1118 = vmatprep.subr.bf16.mxu1 %v1649_v29  ;;  %1095 = vmatprep.mubr.bf16.mxu0 %v2100_v47  ;;  %v1685_v57 = vld [vmem:[%s2418_s1 + $0x3a4] ss:$16 sps:$4 sm:$0xff]   ;;  %v1688_v59 = vld [vmem:[%s2418_s1 + $0x3a0] ss:$16 sps:$4 sm:$0xff]   ;;  %v1740_v27 = vld [vmem:[%s2418_s1 + $0x2ac] ss:$16 sps:$4 sm:$0xff]  }
  0x2b   : > { %v1689_v60 = vld [vmem:[%s2418_s1 + $0x1c4] ss:$16 sps:$4 sm:$0xff]   ;;  %v1693_v62 = vld [vmem:[%s2418_s1 + $0x1c0] ss:$16 sps:$4 sm:$0xff]   ;;  %v1735_v28 = vld [vmem:[%s2418_s1 + $0xa8] ss:$16 sps:$4 sm:$0xff]  }
  0x2c   : > { %1078 = vmatpush1.bf16.msra.mxu0 %v1651_v30  ;;  %v1691_v61 = vld [vmem:[%s2418_s1 + $0x3c4] ss:$16 sps:$4 sm:$0xff]   ;;  %v1694_v63 = vld [vmem:[%s2418_s1 + $0x3c0] ss:$16 sps:$4 sm:$0xff]   ;;  %v1738_v29 = vld [vmem:[%s2418_s1 + $0x2a8] ss:$16 sps:$4 sm:$0xff]  }
  0x2d   : > { %1119 = vmatpush1.bf16.msra.mxu1 %v1652_v31  ;;  %1079 = vmatprep.subr.bf16.mxu0 %v1653_v32  ;;  %v1695_v0 = vld [vmem:[%s2418_s1 + $0x1e4] ss:$16 sps:$4 sm:$0xff]   ;;  %v1699_v2 = vld [vmem:[%s2418_s1 + $0x1e0] ss:$16 sps:$4 sm:$0xff]   ;;  %v1743_v30 = vld [vmem:[%s2418_s1 + $0xcc] ss:$16 sps:$4 sm:$0xff]  }
  0x2e   : > { %1120 = vmatprep.subr.bf16.mxu1 %v1655_v33  ;;  %v1697_v1 = vld [vmem:[%s2418_s1 + $0x3e4] ss:$16 sps:$4 sm:$0xff]   ;;  %v1700_v3 = vld [vmem:[%s2418_s1 + $0x3e0] ss:$16 sps:$4 sm:$0xff]   ;;  %v1746_v31 = vld [vmem:[%s2418_s1 + $0x2cc] ss:$16 sps:$4 sm:$0xff]  }
  0x2f   : > { %v1741_v32 = vld [vmem:[%s2418_s1 + $0xc8] ss:$16 sps:$4 sm:$0xff]   ;;  %v1767_v46 = vld [vmem:[%s2418_s1 + $0x14c] ss:$16 sps:$4 sm:$0xff]   ;;  %s1289_s11 = sshll.u32 %s238_s9, 4  ;;  %s1273_s15 = scalar_lea.sflag [#allocation4], %s236_s5  ;;  %s2370_s11 = int_to_ptr.vmem [resolvable:$true] %s1289_s11 }
  0x30   : > { %1080 = vmatpush1.bf16.msra.mxu0 %v1657_v34  ;;  %v1744_v33 = vld [vmem:[%s2418_s1 + $0x2c8] ss:$16 sps:$4 sm:$0xff]   ;;  %v1749_v34 = vld [vmem:[%s2418_s1 + $0xec] ss:$16 sps:$4 sm:$0xff]   ;;  %s1801_s23 = scalar_lea.vmem %s2370_s11, 512  ;;  %p1808_p1 = scmp.lt.s32.totalorder %s2370_s11, %s1806_s27 }
  0x31   : > { %1121 = vmatpush1.bf16.msra.mxu1 %v1658_v35  ;;  %1081 = vmatprep.subr.bf16.mxu0 %v1659_v36  ;;  %v1752_v35 = vld [vmem:[%s2418_s1 + $0x2ec] ss:$16 sps:$4 sm:$0xff]   ;;  %v1747_v36 = vld [vmem:[%s2418_s1 + $0xe8] ss:$16 sps:$4 sm:$0xff]   ;;  %p1802_p12 = scmp.ne.s32.totalorder %s2370_s11, %s1801_s23  ;;  %p1809_p2 = scmp.lt.s32.totalorder %s1807_s28, %s1801_s23 }
  0x32   : > { %1122 = vmatprep.subr.bf16.mxu1 %v1661_v37  ;;  %v1750_v37 = vld [vmem:[%s2418_s1 + $0x2e8] ss:$16 sps:$4 sm:$0xff]  }
  0x33   : > { %v1765_v48 = vld [vmem:[%s2418_s1 + $0x148] ss:$16 sps:$4 sm:$0xff]   ;;  %p1803_p13 = pnand %p1802_p12, %p1942_p4  ;;  %p1810_p3 = por %p1809_p2, %p1808_p1 }
  0x34   : > { %1082 = vmatpush1.bf16.msra.mxu0 %v1663_v38  ;;  %v1755_v38 = vld [vmem:[%s2418_s1 + $0x10c] ss:$16 sps:$4 sm:$0xff]  }
  0x35   : > { %1123 = vmatpush1.bf16.msra.mxu1 %v1664_v39  ;;  %1083 = vmatprep.subr.bf16.mxu0 %v1665_v40  ;;  %v1758_v39 = vld [vmem:[%s2418_s1 + $0x30c] ss:$16 sps:$4 sm:$0xff]   ;;  %v1753_v40 = vld [vmem:[%s2418_s1 + $0x108] ss:$16 sps:$4 sm:$0xff]   ;;  %p1804_p0 = pneg %p1803_p13 }
  0x36   : > { %1124 = vmatprep.subr.bf16.mxu1 %v1667_v41  ;;  %v1756_v41 = vld [vmem:[%s2418_s1 + $0x308] ss:$16 sps:$4 sm:$0xff]  }
  0x37   : > { %p1811_p5 = pnand %p1810_p3, %p1804_p0 }
  0x38   : > { %1084 = vmatpush1.bf16.msra.mxu0 %v1669_v42  ;;  %v1761_v42 = vld [vmem:[%s2418_s1 + $0x12c] ss:$16 sps:$4 sm:$0xff]  }
  0x39   : > { %1125 = vmatpush1.bf16.msra.mxu1 %v1670_v43  ;;  %1085 = vmatprep.subr.bf16.mxu0 %v1671_v44  ;;  %v1764_v43 = vld [vmem:[%s2418_s1 + $0x32c] ss:$16 sps:$4 sm:$0xff]   ;;  %v1759_v44 = vld [vmem:[%s2418_s1 + $0x128] ss:$16 sps:$4 sm:$0xff]  }
  0x3a   : > { %1126 = vmatprep.subr.bf16.mxu1 %v1673_v45  ;;  %v1762_v45 = vld [vmem:[%s2418_s1 + $0x328] ss:$16 sps:$4 sm:$0xff]  }
  0x3c   : > { %1086 = vmatpush1.bf16.msra.mxu0 %v1675_v49  ;;  %v1768_v49 = vld [vmem:[%s2418_s1 + $0x348] ss:$16 sps:$4 sm:$0xff]  }
  0x3d   : > { %1127 = vmatpush1.bf16.msra.mxu1 %v1676_v50  ;;  %1087 = vmatprep.subr.bf16.mxu0 %v1677_v52  ;;  %v1773_v50 = vld [vmem:[%s2418_s1 + $0x16c] ss:$16 sps:$4 sm:$0xff]   ;;  %v1771_v52 = vld [vmem:[%s2418_s1 + $0x168] ss:$16 sps:$4 sm:$0xff]  }
  0x3e   : > { %1128 = vmatprep.subr.bf16.mxu1 %v1679_v53  ;;  %v1774_v53 = vld [vmem:[%s2418_s1 + $0x368] ss:$16 sps:$4 sm:$0xff]  }
  0x40   : > { %1088 = vmatpush1.bf16.msra.mxu0 %v1681_v54  ;;  %v1779_v54 = vld [vmem:[%s2418_s1 + $0x18c] ss:$16 sps:$4 sm:$0xff]  }
  0x41   : > { %1129 = vmatpush1.bf16.msra.mxu1 %v1682_v55  ;;  %1089 = vmatprep.subr.bf16.mxu0 %v1683_v56  ;;  %v1782_v55 = vld [vmem:[%s2418_s1 + $0x38c] ss:$16 sps:$4 sm:$0xff]   ;;  %v1777_v56 = vld [vmem:[%s2418_s1 + $0x188] ss:$16 sps:$4 sm:$0xff]  }
  0x42   : > { %1130 = vmatprep.subr.bf16.mxu1 %v1685_v57  ;;  %v1780_v57 = vld [vmem:[%s2418_s1 + $0x388] ss:$16 sps:$4 sm:$0xff]  }
  0x44   : > { %1090 = vmatpush1.bf16.msra.mxu0 %v1687_v58  ;;  %v1785_v58 = vld [vmem:[%s2418_s1 + $0x1ac] ss:$16 sps:$4 sm:$0xff]  }
  0x45   : > { %1131 = vmatpush1.bf16.msra.mxu1 %v1688_v59  ;;  %1091 = vmatprep.subr.bf16.mxu0 %v1689_v60  ;;  %v1788_v59 = vld [vmem:[%s2418_s1 + $0x3ac] ss:$16 sps:$4 sm:$0xff]   ;;  %v1783_v60 = vld [vmem:[%s2418_s1 + $0x1a8] ss:$16 sps:$4 sm:$0xff]  }
  0x46   : > { %1132 = vmatprep.subr.bf16.mxu1 %v1691_v61  ;;  %v1786_v61 = vld [vmem:[%s2418_s1 + $0x3a8] ss:$16 sps:$4 sm:$0xff]  }
  0x48   : > { %1092 = vmatpush1.bf16.msra.mxu0 %v1693_v62  ;;  %v1791_v62 = vld [vmem:[%s2418_s1 + $0x1cc] ss:$16 sps:$4 sm:$0xff]  }
  0x49   : > { %1133 = vmatpush1.bf16.msra.mxu1 %v1694_v63  ;;  %1093 = vmatprep.subr.bf16.mxu0 %v1695_v0  ;;  %v1794_v63 = vld [vmem:[%s2418_s1 + $0x3cc] ss:$16 sps:$4 sm:$0xff]   ;;  %v1789_v0 = vld [vmem:[%s2418_s1 + $0x1c8] ss:$16 sps:$4 sm:$0xff]  }
  0x4a   : > { %1134 = vmatprep.subr.bf16.mxu1 %v1697_v1  ;;  %v1792_v1 = vld [vmem:[%s2418_s1 + $0x3c8] ss:$16 sps:$4 sm:$0xff]  }
  0x4c   : > { %1094 = vmatpush1.bf16.msra.mxu0 %v1699_v2  ;;  %v1797_v2 = vld [vmem:[%s2418_s1 + $0x1ec] ss:$16 sps:$4 sm:$0xff]  }
  0x4d   : > { %1135 = vmatpush1.bf16.msra.mxu1 %v1700_v3  ;;  %1145 = vmatprep.subr.bf16.mxu0 %v1707_v4  ;;  %v1800_v3 = vld [vmem:[%s2418_s1 + $0x3ec] ss:$16 sps:$4 sm:$0xff]   ;;  %v1795_v4 = vld [vmem:[%s2418_s1 + $0x1e8] ss:$16 sps:$4 sm:$0xff]  }
  0x4e   : > { %1186 = vmatprep.subr.bf16.mxu1 %v1710_v5  ;;  %v1798_v5 = vld [vmem:[%s2418_s1 + $0x3e8] ss:$16 sps:$4 sm:$0xff]  }
  0x4f   : > { %1096 = vmatmul.mubr.bf16.vlgmr.msra.gmra.mrb[0].mxu0 %v2163_v6 }
  0x50   : > { %1137 = vmatmul.mubr.bf16.vlgmr.msra.gmra.mrb[0].mxu1 %v2165_v7  ;;  %1146 = vmatpush1.bf16.msra.mxu0 %v1705_v8  ;;  %v1244_v8 = vlaneseq }
  0x51   : > { %1187 = vmatpush1.bf16.msra.mxu1 %v1708_v9  ;;  %1147 = vmatprep.subr.bf16.mxu0 %v1713_v10 }
  0x52   : > { %1188 = vmatprep.subr.bf16.mxu1 %v1716_v11  ;;  %1177 = vmatprep.mubr.bf16.mxu0 %v2100_v47  ;;  %v1770_v47 = vld [vmem:[%s2418_s1 + $0x34c] ss:$16 sps:$4 sm:$0xff]   ;;  %v1245_v9 = vshrl.u32 %v1244_v8, 7  ;;  %v1242_v11 = vld [vmem:[%s2419_s2] sm:$0xf] }
  0x53   : > { %1218 = vmatprep.mubr.bf16.mxu1 %v1414_v51  ;;  %v1776_v51 = vld [vmem:[%s2418_s1 + $0x36c] ss:$16 sps:$4 sm:$0xff]  }
  0x54   : > { %1148 = vmatpush1.bf16.msra.mxu0 %v1711_v12  ;;  %v1254_v10 = vsub.s32 2, %v1245_v9  ;;  %v1258_v12 = vsub.s32 3, %v1245_v9 }
  0x55   : > { %1189 = vmatpush1.bf16.msra.mxu1 %v1714_v13  ;;  %1149 = vmatprep.subr.bf16.mxu0 %v1719_v14 }
  0x56   : > { %1190 = vmatprep.subr.bf16.mxu1 %v1722_v15  ;;  %v1255_v13 = vrot.slane %v1242_v11, %v1254_v10  ;;  %v1259_v14 = vrot.slane %v1242_v11, %v1258_v12  ;;  %v1246_v15 = vsub.s32 0, %v1245_v9 }
  0x58   : > { %1150 = vmatpush1.bf16.msra.mxu0 %v1717_v16  ;;  %v1250_v16 = vsub.s32 1, %v1245_v9 }
  0x59   : > { %1191 = vmatpush1.bf16.msra.mxu1 %v1720_v17  ;;  %1151 = vmatprep.subr.bf16.mxu0 %v1725_v18  ;;  %v1247_v17 = vrot.slane %v1242_v11, %v1246_v15 }
  0x5a   : > { %1192 = vmatprep.subr.bf16.mxu1 %v1728_v19  ;;  %v1251_v19 = vrot.slane %v1242_v11, %v1250_v16 }
  0x5c   : > { %1152 = vmatpush1.bf16.msra.mxu0 %v1723_v20 }
  0x5d   : > { %1193 = vmatpush1.bf16.msra.mxu1 %v1726_v21  ;;  %1153 = vmatprep.subr.bf16.mxu0 %v1731_v22 }
  0x5e   : > { %1194 = vmatprep.subr.bf16.mxu1 %v1734_v23 }
  0x60   : > { %1154 = vmatpush1.bf16.msra.mxu0 %v1729_v24 }
  0x61   : > { %1195 = vmatpush1.bf16.msra.mxu1 %v1732_v25  ;;  %1155 = vmatprep.subr.bf16.mxu0 %v1737_v26 }
  0x62   : > { %1196 = vmatprep.subr.bf16.mxu1 %v1740_v27 }
  0x64   : > { %1156 = vmatpush1.bf16.msra.mxu0 %v1735_v28 }
  0x65   : > { %1197 = vmatpush1.bf16.msra.mxu1 %v1738_v29  ;;  %1157 = vmatprep.subr.bf16.mxu0 %v1743_v30 }
  0x66   : > { %1198 = vmatprep.subr.bf16.mxu1 %v1746_v31 }
  0x68   : > { %1158 = vmatpush1.bf16.msra.mxu0 %v1741_v32 }
  0x69   : > { %1199 = vmatpush1.bf16.msra.mxu1 %v1744_v33  ;;  %1159 = vmatprep.subr.bf16.mxu0 %v1749_v34 }
  0x6a   : > { %1200 = vmatprep.subr.bf16.mxu1 %v1752_v35 }
  0x6c   : > { %1160 = vmatpush1.bf16.msra.mxu0 %v1747_v36 }
  0x6d   : > { %1201 = vmatpush1.bf16.msra.mxu1 %v1750_v37  ;;  %1161 = vmatprep.subr.bf16.mxu0 %v1755_v38 }
  0x6e   : > { %1202 = vmatprep.subr.bf16.mxu1 %v1758_v39 }
  0x70   : > { %1162 = vmatpush1.bf16.msra.mxu0 %v1753_v40 }
  0x71   : > { %1203 = vmatpush1.bf16.msra.mxu1 %v1756_v41  ;;  %1163 = vmatprep.subr.bf16.mxu0 %v1761_v42 }
  0x72   : > { %1204 = vmatprep.subr.bf16.mxu1 %v1764_v43 }
  0x74   : > { %1164 = vmatpush1.bf16.msra.mxu0 %v1759_v44 }
  0x75   : > { %1205 = vmatpush1.bf16.msra.mxu1 %v1762_v45  ;;  %1165 = vmatprep.subr.bf16.mxu0 %v1767_v46 }
  0x76   : > { %1206 = vmatprep.subr.bf16.mxu1 %v1770_v47 }
  0x78   : > { %1166 = vmatpush1.bf16.msra.mxu0 %v1765_v48 }
  0x79   : > { %1207 = vmatpush1.bf16.msra.mxu1 %v1768_v49  ;;  %1167 = vmatprep.subr.bf16.mxu0 %v1773_v50 }
  0x7a   : > { %1208 = vmatprep.subr.bf16.mxu1 %v1776_v51 }
  0x7c   : > { %1168 = vmatpush1.bf16.msra.mxu0 %v1771_v52 }
  0x7d   : > { %1209 = vmatpush1.bf16.msra.mxu1 %v1774_v53  ;;  %1169 = vmatprep.subr.bf16.mxu0 %v1779_v54 }
  0x7e   : > { %1210 = vmatprep.subr.bf16.mxu1 %v1782_v55 }
  0x80   : > { %1170 = vmatpush1.bf16.msra.mxu0 %v1777_v56 }
  0x81   : > { %1211 = vmatpush1.bf16.msra.mxu1 %v1780_v57  ;;  %1171 = vmatprep.subr.bf16.mxu0 %v1785_v58 }
  0x82   : > { %1212 = vmatprep.subr.bf16.mxu1 %v1788_v59 }
  0x84   : > { %1172 = vmatpush1.bf16.msra.mxu0 %v1783_v60 }
  0x85   : > { %1213 = vmatpush1.bf16.msra.mxu1 %v1786_v61  ;;  %1173 = vmatprep.subr.bf16.mxu0 %v1791_v62 }
  0x86   : > { %1214 = vmatprep.subr.bf16.mxu1 %v1794_v63 }
  0x88   : > { %1174 = vmatpush1.bf16.msra.mxu0 %v1789_v0 }
  0x89   : > { %1215 = vmatpush1.bf16.msra.mxu1 %v1792_v1  ;;  %1175 = vmatprep.subr.bf16.mxu0 %v1797_v2 }
  0x8a   : > { %1216 = vmatprep.subr.bf16.mxu1 %v1800_v3 }
  0x8c   : > { %1176 = vmatpush1.bf16.msra.mxu0 %v1795_v4 }
  0x8d   : > { %1217 = vmatpush1.bf16.msra.mxu1 %v1798_v5 }
  0x8f   : > { %1178 = vmatmul.mubr.bf16.vlgmr.msra.gmra.mrb[4].mxu0 %v2163_v6 }
  0x90   : > { %1219 = vmatmul.mubr.bf16.vlgmr.msra.gmra.mrb[4].mxu1 %v2165_v7 }
 0x122   : > { %v1097_v18 = vpop.f32.mrb[0].mxu0 }
 0x123   : > { %v1138_v6 = vpop.f32.mrb[0].mxu1  ;;  %v1099_v20 = vpop.f32.mrb[1].mxu0 }
 0x124   : > { %v1139_v7 = vadd.f32 %v1138_v6, %v1097_v18  ;;  %v1140_v21 = vpop.f32.mrb[1].mxu1  ;;  %v1101_v23 = vpop.f32.mrb[2].mxu0 }
 0x125   : > { %v1141_v22 = vadd.f32 %v1140_v21, %v1099_v20  ;;  %v1142_v24 = vpop.f32.mrb[2].mxu1  ;;  %v1102_v26 = vpop.f32.mrb[3].mxu0 }
 0x126   : > { %v1264_v25 = vadd.f32 %v1247_v17, %v1139_v7  ;;  %v1143_v27 = vpop.f32.mrb[3].mxu1 }
 0x127   : > { %v1265_v28 = vadd.f32 %v1251_v19, %v1141_v22 }
 0x128   : > { %1268 = vst [vmem:[%s238_s9] sm:$0xff] %v1264_v25 }
 0x129   : > { %1269 = vst [vmem:[%s238_s9 + $0x8] sm:$0xff] %v1265_v28 }
 0x162   : > { %v1179_v29 = vpop.f32.mrb[4].mxu0 }
 0x163   : > { %v1220_v30 = vpop.f32.mrb[4].mxu1  ;;  %v1181_v32 = vpop.f32.mrb[5].mxu0 }
 0x164   : > { %v1221_v31 = vadd.f32 %v1220_v30, %v1179_v29  ;;  %v1222_v33 = vpop.f32.mrb[5].mxu1  ;;  %v1183_v35 = vpop.f32.mrb[6].mxu0 }
 0x165   : > { %v1223_v34 = vadd.f32 %v1222_v33, %v1181_v32  ;;  %v1224_v36 = vpop.f32.mrb[6].mxu1  ;;  %v1184_v38 = vpop.f32.mrb[7].mxu0 }
 0x166   : > { %v1266_v37 = vadd.f32 %v1255_v13, %v1221_v31  ;;  %v1225_v39 = vpop.f32.mrb[7].mxu1 }
 0x167   : > { %v1267_v40 = vadd.f32 %v1259_v14, %v1223_v34 }
 0x168   : > { %1270 = vst [vmem:[%s238_s9 + $0x10] sm:$0xff] %v1266_v37 }
 0x169   : > { %1271 = vst [vmem:[%s238_s9 + $0x18] sm:$0xff] %v1267_v40 }
 0x16a   : > { %1814 = shalt.err (!%p1811_p5)
}
 0x16b   : > { %s1815_s29 = scalar_lea.hbm %s2368_s21, 512  ;;  %s1819_s6 = scalar_lea.hbm %s2420_s3, 1024 }
 0x16c   : > { %p1816_p6 = scmp.ne.s32.totalorder %s2368_s21, %s1815_s29  ;;  %p1820_p10 = scmp.lt.u32.totalorder %s2368_s21, %s2420_s3 }
 0x16d   : > { %p1821_p11 = scmp.lt.u32.totalorder %s1819_s6, %s1815_s29  ;;  %p1823_p13 = scmp.lt.u32.totalorder %s1815_s29, %s2368_s21 }
 0x16e   : > { %p1817_p7 = pnand %p1816_p6, %p1942_p4 }
 0x16f   : > { %p1822_p12 = por %p1821_p11, %p1820_p10 }
 0x170   : > { %p1818_p9 = pneg %p1817_p7 }
 0x171   : > { %p1824_p0 = por %p1823_p13, %p1822_p12 }
 0x173   : > { %p1825_p1 = pnand %p1824_p0, %p1818_p9 }
 0x175   : > { %1828 = shalt.err (!%p1825_p1)
}
 0x176   : > { %1550 = dma.vmem_to_hbm [thread:$0]  (%p1942_p4), %s2370_s11, 512, %s2368_s21, %s1273_s15  }
 0x177 PF: > { %p1556_p2 = scmp.ge.s32.totalorder %s1879_s17, 2  ;;  %s1301_s8 = sand.u32 1, %s1859_s12  }
 0x178   : > { %s1302_s9 = scalar_lea.sflag [#allocation4], %s1301_s8 }
 0x179   : > { %p1553_p3 = pnand %p1556_p2, %p1949_p8 }
 0x17b   : > { %1854 = dma.done.wait (!%p1553_p3), %s1302_s9, 512  }
 0x17c   : > { %1856 = vsyncadd (!%p1553_p3), %s1302_s9, 4294966784  ;;  %s16_s17 = sadd.s32 1, %s1879_s17   ;;  %s2423_s12 = smov %s1863_s13 }
 0x17d   : > { %p13_p5 = scmp.ge.s32.totalorder %s16_s17, 4   ;;  %s2424_s13 = smov %s1867_s14 }
 0x17e   : > { %s2425_s14 = smov %s1955_s25  ;;  %s2426_s15 = smov %s1875_s16 }
 0x17f   : > { %s2427_s16 = smov %s2429_s20  ;;  %15 = sbr.rel (!%p13_p5) target bundleno = 4 (0x4), region = 81 }
 0x186   :  { %1307 = vsyncpa [#allocation4], 1 }
 0x187   :  { %1309 = vsyncpa [#allocation4 + $0x1], 1 }

</bundles_post_ra>
